<compile_context>
chip_gen: v5e
topology: v5e:2x2
jax: 0.10.0
libtpu: 0.0.40
codegen_flags: <defaults>
</compile_context>

<pallas_src>
import math

import numpy as np
import jax
import jax.numpy as jnp
from jax.experimental import pallas as pl
from jax.experimental.pallas import tpu as pltpu

# ---------------- synthetic "args" / input_scheme -----------------------------
INPUT_SCHEME = [10, (6, 5), (4, 3)]   # int -> fixed features; (feat, n_ent) -> var part
ATTN_HIDDEN = 32                      # args.attn_hidden_dim
ATTN_HEADS = 2                        # args.attn_n_heads
RNN_HIDDEN = 32                       # args.rnn_hidden_dim
N_ACTIONS = 5                         # args.n_actions
USE_RNN = True                        # args.use_rnn

VAR_INFOS = [(p[0], p[1]) for p in INPUT_SCHEME if not isinstance(p, int)]  # (feat, n_ent)
LEN_FIXED = sum(p for p in INPUT_SCHEME if isinstance(p, int))
N_VAR = len(VAR_INFOS)
TOTAL_IN = sum(p if isinstance(p, int) else p[0] * p[1] for p in INPUT_SCHEME)

# ---------------- padded layout constants --------------------------------------
LANE = 128                            # every activation / weight has 128 lanes (zero padded)
B_PAD = 8                             # batch padded to a full sublane tile
VAR_NPAD = [-(-n // 8) * 8 for (_f, n) in VAR_INFOS]   # entities padded to sublane multiple
BLK_W = 128                           # weight rows per packed block (zero padded)
BLK_ROWS = BLK_W + 8                  # +8 rows; row BLK_W of each block holds the bias

assert LEN_FIXED <= LANE and ATTN_HIDDEN <= LANE
assert ATTN_HEADS * ATTN_HIDDEN <= LANE and RNN_HIDDEN + N_ACTIONS <= LANE
assert all(f <= LANE for (f, _n) in VAR_INFOS)


def _build_layout():
    names = ["ffc1"]
    for gi in range(N_VAR):
        names.append(f"vfc1_{gi}")
        for hh in range(ATTN_HEADS):
            names.append(f"wq_{gi}_{hh}")
        for hh in range(ATTN_HEADS):
            names.append(f"wk_{gi}_{hh}")
        for hh in range(ATTN_HEADS):
            names.append(f"wv_{gi}_{hh}")
        for hh in range(ATTN_HEADS):
            names.append(f"vfc2_{gi}_{hh}")
    names.append("ffc2")
    for p in range(1 + N_VAR):
        names.append(f"fc1_{p}")
    if USE_RNN:
        for g in ("ir", "iz", "in", "hr", "hz", "hn"):
            names.append(f"gru_{g}")
    names.append("fc2")
    return {n: i for i, n in enumerate(names)}


BLOCK_IDX = _build_layout()
PARAM_ROWS = len(BLOCK_IDX) * BLK_ROWS


# ---------------- logical parameter init (torch-Linear-like) -------------------
def init_params():
    key = jax.random.PRNGKey(0)
    keys = iter(jax.random.split(key, 64))
    H, heads, rnn = ATTN_HIDDEN, ATTN_HEADS, RNN_HIDDEN

    def lin(k, fan_in, fan_out):
        k1, k2 = jax.random.split(k)
        bound = 1.0 / math.sqrt(fan_in)
        w = jax.random.uniform(k1, (fan_in, fan_out), jnp.float32, -bound, bound)
        b = jax.random.uniform(k2, (fan_out,), jnp.float32, -bound, bound)
        return w, b

    p = {}
    p["ffc1"] = lin(next(keys), LEN_FIXED, H)
    for gi, (feat, _n_ent) in enumerate(VAR_INFOS):
        p[f"vfc1_{gi}"] = lin(next(keys), feat, H)
        p[f"wq_{gi}"] = lin(next(keys), H, heads * H)
        p[f"wk_{gi}"] = lin(next(keys), H, heads * H)
        p[f"wv_{gi}"] = lin(next(keys), H, heads * H)
        p[f"vfc2_{gi}"] = lin(next(keys), heads * H, H)
    p["ffc2"] = lin(next(keys), H, H)
    p["fc1"] = lin(next(keys), H * (1 + N_VAR), rnn)
    if USE_RNN:
        p["gru_ih"] = lin(next(keys), rnn, 3 * rnn)   # gates r, z, n (torch GRUCell order)
        p["gru_hh"] = lin(next(keys), rnn, 3 * rnn)
    p["fc2"] = lin(next(keys), rnn, N_ACTIONS)
    return p


# ---------------- parameter packing into one lane-dense VMEM slab ---------------
def pack_params(lp):
    H, heads, rnn = ATTN_HIDDEN, ATTN_HEADS, RNN_HIDDEN
    buf = np.zeros((PARAM_ROWS, LANE), np.float32)

    def put(name, w, b, col=0):
        r0 = BLOCK_IDX[name] * BLK_ROWS
        w = np.asarray(w, np.float32)
        di, do = w.shape
        buf[r0:r0 + di, col:col + do] = w
        if b is not None:
            b = np.asarray(b, np.float32)
            buf[r0 + BLK_W, col:col + b.shape[0]] = b

    put("ffc1", *lp["ffc1"])
    for gi in range(N_VAR):
        put(f"vfc1_{gi}", *lp[f"vfc1_{gi}"])
        wq, bq = lp[f"wq_{gi}"]
        wk, bk = lp[f"wk_{gi}"]
        wv, bv = lp[f"wv_{gi}"]
        for hh in range(heads):
            sl = slice(hh * H, (hh + 1) * H)
            put(f"wq_{gi}_{hh}", wq[:, sl], bq[sl])
            put(f"wk_{gi}_{hh}", wk[:, sl], bk[sl])
            put(f"wv_{gi}_{hh}", wv[:, sl], bv[sl])
        w2, b2 = lp[f"vfc2_{gi}"]
        for hh in range(heads):
            put(f"vfc2_{gi}_{hh}", w2[hh * H:(hh + 1) * H, :], b2 if hh == 0 else None)
    put("ffc2", *lp["ffc2"])
    w1, b1 = lp["fc1"]
    for pi in range(1 + N_VAR):
        put(f"fc1_{pi}", w1[pi * H:(pi + 1) * H, :], b1 if pi == 0 else None)
    if USE_RNN:
        wih, bih = lp["gru_ih"]
        whh, bhh = lp["gru_hh"]
        for j, g in enumerate(("ir", "iz", "in")):
            put(f"gru_{g}", wih[:, j * rnn:(j + 1) * rnn], bih[j * rnn:(j + 1) * rnn])
        for j, g in enumerate(("hr", "hz", "hn")):
            put(f"gru_{g}", whh[:, j * rnn:(j + 1) * rnn], bhh[j * rnn:(j + 1) * rnn])
    # fc2 output is placed at lanes [RNN_HIDDEN : RNN_HIDDEN + N_ACTIONS) so the kernel can
    # emit (h | q) as one lane-dense slab with a single add.
    put("fc2", *lp["fc2"], col=RNN_HIDDEN)
    return jnp.asarray(buf)


# ---------------- Pallas kernel --------------------------------------------------
def _att_rnn_kernel(*refs):
    # refs: x_fixed, xv_0..xv_{N_VAR-1}, h0, params, out, h_scratch
    x_fixed_ref = refs[0]
    xv_refs = refs[1:1 + N_VAR]
    h0_ref = refs[1 + N_VAR]
    params_ref = refs[2 + N_VAR]
    out_ref = refs[3 + N_VAR]
    h_scratch = refs[4 + N_VAR]

    f32 = jnp.float32
    relu = jax.nn.relu
    H = ATTN_HIDDEN
    scale = 1.0 / math.sqrt(H)

    t = pl.program_id(0)

    @pl.when(t == 0)
    def _():
        h_scratch[...] = h0_ref[...]

    def lin(x, name):
        # Weights are read lazily at the use site from the resident packed param slab.
        r0 = BLOCK_IDX[name] * BLK_ROWS
        w = params_ref[r0:r0 + BLK_W, :]                 # (128, 128), zero padded
        b = params_ref[r0 + BLK_W:r0 + BLK_W + 1, :]     # (1, 128), zero padded
        return jnp.dot(x, w, preferred_element_type=f32) + b

    h_in = h_scratch[...]                                # (B_PAD, 128)
    x_fixed = x_fixed_ref[...]                           # (B_PAD, 128)

    fixed_h = lin(x_fixed, "ffc1")                       # (B_PAD, 128), real lanes [0:H)
    q_in = relu(fixed_h)

    fixed_out = lin(relu(fixed_h), "ffc2")
    # fc1 is applied as accumulating dots over the concat parts (no lane concat).
    pre_fc1 = lin(relu(fixed_out), "fc1_0")              # fc1 bias lives in part 0

    for gi, (_feat, n_ent) in enumerate(VAR_INFOS):
        n_pad = VAR_NPAD[gi]
        xv = xv_refs[gi][...]                            # (B_PAD * n_pad, 128)
        a_in = lin(xv, f"vfc1_{gi}")                     # vfc1(var_input)
        k_in = relu(a_in)

        # mask out zero-padded entities in the softmax
        ent_idx = jax.lax.broadcasted_iota(jnp.int32, (B_PAD, 1, n_pad), 2)
        ent_mask = ent_idx < n_ent

        var_out = None
        for hh in range(ATTN_HEADS):                     # heads use pre-split weight blocks
            Qh = lin(q_in, f"wq_{gi}_{hh}")              # (B_PAD, 128), real lanes [0:H)
            Kh = lin(k_in, f"wk_{gi}_{hh}")              # (B_PAD*n_pad, 128)
            Vh = lin(a_in, f"wv_{gi}_{hh}")              # (B_PAD*n_pad, 128)

            K3 = Kh.reshape(B_PAD, n_pad, LANE)
            V3 = Vh.reshape(B_PAD, n_pad, LANE)
            Q3 = Qh.reshape(B_PAD, 1, LANE)

            s = jnp.einsum("bqd,bkd->bqk", Q3, K3,
                           preferred_element_type=f32) * scale      # (B_PAD, 1, n_pad)
            s = jnp.where(ent_mask, s, -1e30)
            m = jnp.max(s, axis=-1, keepdims=True)
            e = jnp.exp(s - m)
            w = e / jnp.sum(e, axis=-1, keepdims=True)               # softmax over entities
            o3 = jnp.einsum("bqk,bkd->bqd", w, V3,
                            preferred_element_type=f32)              # (B_PAD, 1, 128)
            oh = o3.reshape(B_PAD, LANE)

            # vfc2(relu(attn_h)) via per-head accumulating dots (bias only in head-0 block)
            contrib = lin(relu(oh), f"vfc2_{gi}_{hh}")
            var_out = contrib if var_out is None else var_out + contrib

        pre_fc1 = pre_fc1 + lin(relu(var_out), f"fc1_{1 + gi}")

    x = relu(pre_fc1)                                    # (B_PAD, 128), real lanes [0:rnn)

    if USE_RNN:
        # GRUCell with gate weights stored as six (rnn, rnn) blocks -> no lane slicing.
        r = jax.nn.sigmoid(lin(x, "gru_ir") + lin(h_in, "gru_hr"))
        z = jax.nn.sigmoid(lin(x, "gru_iz") + lin(h_in, "gru_hz"))
        n = jnp.tanh(lin(x, "gru_in") + r * lin(h_in, "gru_hn"))
        h_new = (1.0 - z) * n + z * h_in
    else:
        h_new = x

    # fc2 weight is packed at lane offset RNN_HIDDEN, so q lands in lanes [rnn:rnn+A)
    # and the combined (h | q) slab is produced with a single add.
    q_shift = lin(h_new, "fc2")

    h_scratch[...] = h_new
    out_ref[...] = h_new + q_shift


# ---------------- wrappers -------------------------------------------------------
def _pad_to(x, shape):
    pads = [(0, s - d) for s, d in zip(shape, x.shape)]
    return jnp.pad(x, pads)


def _prepare_inputs(inputs_seq, hidden):
    T, B, _ = inputs_seq.shape
    fixed_parts, var_parts = [], []
    idx = 0
    for part in INPUT_SCHEME:
        if isinstance(part, int):
            fixed_parts.append(inputs_seq[:, :, idx:idx + part])
            idx += part
        else:
            feat, n_ent = part   # torch does .view(-1, n_ent, feat) row-major
            var_parts.append(inputs_seq[:, :, idx:idx + feat * n_ent].reshape(T, B, n_ent, feat))
            idx += feat * n_ent
    x_fixed = _pad_to(jnp.concatenate(fixed_parts, axis=-1), (T, B_PAD, LANE))
    xvs = []
    for gi, blk in enumerate(var_parts):
        n_pad = VAR_NPAD[gi]
        blk = _pad_to(blk, (T, B_PAD, n_pad, LANE))
        xvs.append(blk.reshape(T, B_PAD * n_pad, LANE))
    h0 = _pad_to(hidden.reshape(-1, RNN_HIDDEN), (B_PAD, LANE))
    return x_fixed, xvs, h0


def att_rnn_agent_forward_seq(packed_params, inputs_seq, hidden):
    """Fused T-step forward. inputs_seq: (T, B, TOTAL_IN). Returns (q: (T,B,A), h: (T,B,rnn))."""
    T, B, feat_total = inputs_seq.shape
    assert feat_total == TOTAL_IN and B <= B_PAD
    x_fixed, xvs, h0 = _prepare_inputs(inputs_seq, hidden)

    in_specs = [pl.BlockSpec((None, B_PAD, LANE), lambda t: (t, 0, 0))]
    for gi in range(N_VAR):
        in_specs.append(pl.BlockSpec((None, B_PAD * VAR_NPAD[gi], LANE), lambda t: (t, 0, 0)))
    in_specs.append(pl.BlockSpec((B_PAD, LANE), lambda t: (0, 0)))          # h0: resident
    in_specs.append(pl.BlockSpec((PARAM_ROWS, LANE), lambda t: (0, 0)))     # params: resident

    out = pl.pallas_call(
        _att_rnn_kernel,
        out_shape=jax.ShapeDtypeStruct((T, B_PAD, LANE), jnp.float32),
        grid_spec=pltpu.PrefetchScalarGridSpec(
            num_scalar_prefetch=0,
            grid=(T,),
            in_specs=in_specs,
            out_specs=pl.BlockSpec((None, B_PAD, LANE), lambda t: (t, 0, 0)),
            scratch_shapes=[pltpu.VMEM((B_PAD, LANE), jnp.float32)],        # carried hidden
        ),
        compiler_params=pltpu.CompilerParams(
            dimension_semantics=("arbitrary",),                             # sequential carry
        ),
    )(x_fixed, *xvs, h0, packed_params)

    q_seq = out[:, :B, RNN_HIDDEN:RNN_HIDDEN + N_ACTIONS]
    h_seq = out[:, :B, :RNN_HIDDEN]
    return q_seq, h_seq


def att_rnn_agent_forward(packed_params, inputs, hidden):
    """Single-step forward with the original module signature: (inputs, hidden) -> (q, h)."""
    q_seq, h_seq = att_rnn_agent_forward_seq(packed_params, inputs[None], hidden)
    return q_seq[0], h_seq[0]


# ---------------- pure-JAX reference (mirrors the PyTorch module) -----------------
def reference_step(lp, inputs, hidden):
    B = inputs.shape[0]
    H, heads, rnn = ATTN_HIDDEN, ATTN_HEADS, RNN_HIDDEN
    relu = jax.nn.relu

    fixed_parts, var_parts = [], []
    idx = 0
    for part in INPUT_SCHEME:
        if isinstance(part, int):
            fixed_parts.append(inputs[:, idx:idx + part])
            idx += part
        else:
            feat, n_ent = part
            var_parts.append(inputs[:, idx:idx + feat * n_ent].reshape(B, n_ent, feat))
            idx += feat * n_ent
    fixed_input = jnp.concatenate(fixed_parts, axis=1)

    w, b = lp["ffc1"]
    fixed_h = fixed_input @ w + b
    q_in = relu(fixed_h)

    var_outputs = []
    for gi, (feat, n_ent) in enumerate(VAR_INFOS):
        xv = var_parts[gi].reshape(B * n_ent, feat)
        w, b = lp[f"vfc1_{gi}"]
        a_in = xv @ w + b
        k_in = relu(a_in)
        wq, bq = lp[f"wq_{gi}"]
        wk, bk = lp[f"wk_{gi}"]
        wv, bv = lp[f"wv_{gi}"]
        Q = (q_in @ wq + bq).reshape(B, heads, H)
        K = (k_in @ wk + bk).reshape(B, n_ent, heads, H)
        V = (a_in @ wv + bv).reshape(B, n_ent, heads, H)
        s = jnp.einsum("bhd,bnhd->bhn", Q, K) / math.sqrt(H)
        att = jax.nn.softmax(s, axis=-1)
        attn_h = jnp.einsum("bhn,bnhd->bhd", att, V).reshape(B, heads * H)
        w2, b2 = lp[f"vfc2_{gi}"]
        var_outputs.append(relu(attn_h) @ w2 + b2)

    w, b = lp["ffc2"]
    fixed_out = relu(fixed_h) @ w + b
    attn_out = jnp.concatenate([fixed_out] + var_outputs, axis=1)
    w1, b1 = lp["fc1"]
    x = relu(relu(attn_out) @ w1 + b1)

    h_in = hidden.reshape(-1, rnn)
    if USE_RNN:
        wih, bih = lp["gru_ih"]
        whh, bhh = lp["gru_hh"]
        gi_ = x @ wih + bih
        gh = h_in @ whh + bhh
        r = jax.nn.sigmoid(gi_[:, :rnn] + gh[:, :rnn])
        z = jax.nn.sigmoid(gi_[:, rnn:2 * rnn] + gh[:, rnn:2 * rnn])
        n = jnp.tanh(gi_[:, 2 * rnn:] + r * gh[:, 2 * rnn:])
        h = (1.0 - z) * n + z * h_in
    else:
        h = x
    wf, bf = lp["fc2"]
    q = h @ wf + bf
    return q, h


# ---------------- main ------------------------------------------------------------
if __name__ == "__main__":
    T, B = 8, 4
    logical = init_params()
    packed = pack_params(logical)

    key = jax.random.PRNGKey(0)
    k_in, k_h = jax.random.split(key)
    inputs_seq = jax.random.normal(k_in, (T, B, TOTAL_IN), jnp.float32)
    h0 = 0.1 * jax.random.normal(k_h, (B, RNN_HIDDEN), jnp.float32)

    # fused multi-step kernel
    q_seq, h_seq = att_rnn_agent_forward_seq(packed, inputs_seq, h0)
    jax.block_until_ready((q_seq, h_seq))

    # single-step API (original forward signature), exercised once
    q0, h0_out = att_rnn_agent_forward(packed, inputs_seq[0], h0)
    jax.block_until_ready((q0, h0_out))

    # pure-JAX reference rollout
    h_ref = h0
    q_refs, h_refs = [], []
    for t in range(T):
        q_r, h_ref = reference_step(logical, inputs_seq[t], h_ref)
        q_refs.append(q_r)
        h_refs.append(h_ref)
    q_ref = jnp.stack(q_refs)
    h_ref_seq = jnp.stack(h_refs)

    assert q_seq.shape == (T, B, N_ACTIONS) and h_seq.shape == (T, B, RNN_HIDDEN)
    ok = (bool(jnp.allclose(q_seq, q_ref, atol=1e-3, rtol=1e-3)) and
          bool(jnp.allclose(h_seq, h_ref_seq, atol=1e-3, rtol=1e-3)) and
          bool(jnp.allclose(q0, q_ref[0], atol=1e-3, rtol=1e-3)) and
          bool(jnp.allclose(h0_out, h_refs[0], atol=1e-3, rtol=1e-3)))
    assert ok, "Pallas kernel output mismatch vs JAX reference"
    print("KERNEL_OK")
</pallas_src>

<mosaic_0001>
module attributes {stable_mosaic.version = 11 : i64} {
  func.func @_att_rnn_kernel(%arg0: i32, %arg1: memref<1x8x128xf32, #tpu.memory_space<vmem>>, %arg2: memref<1x64x128xf32, #tpu.memory_space<vmem>>, %arg3: memref<1x64x128xf32, #tpu.memory_space<vmem>>, %arg4: memref<8x128xf32, #tpu.memory_space<vmem>>, %arg5: memref<4080x128xf32, #tpu.memory_space<vmem>>, %arg6: memref<1x8x128xf32, #tpu.memory_space<vmem>>, %arg7: memref<8x128xf32, #tpu.memory_space<vmem>>) attributes {dimension_semantics = [#tpu.dimension_semantics<arbitrary>], iteration_bounds = array<i64: 8>, scalar_prefetch = 0 : i64, scratch_operands = 1 : i64, tpu.core_type = #tpu.core_type<tc>, window_params = [{transform_indices = @transform_0, window_bounds = array<i64: 1, 8, 128>}, {transform_indices = @transform_1, window_bounds = array<i64: 1, 64, 128>}, {transform_indices = @transform_2, window_bounds = array<i64: 1, 64, 128>}, {pipeline_mode = #tpu.pipeline_mode<synchronous>, transform_indices = @transform_3, window_bounds = array<i64: 8, 128>}, {pipeline_mode = #tpu.pipeline_mode<synchronous>, transform_indices = @transform_4, window_bounds = array<i64: 4080, 128>}, {transform_indices = @transform_5, window_bounds = array<i64: 1, 8, 128>}]} {
    %c0_i32 = arith.constant 0 : i32
    %0 = arith.cmpi eq, %arg0, %c0_i32 : i32
    %1 = arith.extui %0 : i1 to i32
    %c0_i32_0 = arith.constant 0 : i32
    %2 = arith.cmpi ne, %1, %c0_i32_0 : i32
    scf.if %2 {
      %c0_145 = arith.constant 0 : index
      %c0_146 = arith.constant 0 : index
      %295 = vector.load %arg4[%c0_145, %c0_146] : memref<8x128xf32, #tpu.memory_space<vmem>>, vector<8x128xf32>
      %c0_147 = arith.constant 0 : index
      %c0_148 = arith.constant 0 : index
      %296 = vector.load %arg7[%c0_147, %c0_148] : memref<8x128xf32, #tpu.memory_space<vmem>>, vector<8x128xf32>
      tpu.vector_store %arg7[%c0_147, %c0_148], %295 {strides = array<i32>} : memref<8x128xf32, #tpu.memory_space<vmem>>, vector<8x128xf32>,
    } else {
    }
    %c0 = arith.constant 0 : index
    %c0_1 = arith.constant 0 : index
    %3 = vector.load %arg7[%c0, %c0_1] : memref<8x128xf32, #tpu.memory_space<vmem>>, vector<8x128xf32>
    %c0_2 = arith.constant 0 : index
    %c0_3 = arith.constant 0 : index
    %c0_4 = arith.constant 0 : index
    %4 = vector.load %arg1[%c0_2, %c0_3, %c0_4] : memref<1x8x128xf32, #tpu.memory_space<vmem>>, vector<1x8x128xf32>
    %5 = vector.shape_cast %4 : vector<1x8x128xf32> to vector<8x128xf32>
    %c0_5 = arith.constant 0 : index
    %c0_6 = arith.constant 0 : index
    %6 = vector.load %arg5[%c0_5, %c0_6] : memref<4080x128xf32, #tpu.memory_space<vmem>>, vector<128x128xf32>
    %c128 = arith.constant 128 : index
    %c0_7 = arith.constant 0 : index
    %7 = vector.load %arg5[%c128, %c0_7] : memref<4080x128xf32, #tpu.memory_space<vmem>>, vector<1x128xf32>
    %cst = arith.constant dense<0.000000e+00> : vector<8x128xf32>
    %8 = tpu.matmul %5, %6, %cst {dimension_numbers = #tpu.dot_dimension_numbers<[1], [0], [0], [1], [0, 0, 1, 1], [], []>} : vector<8x128xf32>, vector<128x128xf32>, vector<8x128xf32> -> vector<8x128xf32>
    %9 = vector.broadcast %7 : vector<1x128xf32> to vector<8x128xf32>
    %10 = arith.addf %8, %9 : vector<8x128xf32>
    %cst_8 = arith.constant 0.000000e+00 : f32
    %11 = vector.broadcast %cst_8 : f32 to vector<8x128xf32>
    %12 = arith.maximumf %10, %11 : vector<8x128xf32>
    %cst_9 = arith.constant 0.000000e+00 : f32
    %13 = vector.broadcast %cst_9 : f32 to vector<8x128xf32>
    %14 = arith.maximumf %10, %13 : vector<8x128xf32>
    %c2584 = arith.constant 2584 : index
    %c0_10 = arith.constant 0 : index
    %15 = vector.load %arg5[%c2584, %c0_10] : memref<4080x128xf32, #tpu.memory_space<vmem>>, vector<128x128xf32>
    %c2712 = arith.constant 2712 : index
    %c0_11 = arith.constant 0 : index
    %16 = vector.load %arg5[%c2712, %c0_11] : memref<4080x128xf32, #tpu.memory_space<vmem>>, vector<1x128xf32>
    %cst_12 = arith.constant dense<0.000000e+00> : vector<8x128xf32>
    %17 = tpu.matmul %14, %15, %cst_12 {dimension_numbers = #tpu.dot_dimension_numbers<[1], [0], [0], [1], [0, 0, 1, 1], [], []>} : vector<8x128xf32>, vector<128x128xf32>, vector<8x128xf32> -> vector<8x128xf32>
    %18 = vector.broadcast %16 : vector<1x128xf32> to vector<8x128xf32>
    %19 = arith.addf %17, %18 : vector<8x128xf32>
    %cst_13 = arith.constant 0.000000e+00 : f32
    %20 = vector.broadcast %cst_13 : f32 to vector<8x128xf32>
    %21 = arith.maximumf %19, %20 : vector<8x128xf32>
    %c2720 = arith.constant 2720 : index
    %c0_14 = arith.constant 0 : index
    %22 = vector.load %arg5[%c2720, %c0_14] : memref<4080x128xf32, #tpu.memory_space<vmem>>, vector<128x128xf32>
    %c2848 = arith.constant 2848 : index
    %c0_15 = arith.constant 0 : index
    %23 = vector.load %arg5[%c2848, %c0_15] : memref<4080x128xf32, #tpu.memory_space<vmem>>, vector<1x128xf32>
    %cst_16 = arith.constant dense<0.000000e+00> : vector<8x128xf32>
    %24 = tpu.matmul %21, %22, %cst_16 {dimension_numbers = #tpu.dot_dimension_numbers<[1], [0], [0], [1], [0, 0, 1, 1], [], []>} : vector<8x128xf32>, vector<128x128xf32>, vector<8x128xf32> -> vector<8x128xf32>
    %25 = vector.broadcast %23 : vector<1x128xf32> to vector<8x128xf32>
    %26 = arith.addf %24, %25 : vector<8x128xf32>
    %c0_17 = arith.constant 0 : index
    %c0_18 = arith.constant 0 : index
    %c0_19 = arith.constant 0 : index
    %27 = vector.load %arg2[%c0_17, %c0_18, %c0_19] : memref<1x64x128xf32, #tpu.memory_space<vmem>>, vector<1x64x128xf32>
    %28 = vector.shape_cast %27 : vector<1x64x128xf32> to vector<64x128xf32>
    %c136 = arith.constant 136 : index
    %c0_20 = arith.constant 0 : index
    %29 = vector.load %arg5[%c136, %c0_20] : memref<4080x128xf32, #tpu.memory_space<vmem>>, vector<128x128xf32>
    %c264 = arith.constant 264 : index
    %c0_21 = arith.constant 0 : index
    %30 = vector.load %arg5[%c264, %c0_21] : memref<4080x128xf32, #tpu.memory_space<vmem>>, vector<1x128xf32>
    %cst_22 = arith.constant dense<0.000000e+00> : vector<64x128xf32>
    %31 = tpu.matmul %28, %29, %cst_22 {dimension_numbers = #tpu.dot_dimension_numbers<[1], [0], [0], [1], [0, 0, 1, 1], [], []>} : vector<64x128xf32>, vector<128x128xf32>, vector<64x128xf32> -> vector<64x128xf32>
    %32 = vector.broadcast %30 : vector<1x128xf32> to vector<64x128xf32>
    %33 = arith.addf %31, %32 : vector<64x128xf32>
    %cst_23 = arith.constant 0.000000e+00 : f32
    %34 = vector.broadcast %cst_23 : f32 to vector<64x128xf32>
    %35 = arith.maximumf %33, %34 : vector<64x128xf32>
    %36 = tpu.iota {dimensions = array<i32: 2>} : vector<8x1x8xi32>
    %c5_i32 = arith.constant 5 : i32
    %37 = vector.broadcast %c5_i32 : i32 to vector<8x1x8xi32>
    %38 = arith.cmpi slt, %36, %37 : vector<8x1x8xi32>
    %c272 = arith.constant 272 : index
    %c0_24 = arith.constant 0 : index
    %39 = vector.load %arg5[%c272, %c0_24] : memref<4080x128xf32, #tpu.memory_space<vmem>>, vector<128x128xf32>
    %c400 = arith.constant 400 : index
    %c0_25 = arith.constant 0 : index
    %40 = vector.load %arg5[%c400, %c0_25] : memref<4080x128xf32, #tpu.memory_space<vmem>>, vector<1x128xf32>
    %cst_26 = arith.constant dense<0.000000e+00> : vector<8x128xf32>
    %41 = tpu.matmul %12, %39, %cst_26 {dimension_numbers = #tpu.dot_dimension_numbers<[1], [0], [0], [1], [0, 0, 1, 1], [], []>} : vector<8x128xf32>, vector<128x128xf32>, vector<8x128xf32> -> vector<8x128xf32>
    %42 = vector.broadcast %40 : vector<1x128xf32> to vector<8x128xf32>
    %43 = arith.addf %41, %42 : vector<8x128xf32>
    %c544 = arith.constant 544 : index
    %c0_27 = arith.constant 0 : index
    %44 = vector.load %arg5[%c544, %c0_27] : memref<4080x128xf32, #tpu.memory_space<vmem>>, vector<128x128xf32>
    %c672 = arith.constant 672 : index
    %c0_28 = arith.constant 0 : index
    %45 = vector.load %arg5[%c672, %c0_28] : memref<4080x128xf32, #tpu.memory_space<vmem>>, vector<1x128xf32>
    %cst_29 = arith.constant dense<0.000000e+00> : vector<64x128xf32>
    %46 = tpu.matmul %35, %44, %cst_29 {dimension_numbers = #tpu.dot_dimension_numbers<[1], [0], [0], [1], [0, 0, 1, 1], [], []>} : vector<64x128xf32>, vector<128x128xf32>, vector<64x128xf32> -> vector<64x128xf32>
    %47 = vector.broadcast %45 : vector<1x128xf32> to vector<64x128xf32>
    %48 = arith.addf %46, %47 : vector<64x128xf32>
    %c816 = arith.constant 816 : index
    %c0_30 = arith.constant 0 : index
    %49 = vector.load %arg5[%c816, %c0_30] : memref<4080x128xf32, #tpu.memory_space<vmem>>, vector<128x128xf32>
    %c944 = arith.constant 944 : index
    %c0_31 = arith.constant 0 : index
    %50 = vector.load %arg5[%c944, %c0_31] : memref<4080x128xf32, #tpu.memory_space<vmem>>, vector<1x128xf32>
    %cst_32 = arith.constant dense<0.000000e+00> : vector<64x128xf32>
    %51 = tpu.matmul %33, %49, %cst_32 {dimension_numbers = #tpu.dot_dimension_numbers<[1], [0], [0], [1], [0, 0, 1, 1], [], []>} : vector<64x128xf32>, vector<128x128xf32>, vector<64x128xf32> -> vector<64x128xf32>
    %52 = vector.broadcast %50 : vector<1x128xf32> to vector<64x128xf32>
    %53 = arith.addf %51, %52 : vector<64x128xf32>
    %54 = vector.shape_cast %48 : vector<64x128xf32> to vector<8x8x128xf32>
    %55 = vector.shape_cast %53 : vector<64x128xf32> to vector<8x8x128xf32>
    %56 = vector.shape_cast %43 : vector<8x128xf32> to vector<8x1x128xf32>
    "tpu.trace_start"() <{level = 10 : i32, message = "bqd,bkd->bqk"}> : () -> ()
    %cst_33 = arith.constant dense<0.000000e+00> : vector<8x1x8xf32>
    %57 = tpu.matmul %56, %54, %cst_33 {dimension_numbers = #tpu.dot_dimension_numbers<[2], [2], [1], [1], [0, 0, 0, 1, 1, 1], [0], [0]>} : vector<8x1x128xf32>, vector<8x8x128xf32>, vector<8x1x8xf32> -> vector<8x1x8xf32>
    "tpu.trace_stop"() : () -> ()
    %cst_34 = arith.constant 0.176776692 : f32
    %58 = vector.broadcast %cst_34 : f32 to vector<8x1x8xf32>
    %59 = arith.mulf %57, %58 : vector<8x1x8xf32>
    %cst_35 = arith.constant -1.000000e+30 : f32
    %60 = vector.broadcast %cst_35 : f32 to vector<8x1x8xf32>
    %61 = arith.select %38, %59, %60 : vector<8x1x8xi1>, vector<8x1x8xf32>
    %cst_36 = arith.constant dense<0xFF800000> : vector<8x1xf32>
    %62 = vector.multi_reduction <maximumf>, %61, %cst_36 [2] : vector<8x1x8xf32> to vector<8x1xf32>
    %63 = vector.shape_cast %62 : vector<8x1xf32> to vector<8x1x1xf32>
    %64 = vector.broadcast %63 : vector<8x1x1xf32> to vector<8x1x8xf32>
    %65 = arith.subf %61, %64 : vector<8x1x8xf32>
    %66 = math.exp %65 : vector<8x1x8xf32>
    %cst_37 = arith.constant dense<0.000000e+00> : vector<8x1xf32>
    %67 = vector.multi_reduction <add>, %66, %cst_37 [2] : vector<8x1x8xf32> to vector<8x1xf32>
    %68 = vector.shape_cast %67 : vector<8x1xf32> to vector<8x1x1xf32>
    %69 = vector.broadcast %68 : vector<8x1x1xf32> to vector<8x1x8xf32>
    %70 = arith.divf %66, %69 : vector<8x1x8xf32>
    "tpu.trace_start"() <{level = 10 : i32, message = "bqk,bkd->bqd"}> : () -> ()
    %cst_38 = arith.constant dense<0.000000e+00> : vector<8x1x128xf32>
    %71 = tpu.matmul %70, %55, %cst_38 {dimension_numbers = #tpu.dot_dimension_numbers<[2], [1], [1], [2], [0, 0, 0, 1, 1, 2], [0], [0]>} : vector<8x1x8xf32>, vector<8x8x128xf32>, vector<8x1x128xf32> -> vector<8x1x128xf32>
    "tpu.trace_stop"() : () -> ()
    %72 = vector.shape_cast %71 : vector<8x1x128xf32> to vector<8x128xf32>
    %cst_39 = arith.constant 0.000000e+00 : f32
    %73 = vector.broadcast %cst_39 : f32 to vector<8x128xf32>
    %74 = arith.maximumf %72, %73 : vector<8x128xf32>
    %c1088 = arith.constant 1088 : index
    %c0_40 = arith.constant 0 : index
    %75 = vector.load %arg5[%c1088, %c0_40] : memref<4080x128xf32, #tpu.memory_space<vmem>>, vector<128x128xf32>
    %c1216 = arith.constant 1216 : index
    %c0_41 = arith.constant 0 : index
    %76 = vector.load %arg5[%c1216, %c0_41] : memref<4080x128xf32, #tpu.memory_space<vmem>>, vector<1x128xf32>
    %cst_42 = arith.constant dense<0.000000e+00> : vector<8x128xf32>
    %77 = tpu.matmul %74, %75, %cst_42 {dimension_numbers = #tpu.dot_dimension_numbers<[1], [0], [0], [1], [0, 0, 1, 1], [], []>} : vector<8x128xf32>, vector<128x128xf32>, vector<8x128xf32> -> vector<8x128xf32>
    %78 = vector.broadcast %76 : vector<1x128xf32> to vector<8x128xf32>
    %79 = arith.addf %77, %78 : vector<8x128xf32>
    %c408 = arith.constant 408 : index
    %c0_43 = arith.constant 0 : index
    %80 = vector.load %arg5[%c408, %c0_43] : memref<4080x128xf32, #tpu.memory_space<vmem>>, vector<128x128xf32>
    %c536 = arith.constant 536 : index
    %c0_44 = arith.constant 0 : index
    %81 = vector.load %arg5[%c536, %c0_44] : memref<4080x128xf32, #tpu.memory_space<vmem>>, vector<1x128xf32>
    %cst_45 = arith.constant dense<0.000000e+00> : vector<8x128xf32>
    %82 = tpu.matmul %12, %80, %cst_45 {dimension_numbers = #tpu.dot_dimension_numbers<[1], [0], [0], [1], [0, 0, 1, 1], [], []>} : vector<8x128xf32>, vector<128x128xf32>, vector<8x128xf32> -> vector<8x128xf32>
    %83 = vector.broadcast %81 : vector<1x128xf32> to vector<8x128xf32>
    %84 = arith.addf %82, %83 : vector<8x128xf32>
    %c680 = arith.constant 680 : index
    %c0_46 = arith.constant 0 : index
    %85 = vector.load %arg5[%c680, %c0_46] : memref<4080x128xf32, #tpu.memory_space<vmem>>, vector<128x128xf32>
    %c808 = arith.constant 808 : index
    %c0_47 = arith.constant 0 : index
    %86 = vector.load %arg5[%c808, %c0_47] : memref<4080x128xf32, #tpu.memory_space<vmem>>, vector<1x128xf32>
    %cst_48 = arith.constant dense<0.000000e+00> : vector<64x128xf32>
    %87 = tpu.matmul %35, %85, %cst_48 {dimension_numbers = #tpu.dot_dimension_numbers<[1], [0], [0], [1], [0, 0, 1, 1], [], []>} : vector<64x128xf32>, vector<128x128xf32>, vector<64x128xf32> -> vector<64x128xf32>
    %88 = vector.broadcast %86 : vector<1x128xf32> to vector<64x128xf32>
    %89 = arith.addf %87, %88 : vector<64x128xf32>
    %c952 = arith.constant 952 : index
    %c0_49 = arith.constant 0 : index
    %90 = vector.load %arg5[%c952, %c0_49] : memref<4080x128xf32, #tpu.memory_space<vmem>>, vector<128x128xf32>
    %c1080 = arith.constant 1080 : index
    %c0_50 = arith.constant 0 : index
    %91 = vector.load %arg5[%c1080, %c0_50] : memref<4080x128xf32, #tpu.memory_space<vmem>>, vector<1x128xf32>
    %cst_51 = arith.constant dense<0.000000e+00> : vector<64x128xf32>
    %92 = tpu.matmul %33, %90, %cst_51 {dimension_numbers = #tpu.dot_dimension_numbers<[1], [0], [0], [1], [0, 0, 1, 1], [], []>} : vector<64x128xf32>, vector<128x128xf32>, vector<64x128xf32> -> vector<64x128xf32>
    %93 = vector.broadcast %91 : vector<1x128xf32> to vector<64x128xf32>
    %94 = arith.addf %92, %93 : vector<64x128xf32>
    %95 = vector.shape_cast %89 : vector<64x128xf32> to vector<8x8x128xf32>
    %96 = vector.shape_cast %94 : vector<64x128xf32> to vector<8x8x128xf32>
    %97 = vector.shape_cast %84 : vector<8x128xf32> to vector<8x1x128xf32>
    "tpu.trace_start"() <{level = 10 : i32, message = "bqd,bkd->bqk"}> : () -> ()
    %cst_52 = arith.constant dense<0.000000e+00> : vector<8x1x8xf32>
    %98 = tpu.matmul %97, %95, %cst_52 {dimension_numbers = #tpu.dot_dimension_numbers<[2], [2], [1], [1], [0, 0, 0, 1, 1, 1], [0], [0]>} : vector<8x1x128xf32>, vector<8x8x128xf32>, vector<8x1x8xf32> -> vector<8x1x8xf32>
    "tpu.trace_stop"() : () -> ()
    %cst_53 = arith.constant 0.176776692 : f32
    %99 = vector.broadcast %cst_53 : f32 to vector<8x1x8xf32>
    %100 = arith.mulf %98, %99 : vector<8x1x8xf32>
    %cst_54 = arith.constant -1.000000e+30 : f32
    %101 = vector.broadcast %cst_54 : f32 to vector<8x1x8xf32>
    %102 = arith.select %38, %100, %101 : vector<8x1x8xi1>, vector<8x1x8xf32>
    %cst_55 = arith.constant dense<0xFF800000> : vector<8x1xf32>
    %103 = vector.multi_reduction <maximumf>, %102, %cst_55 [2] : vector<8x1x8xf32> to vector<8x1xf32>
    %104 = vector.shape_cast %103 : vector<8x1xf32> to vector<8x1x1xf32>
    %105 = vector.broadcast %104 : vector<8x1x1xf32> to vector<8x1x8xf32>
    %106 = arith.subf %102, %105 : vector<8x1x8xf32>
    %107 = math.exp %106 : vector<8x1x8xf32>
    %cst_56 = arith.constant dense<0.000000e+00> : vector<8x1xf32>
    %108 = vector.multi_reduction <add>, %107, %cst_56 [2] : vector<8x1x8xf32> to vector<8x1xf32>
    %109 = vector.shape_cast %108 : vector<8x1xf32> to vector<8x1x1xf32>
    %110 = vector.broadcast %109 : vector<8x1x1xf32> to vector<8x1x8xf32>
    %111 = arith.divf %107, %110 : vector<8x1x8xf32>
    "tpu.trace_start"() <{level = 10 : i32, message = "bqk,bkd->bqd"}> : () -> ()
    %cst_57 = arith.constant dense<0.000000e+00> : vector<8x1x128xf32>
    %112 = tpu.matmul %111, %96, %cst_57 {dimension_numbers = #tpu.dot_dimension_numbers<[2], [1], [1], [2], [0, 0, 0, 1, 1, 2], [0], [0]>} : vector<8x1x8xf32>, vector<8x8x128xf32>, vector<8x1x128xf32> -> vector<8x1x128xf32>
    "tpu.trace_stop"() : () -> ()
    %113 = vector.shape_cast %112 : vector<8x1x128xf32> to vector<8x128xf32>
    %cst_58 = arith.constant 0.000000e+00 : f32
    %114 = vector.broadcast %cst_58 : f32 to vector<8x128xf32>
    %115 = arith.maximumf %113, %114 : vector<8x128xf32>
    %c1224 = arith.constant 1224 : index
    %c0_59 = arith.constant 0 : index
    %116 = vector.load %arg5[%c1224, %c0_59] : memref<4080x128xf32, #tpu.memory_space<vmem>>, vector<128x128xf32>
    %c1352 = arith.constant 1352 : index
    %c0_60 = arith.constant 0 : index
    %117 = vector.load %arg5[%c1352, %c0_60] : memref<4080x128xf32, #tpu.memory_space<vmem>>, vector<1x128xf32>
    %cst_61 = arith.constant dense<0.000000e+00> : vector<8x128xf32>
    %118 = tpu.matmul %115, %116, %cst_61 {dimension_numbers = #tpu.dot_dimension_numbers<[1], [0], [0], [1], [0, 0, 1, 1], [], []>} : vector<8x128xf32>, vector<128x128xf32>, vector<8x128xf32> -> vector<8x128xf32>
    %119 = vector.broadcast %117 : vector<1x128xf32> to vector<8x128xf32>
    %120 = arith.addf %118, %119 : vector<8x128xf32>
    %121 = arith.addf %79, %120 : vector<8x128xf32>
    %cst_62 = arith.constant 0.000000e+00 : f32
    %122 = vector.broadcast %cst_62 : f32 to vector<8x128xf32>
    %123 = arith.maximumf %121, %122 : vector<8x128xf32>
    %c2856 = arith.constant 2856 : index
    %c0_63 = arith.constant 0 : index
    %124 = vector.load %arg5[%c2856, %c0_63] : memref<4080x128xf32, #tpu.memory_space<vmem>>, vector<128x128xf32>
    %c2984 = arith.constant 2984 : index
    %c0_64 = arith.constant 0 : index
    %125 = vector.load %arg5[%c2984, %c0_64] : memref<4080x128xf32, #tpu.memory_space<vmem>>, vector<1x128xf32>
    %cst_65 = arith.constant dense<0.000000e+00> : vector<8x128xf32>
    %126 = tpu.matmul %123, %124, %cst_65 {dimension_numbers = #tpu.dot_dimension_numbers<[1], [0], [0], [1], [0, 0, 1, 1], [], []>} : vector<8x128xf32>, vector<128x128xf32>, vector<8x128xf32> -> vector<8x128xf32>
    %127 = vector.broadcast %125 : vector<1x128xf32> to vector<8x128xf32>
    %128 = arith.addf %126, %127 : vector<8x128xf32>
    %129 = arith.addf %26, %128 : vector<8x128xf32>
    %c0_66 = arith.constant 0 : index
    %c0_67 = arith.constant 0 : index
    %c0_68 = arith.constant 0 : index
    %130 = vector.load %arg3[%c0_66, %c0_67, %c0_68] : memref<1x64x128xf32, #tpu.memory_space<vmem>>, vector<1x64x128xf32>
    %131 = vector.shape_cast %130 : vector<1x64x128xf32> to vector<64x128xf32>
    %c1360 = arith.constant 1360 : index
    %c0_69 = arith.constant 0 : index
    %132 = vector.load %arg5[%c1360, %c0_69] : memref<4080x128xf32, #tpu.memory_space<vmem>>, vector<128x128xf32>
    %c1488 = arith.constant 1488 : index
    %c0_70 = arith.constant 0 : index
    %133 = vector.load %arg5[%c1488, %c0_70] : memref<4080x128xf32, #tpu.memory_space<vmem>>, vector<1x128xf32>
    %cst_71 = arith.constant dense<0.000000e+00> : vector<64x128xf32>
    %134 = tpu.matmul %131, %132, %cst_71 {dimension_numbers = #tpu.dot_dimension_numbers<[1], [0], [0], [1], [0, 0, 1, 1], [], []>} : vector<64x128xf32>, vector<128x128xf32>, vector<64x128xf32> -> vector<64x128xf32>
    %135 = vector.broadcast %133 : vector<1x128xf32> to vector<64x128xf32>
    %136 = arith.addf %134, %135 : vector<64x128xf32>
    %cst_72 = arith.constant 0.000000e+00 : f32
    %137 = vector.broadcast %cst_72 : f32 to vector<64x128xf32>
    %138 = arith.maximumf %136, %137 : vector<64x128xf32>
    %139 = tpu.iota {dimensions = array<i32: 2>} : vector<8x1x8xi32>
    %c3_i32 = arith.constant 3 : i32
    %140 = vector.broadcast %c3_i32 : i32 to vector<8x1x8xi32>
    %141 = arith.cmpi slt, %139, %140 : vector<8x1x8xi32>
    %c1496 = arith.constant 1496 : index
    %c0_73 = arith.constant 0 : index
    %142 = vector.load %arg5[%c1496, %c0_73] : memref<4080x128xf32, #tpu.memory_space<vmem>>, vector<128x128xf32>
    %c1624 = arith.constant 1624 : index
    %c0_74 = arith.constant 0 : index
    %143 = vector.load %arg5[%c1624, %c0_74] : memref<4080x128xf32, #tpu.memory_space<vmem>>, vector<1x128xf32>
    %cst_75 = arith.constant dense<0.000000e+00> : vector<8x128xf32>
    %144 = tpu.matmul %12, %142, %cst_75 {dimension_numbers = #tpu.dot_dimension_numbers<[1], [0], [0], [1], [0, 0, 1, 1], [], []>} : vector<8x128xf32>, vector<128x128xf32>, vector<8x128xf32> -> vector<8x128xf32>
    %145 = vector.broadcast %143 : vector<1x128xf32> to vector<8x128xf32>
    %146 = arith.addf %144, %145 : vector<8x128xf32>
    %c1768 = arith.constant 1768 : index
    %c0_76 = arith.constant 0 : index
    %147 = vector.load %arg5[%c1768, %c0_76] : memref<4080x128xf32, #tpu.memory_space<vmem>>, vector<128x128xf32>
    %c1896 = arith.constant 1896 : index
    %c0_77 = arith.constant 0 : index
    %148 = vector.load %arg5[%c1896, %c0_77] : memref<4080x128xf32, #tpu.memory_space<vmem>>, vector<1x128xf32>
    %cst_78 = arith.constant dense<0.000000e+00> : vector<64x128xf32>
    %149 = tpu.matmul %138, %147, %cst_78 {dimension_numbers = #tpu.dot_dimension_numbers<[1], [0], [0], [1], [0, 0, 1, 1], [], []>} : vector<64x128xf32>, vector<128x128xf32>, vector<64x128xf32> -> vector<64x128xf32>
    %150 = vector.broadcast %148 : vector<1x128xf32> to vector<64x128xf32>
    %151 = arith.addf %149, %150 : vector<64x128xf32>
    %c2040 = arith.constant 2040 : index
    %c0_79 = arith.constant 0 : index
    %152 = vector.load %arg5[%c2040, %c0_79] : memref<4080x128xf32, #tpu.memory_space<vmem>>, vector<128x128xf32>
    %c2168 = arith.constant 2168 : index
    %c0_80 = arith.constant 0 : index
    %153 = vector.load %arg5[%c2168, %c0_80] : memref<4080x128xf32, #tpu.memory_space<vmem>>, vector<1x128xf32>
    %cst_81 = arith.constant dense<0.000000e+00> : vector<64x128xf32>
    %154 = tpu.matmul %136, %152, %cst_81 {dimension_numbers = #tpu.dot_dimension_numbers<[1], [0], [0], [1], [0, 0, 1, 1], [], []>} : vector<64x128xf32>, vector<128x128xf32>, vector<64x128xf32> -> vector<64x128xf32>
    %155 = vector.broadcast %153 : vector<1x128xf32> to vector<64x128xf32>
    %156 = arith.addf %154, %155 : vector<64x128xf32>
    %157 = vector.shape_cast %151 : vector<64x128xf32> to vector<8x8x128xf32>
    %158 = vector.shape_cast %156 : vector<64x128xf32> to vector<8x8x128xf32>
    %159 = vector.shape_cast %146 : vector<8x128xf32> to vector<8x1x128xf32>
    "tpu.trace_start"() <{level = 10 : i32, message = "bqd,bkd->bqk"}> : () -> ()
    %cst_82 = arith.constant dense<0.000000e+00> : vector<8x1x8xf32>
    %160 = tpu.matmul %159, %157, %cst_82 {dimension_numbers = #tpu.dot_dimension_numbers<[2], [2], [1], [1], [0, 0, 0, 1, 1, 1], [0], [0]>} : vector<8x1x128xf32>, vector<8x8x128xf32>, vector<8x1x8xf32> -> vector<8x1x8xf32>
    "tpu.trace_stop"() : () -> ()
    %cst_83 = arith.constant 0.176776692 : f32
    %161 = vector.broadcast %cst_83 : f32 to vector<8x1x8xf32>
    %162 = arith.mulf %160, %161 : vector<8x1x8xf32>
    %cst_84 = arith.constant -1.000000e+30 : f32
    %163 = vector.broadcast %cst_84 : f32 to vector<8x1x8xf32>
    %164 = arith.select %141, %162, %163 : vector<8x1x8xi1>, vector<8x1x8xf32>
    %cst_85 = arith.constant dense<0xFF800000> : vector<8x1xf32>
    %165 = vector.multi_reduction <maximumf>, %164, %cst_85 [2] : vector<8x1x8xf32> to vector<8x1xf32>
    %166 = vector.shape_cast %165 : vector<8x1xf32> to vector<8x1x1xf32>
    %167 = vector.broadcast %166 : vector<8x1x1xf32> to vector<8x1x8xf32>
    %168 = arith.subf %164, %167 : vector<8x1x8xf32>
    %169 = math.exp %168 : vector<8x1x8xf32>
    %cst_86 = arith.constant dense<0.000000e+00> : vector<8x1xf32>
    %170 = vector.multi_reduction <add>, %169, %cst_86 [2] : vector<8x1x8xf32> to vector<8x1xf32>
    %171 = vector.shape_cast %170 : vector<8x1xf32> to vector<8x1x1xf32>
    %172 = vector.broadcast %171 : vector<8x1x1xf32> to vector<8x1x8xf32>
    %173 = arith.divf %169, %172 : vector<8x1x8xf32>
    "tpu.trace_start"() <{level = 10 : i32, message = "bqk,bkd->bqd"}> : () -> ()
    %cst_87 = arith.constant dense<0.000000e+00> : vector<8x1x128xf32>
    %174 = tpu.matmul %173, %158, %cst_87 {dimension_numbers = #tpu.dot_dimension_numbers<[2], [1], [1], [2], [0, 0, 0, 1, 1, 2], [0], [0]>} : vector<8x1x8xf32>, vector<8x8x128xf32>, vector<8x1x128xf32> -> vector<8x1x128xf32>
    "tpu.trace_stop"() : () -> ()
    %175 = vector.shape_cast %174 : vector<8x1x128xf32> to vector<8x128xf32>
    %cst_88 = arith.constant 0.000000e+00 : f32
    %176 = vector.broadcast %cst_88 : f32 to vector<8x128xf32>
    %177 = arith.maximumf %175, %176 : vector<8x128xf32>
    %c2312 = arith.constant 2312 : index
    %c0_89 = arith.constant 0 : index
    %178 = vector.load %arg5[%c2312, %c0_89] : memref<4080x128xf32, #tpu.memory_space<vmem>>, vector<128x128xf32>
    %c2440 = arith.constant 2440 : index
    %c0_90 = arith.constant 0 : index
    %179 = vector.load %arg5[%c2440, %c0_90] : memref<4080x128xf32, #tpu.memory_space<vmem>>, vector<1x128xf32>
    %cst_91 = arith.constant dense<0.000000e+00> : vector<8x128xf32>
    %180 = tpu.matmul %177, %178, %cst_91 {dimension_numbers = #tpu.dot_dimension_numbers<[1], [0], [0], [1], [0, 0, 1, 1], [], []>} : vector<8x128xf32>, vector<128x128xf32>, vector<8x128xf32> -> vector<8x128xf32>
    %181 = vector.broadcast %179 : vector<1x128xf32> to vector<8x128xf32>
    %182 = arith.addf %180, %181 : vector<8x128xf32>
    %c1632 = arith.constant 1632 : index
    %c0_92 = arith.constant 0 : index
    %183 = vector.load %arg5[%c1632, %c0_92] : memref<4080x128xf32, #tpu.memory_space<vmem>>, vector<128x128xf32>
    %c1760 = arith.constant 1760 : index
    %c0_93 = arith.constant 0 : index
    %184 = vector.load %arg5[%c1760, %c0_93] : memref<4080x128xf32, #tpu.memory_space<vmem>>, vector<1x128xf32>
    %cst_94 = arith.constant dense<0.000000e+00> : vector<8x128xf32>
    %185 = tpu.matmul %12, %183, %cst_94 {dimension_numbers = #tpu.dot_dimension_numbers<[1], [0], [0], [1], [0, 0, 1, 1], [], []>} : vector<8x128xf32>, vector<128x128xf32>, vector<8x128xf32> -> vector<8x128xf32>
    %186 = vector.broadcast %184 : vector<1x128xf32> to vector<8x128xf32>
    %187 = arith.addf %185, %186 : vector<8x128xf32>
    %c1904 = arith.constant 1904 : index
    %c0_95 = arith.constant 0 : index
    %188 = vector.load %arg5[%c1904, %c0_95] : memref<4080x128xf32, #tpu.memory_space<vmem>>, vector<128x128xf32>
    %c2032 = arith.constant 2032 : index
    %c0_96 = arith.constant 0 : index
    %189 = vector.load %arg5[%c2032, %c0_96] : memref<4080x128xf32, #tpu.memory_space<vmem>>, vector<1x128xf32>
    %cst_97 = arith.constant dense<0.000000e+00> : vector<64x128xf32>
    %190 = tpu.matmul %138, %188, %cst_97 {dimension_numbers = #tpu.dot_dimension_numbers<[1], [0], [0], [1], [0, 0, 1, 1], [], []>} : vector<64x128xf32>, vector<128x128xf32>, vector<64x128xf32> -> vector<64x128xf32>
    %191 = vector.broadcast %189 : vector<1x128xf32> to vector<64x128xf32>
    %192 = arith.addf %190, %191 : vector<64x128xf32>
    %c2176 = arith.constant 2176 : index
    %c0_98 = arith.constant 0 : index
    %193 = vector.load %arg5[%c2176, %c0_98] : memref<4080x128xf32, #tpu.memory_space<vmem>>, vector<128x128xf32>
    %c2304 = arith.constant 2304 : index
    %c0_99 = arith.constant 0 : index
    %194 = vector.load %arg5[%c2304, %c0_99] : memref<4080x128xf32, #tpu.memory_space<vmem>>, vector<1x128xf32>
    %cst_100 = arith.constant dense<0.000000e+00> : vector<64x128xf32>
    %195 = tpu.matmul %136, %193, %cst_100 {dimension_numbers = #tpu.dot_dimension_numbers<[1], [0], [0], [1], [0, 0, 1, 1], [], []>} : vector<64x128xf32>, vector<128x128xf32>, vector<64x128xf32> -> vector<64x128xf32>
    %196 = vector.broadcast %194 : vector<1x128xf32> to vector<64x128xf32>
    %197 = arith.addf %195, %196 : vector<64x128xf32>
    %198 = vector.shape_cast %192 : vector<64x128xf32> to vector<8x8x128xf32>
    %199 = vector.shape_cast %197 : vector<64x128xf32> to vector<8x8x128xf32>
    %200 = vector.shape_cast %187 : vector<8x128xf32> to vector<8x1x128xf32>
    "tpu.trace_start"() <{level = 10 : i32, message = "bqd,bkd->bqk"}> : () -> ()
    %cst_101 = arith.constant dense<0.000000e+00> : vector<8x1x8xf32>
    %201 = tpu.matmul %200, %198, %cst_101 {dimension_numbers = #tpu.dot_dimension_numbers<[2], [2], [1], [1], [0, 0, 0, 1, 1, 1], [0], [0]>} : vector<8x1x128xf32>, vector<8x8x128xf32>, vector<8x1x8xf32> -> vector<8x1x8xf32>
    "tpu.trace_stop"() : () -> ()
    %cst_102 = arith.constant 0.176776692 : f32
    %202 = vector.broadcast %cst_102 : f32 to vector<8x1x8xf32>
    %203 = arith.mulf %201, %202 : vector<8x1x8xf32>
    %cst_103 = arith.constant -1.000000e+30 : f32
    %204 = vector.broadcast %cst_103 : f32 to vector<8x1x8xf32>
    %205 = arith.select %141, %203, %204 : vector<8x1x8xi1>, vector<8x1x8xf32>
    %cst_104 = arith.constant dense<0xFF800000> : vector<8x1xf32>
    %206 = vector.multi_reduction <maximumf>, %205, %cst_104 [2] : vector<8x1x8xf32> to vector<8x1xf32>
    %207 = vector.shape_cast %206 : vector<8x1xf32> to vector<8x1x1xf32>
    %208 = vector.broadcast %207 : vector<8x1x1xf32> to vector<8x1x8xf32>
    %209 = arith.subf %205, %208 : vector<8x1x8xf32>
    %210 = math.exp %209 : vector<8x1x8xf32>
    %cst_105 = arith.constant dense<0.000000e+00> : vector<8x1xf32>
    %211 = vector.multi_reduction <add>, %210, %cst_105 [2] : vector<8x1x8xf32> to vector<8x1xf32>
    %212 = vector.shape_cast %211 : vector<8x1xf32> to vector<8x1x1xf32>
    %213 = vector.broadcast %212 : vector<8x1x1xf32> to vector<8x1x8xf32>
    %214 = arith.divf %210, %213 : vector<8x1x8xf32>
    "tpu.trace_start"() <{level = 10 : i32, message = "bqk,bkd->bqd"}> : () -> ()
    %cst_106 = arith.constant dense<0.000000e+00> : vector<8x1x128xf32>
    %215 = tpu.matmul %214, %199, %cst_106 {dimension_numbers = #tpu.dot_dimension_numbers<[2], [1], [1], [2], [0, 0, 0, 1, 1, 2], [0], [0]>} : vector<8x1x8xf32>, vector<8x8x128xf32>, vector<8x1x128xf32> -> vector<8x1x128xf32>
    "tpu.trace_stop"() : () -> ()
    %216 = vector.shape_cast %215 : vector<8x1x128xf32> to vector<8x128xf32>
    %cst_107 = arith.constant 0.000000e+00 : f32
    %217 = vector.broadcast %cst_107 : f32 to vector<8x128xf32>
    %218 = arith.maximumf %216, %217 : vector<8x128xf32>
    %c2448 = arith.constant 2448 : index
    %c0_108 = arith.constant 0 : index
    %219 = vector.load %arg5[%c2448, %c0_108] : memref<4080x128xf32, #tpu.memory_space<vmem>>, vector<128x128xf32>
    %c2576 = arith.constant 2576 : index
    %c0_109 = arith.constant 0 : index
    %220 = vector.load %arg5[%c2576, %c0_109] : memref<4080x128xf32, #tpu.memory_space<vmem>>, vector<1x128xf32>
    %cst_110 = arith.constant dense<0.000000e+00> : vector<8x128xf32>
    %221 = tpu.matmul %218, %219, %cst_110 {dimension_numbers = #tpu.dot_dimension_numbers<[1], [0], [0], [1], [0, 0, 1, 1], [], []>} : vector<8x128xf32>, vector<128x128xf32>, vector<8x128xf32> -> vector<8x128xf32>
    %222 = vector.broadcast %220 : vector<1x128xf32> to vector<8x128xf32>
    %223 = arith.addf %221, %222 : vector<8x128xf32>
    %224 = arith.addf %182, %223 : vector<8x128xf32>
    %cst_111 = arith.constant 0.000000e+00 : f32
    %225 = vector.broadcast %cst_111 : f32 to vector<8x128xf32>
    %226 = arith.maximumf %224, %225 : vector<8x128xf32>
    %c2992 = arith.constant 2992 : index
    %c0_112 = arith.constant 0 : index
    %227 = vector.load %arg5[%c2992, %c0_112] : memref<4080x128xf32, #tpu.memory_space<vmem>>, vector<128x128xf32>
    %c3120 = arith.constant 3120 : index
    %c0_113 = arith.constant 0 : index
    %228 = vector.load %arg5[%c3120, %c0_113] : memref<4080x128xf32, #tpu.memory_space<vmem>>, vector<1x128xf32>
    %cst_114 = arith.constant dense<0.000000e+00> : vector<8x128xf32>
    %229 = tpu.matmul %226, %227, %cst_114 {dimension_numbers = #tpu.dot_dimension_numbers<[1], [0], [0], [1], [0, 0, 1, 1], [], []>} : vector<8x128xf32>, vector<128x128xf32>, vector<8x128xf32> -> vector<8x128xf32>
    %230 = vector.broadcast %228 : vector<1x128xf32> to vector<8x128xf32>
    %231 = arith.addf %229, %230 : vector<8x128xf32>
    %232 = arith.addf %129, %231 : vector<8x128xf32>
    %cst_115 = arith.constant 0.000000e+00 : f32
    %233 = vector.broadcast %cst_115 : f32 to vector<8x128xf32>
    %234 = arith.maximumf %232, %233 : vector<8x128xf32>
    %c3128 = arith.constant 3128 : index
    %c0_116 = arith.constant 0 : index
    %235 = vector.load %arg5[%c3128, %c0_116] : memref<4080x128xf32, #tpu.memory_space<vmem>>, vector<128x128xf32>
    %c3256 = arith.constant 3256 : index
    %c0_117 = arith.constant 0 : index
    %236 = vector.load %arg5[%c3256, %c0_117] : memref<4080x128xf32, #tpu.memory_space<vmem>>, vector<1x128xf32>
    %cst_118 = arith.constant dense<0.000000e+00> : vector<8x128xf32>
    %237 = tpu.matmul %234, %235, %cst_118 {dimension_numbers = #tpu.dot_dimension_numbers<[1], [0], [0], [1], [0, 0, 1, 1], [], []>} : vector<8x128xf32>, vector<128x128xf32>, vector<8x128xf32> -> vector<8x128xf32>
    %238 = vector.broadcast %236 : vector<1x128xf32> to vector<8x128xf32>
    %239 = arith.addf %237, %238 : vector<8x128xf32>
    %c3536 = arith.constant 3536 : index
    %c0_119 = arith.constant 0 : index
    %240 = vector.load %arg5[%c3536, %c0_119] : memref<4080x128xf32, #tpu.memory_space<vmem>>, vector<128x128xf32>
    %c3664 = arith.constant 3664 : index
    %c0_120 = arith.constant 0 : index
    %241 = vector.load %arg5[%c3664, %c0_120] : memref<4080x128xf32, #tpu.memory_space<vmem>>, vector<1x128xf32>
    %cst_121 = arith.constant dense<0.000000e+00> : vector<8x128xf32>
    %242 = tpu.matmul %3, %240, %cst_121 {dimension_numbers = #tpu.dot_dimension_numbers<[1], [0], [0], [1], [0, 0, 1, 1], [], []>} : vector<8x128xf32>, vector<128x128xf32>, vector<8x128xf32> -> vector<8x128xf32>
    %243 = vector.broadcast %241 : vector<1x128xf32> to vector<8x128xf32>
    %244 = arith.addf %242, %243 : vector<8x128xf32>
    %245 = arith.addf %239, %244 : vector<8x128xf32>
    %246 = arith.negf %245 : vector<8x128xf32>
    %247 = math.exp %246 : vector<8x128xf32>
    %cst_122 = arith.constant 1.000000e+00 : f32
    %248 = vector.broadcast %cst_122 : f32 to vector<8x128xf32>
    %249 = arith.addf %248, %247 : vector<8x128xf32>
    %250 = arith.divf %248, %249 : vector<8x128xf32>
    %c3264 = arith.constant 3264 : index
    %c0_123 = arith.constant 0 : index
    %251 = vector.load %arg5[%c3264, %c0_123] : memref<4080x128xf32, #tpu.memory_space<vmem>>, vector<128x128xf32>
    %c3392 = arith.constant 3392 : index
    %c0_124 = arith.constant 0 : index
    %252 = vector.load %arg5[%c3392, %c0_124] : memref<4080x128xf32, #tpu.memory_space<vmem>>, vector<1x128xf32>
    %cst_125 = arith.constant dense<0.000000e+00> : vector<8x128xf32>
    %253 = tpu.matmul %234, %251, %cst_125 {dimension_numbers = #tpu.dot_dimension_numbers<[1], [0], [0], [1], [0, 0, 1, 1], [], []>} : vector<8x128xf32>, vector<128x128xf32>, vector<8x128xf32> -> vector<8x128xf32>
    %254 = vector.broadcast %252 : vector<1x128xf32> to vector<8x128xf32>
    %255 = arith.addf %253, %254 : vector<8x128xf32>
    %c3672 = arith.constant 3672 : index
    %c0_126 = arith.constant 0 : index
    %256 = vector.load %arg5[%c3672, %c0_126] : memref<4080x128xf32, #tpu.memory_space<vmem>>, vector<128x128xf32>
    %c3800 = arith.constant 3800 : index
    %c0_127 = arith.constant 0 : index
    %257 = vector.load %arg5[%c3800, %c0_127] : memref<4080x128xf32, #tpu.memory_space<vmem>>, vector<1x128xf32>
    %cst_128 = arith.constant dense<0.000000e+00> : vector<8x128xf32>
    %258 = tpu.matmul %3, %256, %cst_128 {dimension_numbers = #tpu.dot_dimension_numbers<[1], [0], [0], [1], [0, 0, 1, 1], [], []>} : vector<8x128xf32>, vector<128x128xf32>, vector<8x128xf32> -> vector<8x128xf32>
    %259 = vector.broadcast %257 : vector<1x128xf32> to vector<8x128xf32>
    %260 = arith.addf %258, %259 : vector<8x128xf32>
    %261 = arith.addf %255, %260 : vector<8x128xf32>
    %262 = arith.negf %261 : vector<8x128xf32>
    %263 = math.exp %262 : vector<8x128xf32>
    %cst_129 = arith.constant 1.000000e+00 : f32
    %264 = vector.broadcast %cst_129 : f32 to vector<8x128xf32>
    %265 = arith.addf %264, %263 : vector<8x128xf32>
    %266 = arith.divf %264, %265 : vector<8x128xf32>
    %c3400 = arith.constant 3400 : index
    %c0_130 = arith.constant 0 : index
    %267 = vector.load %arg5[%c3400, %c0_130] : memref<4080x128xf32, #tpu.memory_space<vmem>>, vector<128x128xf32>
    %c3528 = arith.constant 3528 : index
    %c0_131 = arith.constant 0 : index
    %268 = vector.load %arg5[%c3528, %c0_131] : memref<4080x128xf32, #tpu.memory_space<vmem>>, vector<1x128xf32>
    %cst_132 = arith.constant dense<0.000000e+00> : vector<8x128xf32>
    %269 = tpu.matmul %234, %267, %cst_132 {dimension_numbers = #tpu.dot_dimension_numbers<[1], [0], [0], [1], [0, 0, 1, 1], [], []>} : vector<8x128xf32>, vector<128x128xf32>, vector<8x128xf32> -> vector<8x128xf32>
    %270 = vector.broadcast %268 : vector<1x128xf32> to vector<8x128xf32>
    %271 = arith.addf %269, %270 : vector<8x128xf32>
    %c3808 = arith.constant 3808 : index
    %c0_133 = arith.constant 0 : index
    %272 = vector.load %arg5[%c3808, %c0_133] : memref<4080x128xf32, #tpu.memory_space<vmem>>, vector<128x128xf32>
    %c3936 = arith.constant 3936 : index
    %c0_134 = arith.constant 0 : index
    %273 = vector.load %arg5[%c3936, %c0_134] : memref<4080x128xf32, #tpu.memory_space<vmem>>, vector<1x128xf32>
    %cst_135 = arith.constant dense<0.000000e+00> : vector<8x128xf32>
    %274 = tpu.matmul %3, %272, %cst_135 {dimension_numbers = #tpu.dot_dimension_numbers<[1], [0], [0], [1], [0, 0, 1, 1], [], []>} : vector<8x128xf32>, vector<128x128xf32>, vector<8x128xf32> -> vector<8x128xf32>
    %275 = vector.broadcast %273 : vector<1x128xf32> to vector<8x128xf32>
    %276 = arith.addf %274, %275 : vector<8x128xf32>
    %277 = arith.mulf %250, %276 : vector<8x128xf32>
    %278 = arith.addf %271, %277 : vector<8x128xf32>
    %279 = math.tanh %278 : vector<8x128xf32>
    %cst_136 = arith.constant 1.000000e+00 : f32
    %280 = vector.broadcast %cst_136 : f32 to vector<8x128xf32>
    %281 = arith.subf %280, %266 : vector<8x128xf32>
    %282 = arith.mulf %281, %279 : vector<8x128xf32>
    %283 = arith.mulf %266, %3 : vector<8x128xf32>
    %284 = arith.addf %282, %283 : vector<8x128xf32>
    %c3944 = arith.constant 3944 : index
    %c0_137 = arith.constant 0 : index
    %285 = vector.load %arg5[%c3944, %c0_137] : memref<4080x128xf32, #tpu.memory_space<vmem>>, vector<128x128xf32>
    %c4072 = arith.constant 4072 : index
    %c0_138 = arith.constant 0 : index
    %286 = vector.load %arg5[%c4072, %c0_138] : memref<4080x128xf32, #tpu.memory_space<vmem>>, vector<1x128xf32>
    %cst_139 = arith.constant dense<0.000000e+00> : vector<8x128xf32>
    %287 = tpu.matmul %284, %285, %cst_139 {dimension_numbers = #tpu.dot_dimension_numbers<[1], [0], [0], [1], [0, 0, 1, 1], [], []>} : vector<8x128xf32>, vector<128x128xf32>, vector<8x128xf32> -> vector<8x128xf32>
    %288 = vector.broadcast %286 : vector<1x128xf32> to vector<8x128xf32>
    %289 = arith.addf %287, %288 : vector<8x128xf32>
    %c0_140 = arith.constant 0 : index
    %c0_141 = arith.constant 0 : index
    %290 = vector.load %arg7[%c0_140, %c0_141] : memref<8x128xf32, #tpu.memory_space<vmem>>, vector<8x128xf32>
    tpu.vector_store %arg7[%c0_140, %c0_141], %284 {strides = array<i32>} : memref<8x128xf32, #tpu.memory_space<vmem>>, vector<8x128xf32>,
    %291 = arith.addf %284, %289 : vector<8x128xf32>
    %c0_142 = arith.constant 0 : index
    %c0_143 = arith.constant 0 : index
    %c0_144 = arith.constant 0 : index
    %292 = vector.load %arg6[%c0_142, %c0_143, %c0_144] : memref<1x8x128xf32, #tpu.memory_space<vmem>>, vector<1x8x128xf32>
    %293 = vector.shape_cast %292 : vector<1x8x128xf32> to vector<8x128xf32>
    %294 = vector.shape_cast %291 : vector<8x128xf32> to vector<1x8x128xf32>
    tpu.vector_store %arg6[%c0_142, %c0_143, %c0_144], %294 {strides = array<i32>} : memref<1x8x128xf32, #tpu.memory_space<vmem>>, vector<1x8x128xf32>,
    return
  }
  func.func @transform_0(%arg0: i32) -> (i32, i32, i32) {
    %c0_i32 = arith.constant 0 : i32
    %c0_i32_0 = arith.constant 0 : i32
    %c0_i32_1 = arith.constant 0 : i32
    return %arg0, %c0_i32, %c0_i32_0 : i32, i32, i32
  }
  func.func @transform_1(%arg0: i32) -> (i32, i32, i32) {
    %c0_i32 = arith.constant 0 : i32
    %c0_i32_0 = arith.constant 0 : i32
    %c0_i32_1 = arith.constant 0 : i32
    return %arg0, %c0_i32, %c0_i32_0 : i32, i32, i32
  }
  func.func @transform_2(%arg0: i32) -> (i32, i32, i32) {
    %c0_i32 = arith.constant 0 : i32
    %c0_i32_0 = arith.constant 0 : i32
    %c0_i32_1 = arith.constant 0 : i32
    return %arg0, %c0_i32, %c0_i32_0 : i32, i32, i32
  }
  func.func @transform_3(%arg0: i32) -> (i32, i32) {
    %c0_i32 = arith.constant 0 : i32
    %c0_i32_0 = arith.constant 0 : i32
    %c0_i32_1 = arith.constant 0 : i32
    return %c0_i32, %c0_i32_0 : i32, i32
  }
  func.func @transform_4(%arg0: i32) -> (i32, i32) {
    %c0_i32 = arith.constant 0 : i32
    %c0_i32_0 = arith.constant 0 : i32
    %c0_i32_1 = arith.constant 0 : i32
    return %c0_i32, %c0_i32_0 : i32, i32
  }
  func.func @transform_5(%arg0: i32) -> (i32, i32, i32) {
    %c0_i32 = arith.constant 0 : i32
    %c0_i32_0 = arith.constant 0 : i32
    %c0_i32_1 = arith.constant 0 : i32
    return %arg0, %c0_i32, %c0_i32_0 : i32, i32, i32
  }
}

</mosaic_0001>

<bundles_post_ra>
// kernel: tpu_custom_call.1
= control target key start
LH: loop header
LB: loop body
LE: loop exit
PB: predicated region body
PF: predicated region fallthrough
CT: control target
= control target key end

     0   :  { %s5815_s0 = inlined_call_operand.hbm [shape: f32[8,8,128], index: 0, kind: input, shape index: {}]   ;;  %s5816_s1 = inlined_call_operand.hbm [shape: f32[8,64,128], index: 1, kind: input, shape index: {}]   ;;  %s5817_s2 = inlined_call_operand.hbm [shape: f32[8,64,128], index: 2, kind: input, shape index: {}]   ;;  %s5818_s3 = inlined_call_operand.hbm [shape: f32[8,128], index: 3, kind: input, shape index: {}]   ;;  %s5819_s4 = inlined_call_operand.hbm [shape: f32[4080,128], index: 4, kind: input, shape index: {}]   ;;  %s5820_s5 = inlined_call_operand.hbm [shape: f32[8,8,128], index: 5, kind: output, shape index: {}]  }
   0x1   :  { %5829 = sst [smem:[#allocation21_spill]] %s5816_s1 }
   0x2   :  { %5830 = sst [smem:[#allocation22_spill]] %s5818_s3 }
   0x3   :  { %5831 = sst [smem:[#allocation23_spill]] %s5819_s4 }
   0x4   :  { %10 = vsyncpa [#allocation4], 0 }
   0x5   :  { %12 = vsyncpa [#allocation4 + $0x1], 0 }
   0x6   :  { %13 = vsyncpa [#allocation7], 0 }
   0x7   :  { %15 = vsyncpa [#allocation7 + $0x1], 0 }
   0x8   :  { %16 = vsyncpa [#allocation10], 0 }
   0x9   :  { %17 = vsyncpa [#allocation5], 0 }
   0xa   :  { %19 = vsyncpa [#allocation5 + $0x1], 0  ;;  %s4924_s18 = smov 0   ;;  %s4926_s19 = smov 0  }
   0xb   :  { %s4928_s20 = smov 0   ;;  %s4930_s21 = smov 0  }
   0xc LB: > { %5832 = sst [smem:[#allocation17_spill]] %s4884_s20  ;;  %s4945_s22 = sadd.s32 4294967295, %s4888_s21   ;;  %s4888_s21 = sphi %s4930_s21, %s5889_s21   ;;  %s4884_s20 = sphi %s4928_s20, %s5891_s20   ;;  %s4880_s19 = sphi %s4926_s19, %s5893_s19   ;;  %s4876_s18 = sphi %s4924_s18, %s5892_s18  }
   0xd   : > { %s4356_s23 = sadd.s32 4294967294, %s4888_s21   ;;  %s4949_s24 = sadd.s32 1, %s4888_s21  }
   0xe   : > { %5833 = sst [smem:[#allocation18_spill]] %s4949_s24  ;;  %s32_s25 = sadd.s32 1, %s4884_s20 }
   0xf   : > { %s29_s26 = ssub.s32 %s4888_s21, %s4949_s24  ;;  %p39_p0 = scmp.ne.s32.totalorder %s4884_s20, %s4880_s19 }
  0x10   : > { %p30_p1 = scmp.eq.s32.totalorder %s29_s26, 0  ;;  %p40_p2 = scmp.eq.s32.totalorder %s4888_s21, 0 }
  0x11   : > { %p45_p3 = scmp.ne.s32.totalorder %s4880_s19, %s4876_s18  ;;  %p5822_p4 = scmp.eq.s32.totalorder %s4945_s22, 0 }
  0x12   : > { %s4961_s27 = scalar_select %p30_p1, %s4884_s20, %s32_s25  }
  0x13   : > { %p4963_p5 = por %p40_p2, %p39_p0  ;;  %p4969_p6 = por %p5822_p4, %p45_p3 }
  0x14   : > { %5834 = sst [smem:[#allocation19_spill]] %s4961_s27  ;;  %p163_p7 = scmp.eq.s32.totalorder %s4945_s22, 7 }
  0x15   : > { %p169_p8 = scmp.eq.s32.totalorder %s4356_s23, 7  ;;  %p4357_p9 = scmp.ge.s32.totalorder %s4888_s21, 1 }
  0x16   : > { %p176_p10 = scmp.lt.s32.totalorder %s4888_s21, 9  ;;  %p4976_p11 = por %p163_p7, %p39_p0 }
  0x17   : > { %p4980_p12 = por %p169_p8, %p45_p3  ;;  %s5841_s3 = sld [smem:[#allocation22_spill]] }
  0x18   : > { %p4984_p13 = pnand %p4357_p9, %p176_p10  ;;  %s4890_s11 = smov [#allocation9]  }
  0x19   : > { %s5838_s6 = scalar_select %p4980_p12, 1, 0 }
  0x1a   : > { %p4433_p0 = pneg %p4984_p13  ;;  %s190_s12 = sshll.u32 %s4890_s11, 4  ;;  %s191_s12 = int_to_ptr.vmem [resolvable:$true] %s190_s12 }
  0x1b   : > { %5839 = sst [smem:[#allocation20_spill]] %s5838_s6  ;;  %p4456_p3 = scmp.lt.s32.totalorder %s4888_s21, 8 }
  0x1c   : > { %p4996_p2 = pnand %p4433_p0, %p5822_p4  ;;  %s5010_s15 = sand.u32 1, %s4884_s20  }
  0x1d   : > { %s188_s10 = sshll.u32 %s5841_s3, 4  ;;  %p5005_p7 = pnand %p4456_p3, %p4963_p5  ;;  %s189_s10 = int_to_ptr.hbm [resolvable:$true] %s188_s10 }
  0x1e   : > { %4436 = dma.hbm_to_vmem [thread:$0]  (!%p4996_p2), %s189_s10, 128, %s191_s12, [#allocation10]  }
  0x1f   : > { %s234_s16 = sand.u32 1, %s4888_s21   ;;  %s5821_s17 = sshll.u32 %s5010_s15, 6 }
  0x20   : > { %s4415_s23 = sshll.u32 %s4888_s21, 6  ;;  %s5844_s1 = sld [smem:[#allocation21_spill]] }
  0x21   : > { %s238_s9 = scalar_lea.vmem [#allocation6], %s5821_s17  ;;  %s5020_s11 = scalar_lea.sflag [#allocation7], %s234_s16 }
  0x22   : > { %s246_s28 = sshll.u32 %s238_s9, 4  ;;  %p4698_p8 = pneg %p5005_p7  ;;  %s247_s28 = int_to_ptr.vmem [resolvable:$true] %s246_s28 }
  0x26   : > { %s243_s8 = scalar_lea.hbm %s5844_s1, %s4415_s23  ;;  %s4701_s17 = scalar_lea.hbm %s5844_s1, 512 }
  0x27   : > { %s244_s10 = sshll.u32 %s243_s8, 4  ;;  %s245_s10 = int_to_ptr.hbm [resolvable:$true] %s244_s10 }
  0x28   : > { %s4694_s12 = sshra.s32 %s245_s10, 4  ;;  %s4695_s12 = int_to_ptr.hbm [resolvable:$true] %s4694_s12 }
  0x29   : > { %s4696_s3 = scalar_lea.hbm %s4695_s12, 64  ;;  %p4702_p0 = scmp.lt.s32.totalorder %s4695_s12, %s5844_s1 }
  0x2a   : > { %p4697_p5 = scmp.ne.s32.totalorder %s4695_s12, %s4696_s3  ;;  %p4703_p3 = scmp.lt.s32.totalorder %s4701_s17, %s4696_s3 }
  0x2c   : > { %p4699_p9 = pnand %p4698_p8, %p4697_p5  ;;  %p4704_p1 = por %p4703_p3, %p4702_p0 }
  0x2e   : > { %p4700_p10 = pneg %p4699_p9 }
  0x30   : > { %p4705_p4 = pnand %p4704_p1, %p4700_p10 }
  0x32   : > { %4708 = shalt.err (!%p4705_p4)
}
  0x33   : > { %s4891_s16 = smov 128   ;;  %s4892_s27 = smov 8  }
  0x34   : > { %4446 = dma.hbm_to_vmem [thread:$0]  (!%p5005_p7), %s245_s10, 1024, %s247_s28, %s5020_s11, %s4891_s16, %s4891_s16, %s4892_s27  }
  0x35   : > { %s265_s3 = scalar_lea.hbm %s5817_s2, %s4415_s23  ;;  %s5845_s17 = sshll.u32 %s5010_s15, 6 }
  0x36   : > { %s260_s12 = scalar_lea.vmem [#allocation8], %s5845_s17  ;;  %s266_s8 = sshll.u32 %s265_s3, 4  ;;  %s5046_s8 = int_to_ptr.hbm [resolvable:$true] %s266_s8 }
  0x37   : > { %s268_s9 = sshll.u32 %s260_s12, 4  ;;  %s5846_s4 = sld [smem:[#allocation23_spill]]  ;;  %s5044_s9 = int_to_ptr.vmem [resolvable:$true] %s268_s9 }
  0x38   : > { %s4893_s6 = smov [#allocation11]   ;;  %s4361_s10 = sshll.u32 %s5010_s15, 3 }
  0x39   : > { %s201_s28 = sshll.u32 %s4893_s6, 4  ;;  %s4362_s23 = sshll.u32 %s4888_s21, 3  ;;  %s202_s28 = int_to_ptr.vmem [resolvable:$true] %s201_s28 }
  0x3a   : > { %s223_s3 = scalar_lea.hbm %s5815_s0, %s4362_s23  ;;  %s219_s17 = scalar_lea.vmem [#allocation3], %s4361_s10 }
  0x3b   : > { %s227_s12 = sshll.u32 %s219_s17, 4  ;;  %s225_s1 = sshll.u32 %s223_s3, 4  ;;  %s228_s12 = int_to_ptr.vmem [resolvable:$true] %s227_s12  ;;  %s226_s1 = int_to_ptr.hbm [resolvable:$true] %s225_s1 }
  0x3c   : > { %s216_s20 = scalar_lea.sflag [#allocation4], %s5010_s15  ;;  %s4754_s6 = sshra.s32 %s226_s1, 4  ;;  %s4755_s6 = int_to_ptr.hbm [resolvable:$true] %s4754_s6 }
  0x3d   : > { %s199_s24 = sshll.u32 %s5846_s4, 4  ;;  %s4756_s4 = scalar_lea.hbm %s4755_s6, 8  ;;  %s200_s24 = int_to_ptr.hbm [resolvable:$true] %s199_s24 }
  0x3e   : > { %4439 = dma.hbm_to_vmem [thread:$0]  (!%p4996_p2), %s200_s24, 65280, %s202_s28, [#allocation10], %s4891_s16, %s4891_s16, %s4892_s27  }
  0x3f   : > { %p4757_p4 = scmp.ne.s32.totalorder %s4755_s6, %s4756_s4  ;;  %s4761_s28 = scalar_lea.hbm %s5815_s0, 64 }
  0x40   : > { %p4762_p2 = scmp.lt.s32.totalorder %s4755_s6, %s5815_s0  ;;  %p4763_p9 = scmp.lt.s32.totalorder %s4761_s28, %s4756_s4 }
  0x41   : > { %p4759_p1 = pnand %p4757_p4, %p4698_p8 }
  0x42   : > { %p4764_p10 = por %p4763_p9, %p4762_p2 }
  0x43   : > { %p4760_p5 = pneg %p4759_p1 }
  0x45   : > { %p4765_p0 = pnand %p4764_p10, %p4760_p5 }
  0x47   : > { %4768 = shalt.err (!%p4765_p0)
}
  0x48   : > { %4443 = dma.hbm_to_vmem [thread:$0]  (!%p5005_p7), %s226_s1, 128, %s228_s12, %s216_s20  }
  0x49   : > { %s4784_s15 = sshra.s32 %s5046_s8, 4  ;;  %s4791_s4 = scalar_lea.hbm %s5817_s2, 512  ;;  %s4785_s15 = int_to_ptr.hbm [resolvable:$true] %s4784_s15 }
  0x4a   : > { %s4786_s10 = scalar_lea.hbm %s4785_s15, 64  ;;  %p4792_p5 = scmp.lt.s32.totalorder %s4785_s15, %s5817_s2 }
  0x4b   : > { %p4787_p3 = scmp.ne.s32.totalorder %s4785_s15, %s4786_s10  ;;  %p4793_p2 = scmp.lt.s32.totalorder %s4791_s4, %s4786_s10 }
  0x4d   : > { %p4789_p4 = pnand %p4787_p3, %p4698_p8  ;;  %p4794_p9 = por %p4793_p2, %p4792_p5 }
  0x4f   : > { %p4790_p1 = pneg %p4789_p4 }
  0x51   : > { %p4795_p10 = pnand %p4794_p9, %p4790_p1 }
  0x53   : > { %4798 = shalt.err (!%p4795_p10)
}
  0x54   : > { %4449 = dma.hbm_to_vmem [thread:$0]  (!%p5005_p7), %s5046_s8, 1024, %s5044_s9, %s5020_s11, %s4891_s16, %s4891_s16, %s4892_s27  }
  0x55   : > { %280 = sbr.rel (%p4984_p13) target bundleno = 3552 (0xde0), region = 40  ;;  %s5094_s12 = sand.u32 (!%p4984_p13), 1, %s4880_s19  }
  0x56   : > { %s4370_s1 = sshll.u32 (!%p4984_p13), %s5094_s12, 3  ;;  %s283_s20 = scalar_lea.sflag (!%p4984_p13), [#allocation4], %s5094_s12 }
  0x57   : > { %s5098_s24 = scalar_lea.vmem (!%p4984_p13), [#allocation3], %s4370_s1 }
  0x5a   : > { %4859 = dma.done.wait (%p4969_p6), %s283_s20, 128  }
  0x5b   : > { %4861 = vsyncadd (%p4969_p6), %s283_s20, 4294967168  ;;  %s292_s27 = sand.u32 1, %s4945_s22   ;;  %s4371_s7 = sshll.u32 %s5094_s12, 6 }
  0x5c   : > { %s293_s14 = scalar_lea.sflag [#allocation7], %s292_s27  ;;  %s5106_s11 = scalar_lea.vmem [#allocation6], %s4371_s7 }
  0x5d   : > { %4863 = dma.done.wait (%p4969_p6), %s293_s14, 2048  }
  0x5e   : > { %4865 = vsyncadd (%p4969_p6), %s293_s14, 4294965248  ;;  %s5112_s16 = scalar_lea.vmem [#allocation8], %s4371_s7  ;;  %p5847_p13 = scmp.eq.s32.totalorder %s4945_s22, 0 }
  0x60   : > { %4867 = dma.done.wait (%p5847_p13), [#allocation10], 65408   ;;  %p5848_p7 = pmov %p5847_p13 }
  0x61   : > { %s5118_s9 = scalar_lea.vmem [#allocation12], %s4370_s1  ;;  %p5849_p8 = scmp.ne.s32.totalorder %s4945_s22, 0 }
  0x62   : > { %4869 = vsyncadd (%p5848_p7), [#allocation10], 4294901888 }
  0x63   : > { %357 = sbr.rel (%p5849_p8) target bundleno = 106 (0x6a), region = 64 }
  0x68   : > { %v358_v0 = vld [vmem:[#allocation9] sm:$0xff] }
  0x69   : > { %359 = vst [vmem:[#allocation2] sm:$0xff] %v358_v0 }
  0x6a PF: > { %v377_v1 = vld [vmem:[#allocation11 + $0x78] sm:$0xff]  ;;  %v376_v2 = vld [vmem:[#allocation11 + $0x70] sm:$0xff]  ;;  %v501_v3 = vld [vmem:[#allocation11 + $0x100] sm:$0xff]  ;;  %vm5827_vm1 = vcmask 57344   ;;  %vm1096_vm6 = vcmask 64512   ;;  %s4412_s29 = sshll.u32 %s4945_s22, 3 }
  0x6b   : > { %380 = vmatpush.msra.mxu0 %v377_v1  ;;  %504 = vmatpush.msra.mxu3 %v501_v3  ;;  %v500_v4 = vld [vmem:[#allocation11 + $0xf8] sm:$0xff]  ;;  %v375_v5 = vld [vmem:[#allocation11 + $0x68] sm:$0xff]  ;;  %v499_v6 = vld [vmem:[#allocation11 + $0xf0] sm:$0xff]  ;;  %s4219_s28 = scalar_lea.hbm %s5820_s5, %s4412_s29  ;;  %s4221_s25 = sshll.u32 %s5118_s9, 4  ;;  %s4222_s25 = int_to_ptr.vmem [resolvable:$true] %s4221_s25 }
  0x6c   : > { %v374_v7 = vld [vmem:[#allocation11 + $0x60] sm:$0xff]  ;;  %v498_v8 = vld [vmem:[#allocation11 + $0xe8] sm:$0xff]  ;;  %v373_v9 = vld [vmem:[#allocation11 + $0x58] sm:$0xff]  ;;  %s4223_s23 = sshll.u32 %s4219_s28, 4  ;;  %s4209_s15 = scalar_lea.sflag [#allocation5], %s5094_s12  ;;  %s4224_s23 = int_to_ptr.hbm [resolvable:$true] %s4223_s23 }
  0x6d   : > { %381 = vmatpush.msra.mxu0 %v376_v2  ;;  %505 = vmatpush.msra.mxu3 %v500_v4  ;;  %v497_v10 = vld [vmem:[#allocation11 + $0xe0] sm:$0xff]  ;;  %v372_v11 = vld [vmem:[#allocation11 + $0x50] sm:$0xff]  ;;  %v496_v12 = vld [vmem:[#allocation11 + $0xd8] sm:$0xff]  ;;  %s4828_s10 = sshra.s32 %s4224_s23, 4  ;;  %s4834_s4 = scalar_lea.hbm %s5820_s5, 64  ;;  %s4829_s10 = int_to_ptr.hbm [resolvable:$true] %s4828_s10 }
  0x6e   : > { %v371_v13 = vld [vmem:[#allocation11 + $0x48] sm:$0xff]  ;;  %v495_v14 = vld [vmem:[#allocation11 + $0xd0] sm:$0xff]  ;;  %v370_v15 = vld [vmem:[#allocation11 + $0x40] sm:$0xff]  ;;  %s4830_s26 = scalar_lea.hbm %s4829_s10, 8  ;;  %p4835_p4 = scmp.lt.s32.totalorder %s4829_s10, %s5820_s5 }
  0x6f   : > { %382 = vmatpush.msra.mxu0 %v375_v5  ;;  %506 = vmatpush.msra.mxu3 %v499_v6  ;;  %v494_v16 = vld [vmem:[#allocation11 + $0xc8] sm:$0xff]  ;;  %v369_v17 = vld [vmem:[#allocation11 + $0x38] sm:$0xff]  ;;  %v493_v18 = vld [vmem:[#allocation11 + $0xc0] sm:$0xff]  ;;  %p4831_p6 = scmp.ne.s32.totalorder %s4829_s10, %s4830_s26  ;;  %p4836_p1 = scmp.lt.s32.totalorder %s4834_s4, %s4830_s26 }
  0x70   : > { %v368_v19 = vld [vmem:[#allocation11 + $0x30] sm:$0xff]  ;;  %v492_v20 = vld [vmem:[#allocation11 + $0xb8] sm:$0xff]  ;;  %v367_v21 = vld [vmem:[#allocation11 + $0x28] sm:$0xff] }
  0x71   : > { %383 = vmatpush.msra.mxu0 %v374_v7  ;;  %507 = vmatpush.msra.mxu3 %v498_v8  ;;  %v491_v22 = vld [vmem:[#allocation11 + $0xb0] sm:$0xff]  ;;  %v366_v23 = vld [vmem:[#allocation11 + $0x20] sm:$0xff]  ;;  %v490_v24 = vld [vmem:[#allocation11 + $0xa8] sm:$0xff]  ;;  %p4832_p0 = pnand %p4831_p6, %p4976_p11  ;;  %p4837_p5 = por %p4836_p1, %p4835_p4 }
  0x72   : > { %v365_v25 = vld [vmem:[#allocation11 + $0x18] sm:$0xff]  ;;  %v489_v26 = vld [vmem:[#allocation11 + $0xa0] sm:$0xff]  ;;  %v364_v27 = vld [vmem:[#allocation11 + $0x10] sm:$0xff] }
  0x73   : > { %384 = vmatpush.msra.mxu0 %v373_v9  ;;  %508 = vmatpush.msra.mxu3 %v497_v10  ;;  %v488_v28 = vld [vmem:[#allocation11 + $0x98] sm:$0xff]  ;;  %v363_v29 = vld [vmem:[#allocation11 + $0x8] sm:$0xff]  ;;  %v487_v30 = vld [vmem:[#allocation11 + $0x90] sm:$0xff]  ;;  %p4833_p3 = pneg %p4832_p0 }
  0x74   : > { %v362_v31 = vld [vmem:[#allocation11] sm:$0xff]  ;;  %v486_v32 = vld [vmem:[#allocation11 + $0x88] sm:$0xff]  ;;  %v478_v34 = vld [vmem:[%s5106_s11] sm:$0xff] }
  0x75   : > { %385 = vmatpush.msra.mxu0 %v372_v11  ;;  %509 = vmatpush.msra.mxu3 %v496_v12  ;;  %v361_v33 = vld [vmem:[%s5098_s24] sm:$0xff]  ;;  %v479_v35 = vld [vmem:[%s5106_s11 + $0x8] sm:$0xff]  ;;  %v413_v41 = vld [vmem:[#allocation11 + $0xa78] sm:$0xff]  ;;  %p4838_p2 = pnand %p4837_p5, %p4833_p3 }
  0x76   : > { %v480_v36 = vld [vmem:[%s5106_s11 + $0x10] sm:$0xff]  ;;  %v481_v37 = vld [vmem:[%s5106_s11 + $0x18] sm:$0xff]  ;;  %v414_v40 = vld [vmem:[#allocation11 + $0xa80] sm:$0xff] }
  0x77   : > { %386 = vmatpush.msra.mxu0 %v371_v13  ;;  %510 = vmatpush.msra.mxu3 %v495_v14  ;;  %v416_v38 = vld [vmem:[#allocation11 + $0xa90] sm:$0xff]  ;;  %v415_v39 = vld [vmem:[#allocation11 + $0xa88] sm:$0xff]  ;;  %v570_v43 = vld [vmem:[#allocation11 + $0x180] sm:$0xff] }
  0x78   : > { %419 = vmatpush.msra.mxu1 %v416_v38  ;;  %v571_v42 = vld [vmem:[#allocation11 + $0x188] sm:$0xff]  ;;  %v482_v44 = vld [vmem:[%s5106_s11 + $0x20] sm:$0xff]  ;;  %v412_v45 = vld [vmem:[#allocation11 + $0xa70] sm:$0xff] }
  0x79   : > { %387 = vmatpush.msra.mxu0 %v370_v15  ;;  %511 = vmatpush.msra.mxu3 %v494_v16  ;;  %v569_v46 = vld [vmem:[#allocation11 + $0x178] sm:$0xff]  ;;  %v411_v47 = vld [vmem:[#allocation11 + $0xa68] sm:$0xff]  ;;  %v568_v48 = vld [vmem:[#allocation11 + $0x170] sm:$0xff] }
  0x7a   : > { %420 = vmatpush.msra.mxu1 %v415_v39  ;;  %v410_v49 = vld [vmem:[#allocation11 + $0xa60] sm:$0xff]  ;;  %v567_v50 = vld [vmem:[#allocation11 + $0x168] sm:$0xff]  ;;  %v409_v51 = vld [vmem:[#allocation11 + $0xa58] sm:$0xff] }
  0x7b   : > { %388 = vmatpush.msra.mxu0 %v369_v17  ;;  %512 = vmatpush.msra.mxu3 %v493_v18  ;;  %v566_v52 = vld [vmem:[#allocation11 + $0x160] sm:$0xff]  ;;  %v408_v54 = vld [vmem:[#allocation11 + $0xa50] sm:$0xff]  ;;  %v565_v55 = vld [vmem:[#allocation11 + $0x158] sm:$0xff] }
  0x7c   : > { %421 = vmatpush.msra.mxu1 %v414_v40  ;;  %v483_v53 = vld [vmem:[%s5106_s11 + $0x28] sm:$0xff]  ;;  %v407_v56 = vld [vmem:[#allocation11 + $0xa48] sm:$0xff]  ;;  %v564_v57 = vld [vmem:[#allocation11 + $0x150] sm:$0xff] }
  0x7d   : > { %389 = vmatpush.msra.mxu0 %v368_v19  ;;  %513 = vmatpush.msra.mxu3 %v492_v20  ;;  %v406_v58 = vld [vmem:[#allocation11 + $0xa40] sm:$0xff]  ;;  %v563_v59 = vld [vmem:[#allocation11 + $0x148] sm:$0xff]  ;;  %v405_v60 = vld [vmem:[#allocation11 + $0xa38] sm:$0xff] }
  0x7e   : > { %422 = vmatpush.msra.mxu1 %v413_v41  ;;  %v562_v61 = vld [vmem:[#allocation11 + $0x140] sm:$0xff]  ;;  %v484_v62 = vld [vmem:[%s5106_s11 + $0x30] sm:$0xff]  ;;  %v404_v63 = vld [vmem:[#allocation11 + $0xa30] sm:$0xff] }
  0x7f   : > { %390 = vmatpush.msra.mxu0 %v367_v21  ;;  %514 = vmatpush.msra.mxu3 %v491_v22  ;;  %v561_v0 = vld [vmem:[#allocation11 + $0x138] sm:$0xff]  ;;  %v403_v1 = vld [vmem:[#allocation11 + $0xa28] sm:$0xff]  ;;  %v560_v2 = vld [vmem:[#allocation11 + $0x130] sm:$0xff] }
  0x80   : > { %423 = vmatpush.msra.mxu1 %v412_v45  ;;  %v402_v3 = vld [vmem:[#allocation11 + $0xa20] sm:$0xff]  ;;  %v559_v4 = vld [vmem:[#allocation11 + $0x128] sm:$0xff]  ;;  %v401_v5 = vld [vmem:[#allocation11 + $0xa18] sm:$0xff] }
  0x81   : > { %391 = vmatpush.msra.mxu0 %v366_v23  ;;  %515 = vmatpush.msra.mxu3 %v490_v24  ;;  %v485_v6 = vld [vmem:[%s5106_s11 + $0x38] sm:$0xff]  ;;  %v609_v7 = vld [vmem:[#allocation11 + $0x298] sm:$0xff]  ;;  %v607_v9 = vld [vmem:[#allocation11 + $0x288] sm:$0xff] }
  0x82   : > { %424 = vmatpush.msra.mxu1 %v411_v47  ;;  %v608_v8 = vld [vmem:[#allocation11 + $0x290] sm:$0xff]  ;;  %v606_v10 = vld [vmem:[#allocation11 + $0x280] sm:$0xff]  ;;  %v605_v11 = vld [vmem:[#allocation11 + $0x278] sm:$0xff] }
  0x83   : > { %392 = vmatpush.msra.mxu0 %v365_v25  ;;  %516 = vmatpush.msra.mxu3 %v489_v26  ;;  %v604_v12 = vld [vmem:[#allocation11 + $0x270] sm:$0xff]  ;;  %v603_v13 = vld [vmem:[#allocation11 + $0x268] sm:$0xff]  ;;  %v602_v14 = vld [vmem:[#allocation11 + $0x260] sm:$0xff] }
  0x84   : > { %425 = vmatpush.msra.mxu1 %v410_v49  ;;  %v601_v15 = vld [vmem:[#allocation11 + $0x258] sm:$0xff]  ;;  %v558_v16 = vld [vmem:[#allocation11 + $0x120] sm:$0xff]  ;;  %v600_v17 = vld [vmem:[#allocation11 + $0x250] sm:$0xff] }
  0x85   : > { %393 = vmatpush.msra.mxu0 %v364_v27  ;;  %517 = vmatpush.msra.mxu3 %v488_v28  ;;  %v557_v18 = vld [vmem:[#allocation11 + $0x118] sm:$0xff]  ;;  %v599_v19 = vld [vmem:[#allocation11 + $0x248] sm:$0xff]  ;;  %v556_v20 = vld [vmem:[#allocation11 + $0x110] sm:$0xff] }
  0x86   : > { %426 = vmatpush.msra.mxu1 %v409_v51  ;;  %v598_v21 = vld [vmem:[#allocation11 + $0x240] sm:$0xff]  ;;  %v597_v22 = vld [vmem:[#allocation11 + $0x238] sm:$0xff]  ;;  %v596_v23 = vld [vmem:[#allocation11 + $0x230] sm:$0xff] }
  0x87   : > { %394 = vmatpush.msra.mxu0 %v363_v29  ;;  %518 = vmatpush.msra.mxu3 %v487_v30  ;;  %v595_v24 = vld [vmem:[#allocation11 + $0x228] sm:$0xff]  ;;  %v594_v25 = vld [vmem:[#allocation11 + $0x220] sm:$0xff]  ;;  %v450_v51 = vld [vmem:[#allocation11 + $0xaf0] sm:$0xff] }
  0x88   : > { %427 = vmatpush.msra.mxu1 %v408_v54  ;;  %v4496_v26 = vld [vmem:[#allocation11 + $0x80] ss:$0 sm:$0xff]  ;;  %v4497_v30 = vld [vmem:[#allocation11 + $0x108] ss:$0 sm:$0xff] }
  0x89   : > { %395 = vmatpush.msra.mxu0 %v362_v31  ;;  %519 = vmatpush.msra.mxu3 %v486_v32  ;;  %v453_v47 = vld [vmem:[#allocation11 + $0xb08] sm:$0xff]  ;;  %v452_v49 = vld [vmem:[#allocation11 + $0xb00] sm:$0xff] }
  0x8a   : > { %396 = vmatmul.f32.vlgmr.msra.gmra.mxu0 %v361_v33  ;;  %520 = vmatmul.f32.vlgmr.msra.gmra.mxu3 %v478_v34  ;;  %v449_v54 = vld [vmem:[#allocation11 + $0xae8] sm:$0xff] }
  0x8b   : > { %574 = vmatpush.msrb.mxu0 %v571_v42  ;;  %428 = vmatpush.msra.mxu1 %v407_v56  ;;  %v448_v56 = vld [vmem:[#allocation11 + $0xae0] sm:$0xff] }
  0x8d   : > { %575 = vmatpush.msrb.mxu0 %v570_v43  ;;  %429 = vmatpush.msra.mxu1 %v406_v58  ;;  %v455_v43 = vld [vmem:[#allocation11 + $0xb18] sm:$0xff]  ;;  %v446_v58 = vld [vmem:[#allocation11 + $0xad0] sm:$0xff] }
  0x8e   : > { %458 = vmatpush.msra.mxu2 %v455_v43 }
  0x8f   : > { %576 = vmatpush.msrb.mxu0 %v569_v46  ;;  %430 = vmatpush.msra.mxu1 %v405_v60 }
  0x91   : > { %577 = vmatpush.msrb.mxu0 %v568_v48  ;;  %431 = vmatpush.msra.mxu1 %v404_v63  ;;  %v444_v63 = vld [vmem:[#allocation11 + $0xac0] sm:$0xff] }
  0x92   : > { %523 = vmatmul.f32.gmra.mxu3 %v479_v35 }
  0x93   : > { %578 = vmatpush.msrb.mxu0 %v567_v50  ;;  %432 = vmatpush.msra.mxu1 %v403_v1  ;;  %v451_v50 = vld [vmem:[#allocation11 + $0xaf8] sm:$0xff]  ;;  %v442_v1 = vld [vmem:[#allocation11 + $0xab0] sm:$0xff] }
  0x95   : > { %579 = vmatpush.msrb.mxu0 %v566_v52  ;;  %433 = vmatpush.msra.mxu1 %v402_v3 }
  0x97   : > { %580 = vmatpush.msrb.mxu0 %v565_v55  ;;  %434 = vmatpush.msra.mxu1 %v401_v5 }
  0x99   : > { %581 = vmatpush.msrb.mxu0 %v564_v57  ;;  %612 = vmatpush.msrb.mxu1 %v609_v7  ;;  %v447_v57 = vld [vmem:[#allocation11 + $0xad8] sm:$0xff]  ;;  %v668_v7 = vld [vmem:[#allocation11 + $0x3a8] sm:$0xff] }
  0x9a   : > { %526 = vmatmul.f32.gmra.mxu3 %v480_v36 }
  0x9b   : > { %582 = vmatpush.msrb.mxu0 %v563_v59  ;;  %613 = vmatpush.msrb.mxu1 %v608_v8  ;;  %v667_v8 = vld [vmem:[#allocation11 + $0x3a0] sm:$0xff] }
  0x9d   : > { %583 = vmatpush.msrb.mxu0 %v562_v61  ;;  %614 = vmatpush.msrb.mxu1 %v607_v9  ;;  %v445_v61 = vld [vmem:[#allocation11 + $0xac8] sm:$0xff]  ;;  %v666_v9 = vld [vmem:[#allocation11 + $0x398] sm:$0xff] }
  0x9f   : > { %584 = vmatpush.msrb.mxu0 %v561_v0  ;;  %615 = vmatpush.msrb.mxu1 %v606_v10  ;;  %v443_v0 = vld [vmem:[#allocation11 + $0xab8] sm:$0xff]  ;;  %v665_v10 = vld [vmem:[#allocation11 + $0x390] sm:$0xff] }
  0xa1   : > { %585 = vmatpush.msrb.mxu0 %v560_v2  ;;  %616 = vmatpush.msrb.mxu1 %v605_v11  ;;  %v664_v11 = vld [vmem:[#allocation11 + $0x388] sm:$0xff] }
  0xa2   : > { %529 = vmatmul.f32.gmra.mxu3 %v481_v37 }
  0xa3   : > { %586 = vmatpush.msrb.mxu0 %v559_v4  ;;  %617 = vmatpush.msrb.mxu1 %v604_v12  ;;  %v441_v4 = vld [vmem:[#allocation11 + $0xaa8] sm:$0xff]  ;;  %v663_v12 = vld [vmem:[#allocation11 + $0x380] sm:$0xff] }
  0xa5   : > { %618 = vmatpush.msrb.mxu1 %v603_v13  ;;  %587 = vmatpush.msrb.mxu0 %v558_v16  ;;  %v662_v13 = vld [vmem:[#allocation11 + $0x378] sm:$0xff]  ;;  %v659_v16 = vld [vmem:[#allocation11 + $0x360] sm:$0xff] }
  0xa7   : > { %619 = vmatpush.msrb.mxu1 %v602_v14  ;;  %588 = vmatpush.msrb.mxu0 %v557_v18  ;;  %v661_v14 = vld [vmem:[#allocation11 + $0x370] sm:$0xff] }
  0xa8   : > { %v657_v18 = vld [vmem:[#allocation11 + $0x350] sm:$0xff] }
  0xa9   : > { %620 = vmatpush.msrb.mxu1 %v601_v15  ;;  %589 = vmatpush.msrb.mxu0 %v556_v20  ;;  %v660_v15 = vld [vmem:[#allocation11 + $0x368] sm:$0xff]  ;;  %v655_v20 = vld [vmem:[#allocation11 + $0x340] sm:$0xff] }
  0xaa   : > { %532 = vmatmul.f32.gmra.mxu3 %v482_v44  ;;  %v454_v44 = vld [vmem:[#allocation11 + $0xb10] sm:$0xff] }
  0xab   : > { %621 = vmatpush.msrb.mxu1 %v600_v17  ;;  %459 = vmatpush.msra.mxu2 %v454_v44  ;;  %v658_v17 = vld [vmem:[#allocation11 + $0x358] sm:$0xff] }
  0xad   : > { %622 = vmatpush.msrb.mxu1 %v599_v19  ;;  %460 = vmatpush.msra.mxu2 %v453_v47  ;;  %v656_v19 = vld [vmem:[#allocation11 + $0x348] sm:$0xff] }
  0xaf   : > { %623 = vmatpush.msrb.mxu1 %v598_v21  ;;  %461 = vmatpush.msra.mxu2 %v452_v49  ;;  %v654_v21 = vld [vmem:[#allocation11 + $0x338] sm:$0xff] }
  0xb1   : > { %624 = vmatpush.msrb.mxu1 %v597_v22  ;;  %462 = vmatpush.msra.mxu2 %v451_v50  ;;  %v653_v22 = vld [vmem:[#allocation11 + $0x330] sm:$0xff] }
  0xb2   : > { %535 = vmatmul.f32.gmra.mxu3 %v483_v53 }
  0xb3   : > { %625 = vmatpush.msrb.mxu1 %v596_v23  ;;  %463 = vmatpush.msra.mxu2 %v450_v51  ;;  %v4498_v23 = vld [vmem:[#allocation11 + $0xa98] ss:$0 sm:$0xff] }
  0xb5   : > { %626 = vmatpush.msrb.mxu1 %v595_v24  ;;  %464 = vmatpush.msra.mxu2 %v449_v54 }
  0xb7   : > { %627 = vmatpush.msrb.mxu1 %v594_v25  ;;  %465 = vmatpush.msra.mxu2 %v448_v56 }
  0xb9   : > { %466 = vmatpush.msra.mxu2 %v447_v57 }
  0xba   : > { %538 = vmatmul.f32.gmra.mxu3 %v484_v62 }
  0xbb   : > { %467 = vmatpush.msra.mxu2 %v446_v58 }
  0xbd   : > { %468 = vmatpush.msra.mxu2 %v445_v61 }
  0xbf   : > { %469 = vmatpush.msra.mxu2 %v444_v63 }
  0xc1   : > { %470 = vmatpush.msra.mxu2 %v443_v0 }
  0xc2   : > { %541 = vmatmul.f32.gmra.mxu3 %v485_v6  ;;  %v440_v6 = vld [vmem:[#allocation11 + $0xaa0] sm:$0xff] }
  0xc3   : > { %471 = vmatpush.msra.mxu2 %v442_v1 }
  0xc5   : > { %472 = vmatpush.msra.mxu2 %v441_v4 }
  0xc7   : > { %473 = vmatpush.msra.mxu2 %v440_v6 }
  0xc9   : > { %671 = vmatpush.msrb.mxu2 %v668_v7  ;;  %v553_v7 = vlaneseq }
  0xcb   : > { %672 = vmatpush.msrb.mxu2 %v667_v8  ;;  %v5183_v8 = vand.u32 127, %v553_v7 }
  0xcd   : > { %673 = vmatpush.msrb.mxu2 %v666_v9  ;;  %vm555_vm0 = vcmp.lt.s32.totalorder %v5183_v8, 5 }
  0xcf   : > { %674 = vmatpush.msrb.mxu2 %v665_v10 }
  0xd1   : > { %675 = vmatpush.msrb.mxu2 %v664_v11 }
  0xd3   : > { %676 = vmatpush.msrb.mxu2 %v663_v12  ;;  %v5188_v12 = vld [vmem:[#allocation11 + $0x3b0] ss:$0 sm:$0xff] }
  0xd5   : > { %677 = vmatpush.msrb.mxu2 %v662_v13 }
  0xd7   : > { %678 = vmatpush.msrb.mxu2 %v661_v14 }
  0xd9   : > { %679 = vmatpush.msrb.mxu2 %v660_v15 }
  0xdb   : > { %680 = vmatpush.msrb.mxu2 %v659_v16 }
  0xdd   : > { %681 = vmatpush.msrb.mxu2 %v658_v17 }
  0xdf   : > { %682 = vmatpush.msrb.mxu2 %v657_v18 }
  0xe1   : > { %683 = vmatpush.msrb.mxu2 %v656_v19 }
  0xe3   : > { %684 = vmatpush.msrb.mxu2 %v655_v20 }
  0xe5   : > { %685 = vmatpush.msrb.mxu2 %v654_v21 }
  0xe7   : > { %686 = vmatpush.msrb.mxu2 %v653_v22 }
 0x107   : > { %v397_v27 = vpop.f32.mrf.mxu0 }
 0x108   : > { %v398_v28 = vadd.f32 %v4496_v26, %v397_v27  ;;  %v4500_v27 = vld [vmem:[#allocation11 + $0x2a0] ss:$0 sm:$0xff] }
 0x10a   : > { %v5131_v29 = vmax.f32 %v398_v28, 0.0  ;;  %v4499_v28 = vld [vmem:[#allocation11 + $0x190] ss:$0 sm:$0xff] }
 0x10c   : > { %435 = vmatmul.f32.vlgmr.msra.gmra.mxu1 %v5131_v29  ;;  %590 = vmatmul.f32.vlgmr.msrb.gmra.mxu0 %v5131_v29 }
 0x10d   : > { %v521_v31 = vpop.f32.mrf.mxu3 }
 0x10e   : > { %v5135_v32 = vadd.f32 %v4497_v30, %v521_v31 }
 0x110   : > { %v545_v33 = vmax.f32 %v5135_v32, 0.0 }
 0x114   : > { %628 = vmatmul.f32.vlgmr.msrb.gmra.mxu1 %v545_v33 }
 0x115   : > { %v524_v34 = vpop.f32.mrf.mxu3 }
 0x116   : > { %v5140_v35 = vadd.f32 %v4497_v30, %v524_v34 }
 0x118   : > { %v546_v36 = vmax.f32 %v5140_v35, 0.0 }
 0x11c   : > { %631 = vmatmul.f32.gmra.mxu1 %v546_v36 }
 0x11d   : > { %v527_v37 = vpop.f32.mrf.mxu3 }
 0x11e   : > { %v5145_v38 = vadd.f32 %v4497_v30, %v527_v37 }
 0x120   : > { %v547_v39 = vmax.f32 %v5145_v38, 0.0 }
 0x124   : > { %634 = vmatmul.f32.gmra.mxu1 %v547_v39 }
 0x125   : > { %v530_v40 = vpop.f32.mrf.mxu3 }
 0x126   : > { %v5150_v41 = vadd.f32 %v4497_v30, %v530_v40 }
 0x128   : > { %v548_v42 = vmax.f32 %v5150_v41, 0.0 }
 0x12c   : > { %637 = vmatmul.f32.gmra.mxu1 %v548_v42 }
 0x12d   : > { %v533_v45 = vpop.f32.mrf.mxu3 }
 0x12e   : > { %v5155_v46 = vadd.f32 %v4497_v30, %v533_v45 }
 0x130   : > { %v549_v48 = vmax.f32 %v5155_v46, 0.0 }
 0x134   : > { %640 = vmatmul.f32.gmra.mxu1 %v549_v48 }
 0x135   : > { %v536_v52 = vpop.f32.mrf.mxu3 }
 0x136   : > { %v5160_v53 = vadd.f32 %v4497_v30, %v536_v52 }
 0x138   : > { %v550_v55 = vmax.f32 %v5160_v53, 0.0 }
 0x13c   : > { %643 = vmatmul.f32.gmra.mxu1 %v550_v55 }
 0x13d   : > { %v539_v59 = vpop.f32.mrf.mxu3 }
 0x13e   : > { %v5165_v60 = vadd.f32 %v4497_v30, %v539_v59 }
 0x140   : > { %v551_v62 = vmax.f32 %v5165_v60, 0.0 }
 0x144   : > { %646 = vmatmul.f32.gmra.mxu1 %v551_v62 }
 0x145   : > { %v542_v2 = vpop.f32.mrf.mxu3 }
 0x146   : > { %v5170_v3 = vadd.f32 %v4497_v30, %v542_v2 }
 0x148   : > { %v552_v5 = vmax.f32 %v5170_v3, 0.0 }
 0x14c   : > { %649 = vmatmul.f32.gmra.mxu1 %v552_v5 }
 0x189   : > { %v436_v24 = vpop.f32.mrf.mxu1  ;;  %v591_v31 = vpop.f32.mrf.mxu0 }
 0x18a   : > { %v437_v25 = vadd.f32 %v4498_v23, %v436_v24  ;;  %v592_v37 = vadd.f32 %v4499_v28, %v591_v31 }
 0x18c   : > { %v439_v26 = vmax.f32 %v437_v25, 0.0  ;;  %v713_v44 = vrot.slane %v592_v37, 1  ;;  %v714_v49 = vrot.slane %v592_v37, 2  ;;  %v715_v52 = vrot.slane %v592_v37, 3 }
 0x18d   : > { %v716_v57 = vrot.slane %v592_v37, 4  ;;  %v717_v61 = vrot.slane %v592_v37, 5  ;;  %v718_v1 = vrot.slane %v592_v37, 6  ;;  %v719_v6 = vrot.slane %v592_v37, 7 }
 0x18e   : > { %474 = vmatmul.f32.vlgmr.msra.gmra.mxu2 %v439_v26 }
 0x191   : > { %v629_v30 = vpop.f32.mrf.mxu1 }
 0x192   : > { %v630_v34 = vadd.f32 %v4500_v27, %v629_v30 }
 0x194   : > { %742 = vmatpush.xpose.msra.mxu1 %v630_v34 }
 0x196   : > { %687 = vmatmul.f32.vlgmr.msrb.gmra.mxu2 %v5135_v32 }
 0x197   : > { %743 = vmatmul.f32.vlgmr.msra.gmra.mxu1 %v592_v37 }
 0x199   : > { %v632_v40 = vpop.f32.mrf.mxu1 }
 0x19a   : > { %v633_v43 = vadd.f32 %v4500_v27, %v632_v40 }
 0x19c   : > { %762 = vmatpush.xpose.msrb.mxu1 %v633_v43 }
 0x19e   : > { %690 = vmatmul.f32.gmra.mxu2 %v5140_v35 }
 0x19f   : > { %763 = vmatmul.f32.vlgmr.msrb.gmra.mxu1 %v713_v44 }
 0x1a1   : > { %v635_v45 = vpop.f32.mrf.mxu1 }
 0x1a2   : > { %v636_v47 = vadd.f32 %v4500_v27, %v635_v45 }
 0x1a4   : > { %782 = vmatpush.xpose.msra.mxu0 %v636_v47 }
 0x1a6   : > { %693 = vmatmul.f32.gmra.mxu2 %v5145_v38 }
 0x1a7   : > { %783 = vmatmul.f32.vlgmr.msra.gmra.mxu0 %v714_v49 }
 0x1a9   : > { %v638_v50 = vpop.f32.mrf.mxu1 }
 0x1aa   : > { %v639_v51 = vadd.f32 %v4500_v27, %v638_v50 }
 0x1ac   : > { %802 = vmatpush.xpose.msrb.mxu0 %v639_v51 }
 0x1ae   : > { %696 = vmatmul.f32.gmra.mxu2 %v5150_v41 }
 0x1af   : > { %803 = vmatmul.f32.vlgmr.msrb.gmra.mxu0 %v715_v52 }
 0x1b1   : > { %v641_v54 = vpop.f32.mrf.mxu1 }
 0x1b2   : > { %v642_v56 = vadd.f32 %v4500_v27, %v641_v54 }
 0x1b4   : > { %822 = vmatpush.xpose.msrb.mxu3 %v642_v56 }
 0x1b6   : > { %699 = vmatmul.f32.gmra.mxu2 %v5155_v46 }
 0x1b7   : > { %823 = vmatmul.f32.vlgmr.msrb.gmra.mxu3 %v716_v57 }
 0x1b9   : > { %v644_v58 = vpop.f32.mrf.mxu1 }
 0x1ba   : > { %v645_v59 = vadd.f32 %v4500_v27, %v644_v58 }
 0x1bc   : > { %842 = vmatpush.xpose.msra.mxu0 %v645_v59 }
 0x1be   : > { %702 = vmatmul.f32.gmra.mxu2 %v5160_v53 }
 0x1bf   : > { %843 = vmatmul.f32.vlgmr.msra.gmra.mxu0 %v717_v61 }
 0x1c1   : > { %v647_v63 = vpop.f32.mrf.mxu1 }
 0x1c2   : > { %v648_v0 = vadd.f32 %v4500_v27, %v647_v63 }
 0x1c4   : > { %862 = vmatpush.xpose.msra.mxu3 %v648_v0 }
 0x1c6   : > { %705 = vmatmul.f32.gmra.mxu2 %v5165_v60 }
 0x1c7   : > { %863 = vmatmul.f32.vlgmr.msra.gmra.mxu3 %v718_v1 }
 0x1c9   : > { %v650_v2 = vpop.f32.mrf.mxu1 }
 0x1ca   : > { %v651_v4 = vadd.f32 %v4500_v27, %v650_v2 }
 0x1cc   : > { %882 = vmatpush.xpose.msrb.mxu0 %v651_v4 }
 0x1ce   : > { %708 = vmatmul.f32.gmra.mxu2 %v5170_v3 }
 0x1cf   : > { %883 = vmatmul.f32.vlgmr.msrb.gmra.mxu0 %v719_v6 }
 0x211   : > { %v5185_v9 = vpop.f32.mrf.mxu2 }
 0x214   : > { %v744_v10 = vpop.f32.mrf.mxu1 }
 0x215   : > { %v887_v11 = vmul.f32 0.17677669, %v744_v10 }
 0x217   : > { %v895_v13 = vsel %vm555_vm0, %v887_v11, -1e+30 }
 0x218   : > { %v904_v14 = vsel %vm5827_vm1, %v895_v13, -inf }
 0x219   : > { %905 = vmax.xlane.f32.xlu0 %v904_v14  ;;  %v688_v15 = vpop.f32.mrf.mxu2 }
 0x21a   : > { %v689_v16 = vadd.f32 %v5188_v12, %v688_v15 }
 0x21c   : > { %1115 = vmatpush.msrb.mxu3 %v689_v16  ;;  %v764_v50 = vpop.f32.mrf.mxu1 }
 0x21d   : > { %v888_v57 = vmul.f32 0.17677669, %v764_v50 }
 0x21f   : > { %v896_v61 = vsel %vm555_vm0, %v888_v57, -1e+30 }
 0x220   : > { %v907_v63 = vsel %vm5827_vm1, %v896_v61, -inf }
 0x221   : > { %v691_v17 = vpop.f32.mrf.mxu2 }
 0x222   : > { %v692_v18 = vadd.f32 %v5188_v12, %v691_v17 }
 0x224   : > { %v784_v19 = vpop.f32.mrf.mxu0  ;;  %1138 = vmatpush.msra.mxu0 %v692_v18 }
 0x225   : > { %v889_v20 = vmul.f32 0.17677669, %v784_v19 }
 0x227   : > { %v897_v21 = vsel %vm555_vm0, %v889_v20, -1e+30 }
 0x228   : > { %v910_v22 = vsel %vm5827_vm1, %v897_v21, -inf }
 0x229   : > { %911 = vmax.xlane.f32.xlu0 %v910_v22  ;;  %v694_v23 = vpop.f32.mrf.mxu2 }
 0x22a   : > { %v695_v24 = vadd.f32 %v5188_v12, %v694_v23 }
 0x22c   : > { %1161 = vmatpush.msra.mxu3 %v695_v24  ;;  %v804_v27 = vpop.f32.mrf.mxu0 }
 0x22d   : > { %v890_v7 = vmul.f32 0.17677669, %v804_v27 }
 0x22f   : > { %v898_v14 = vsel %vm555_vm0, %v890_v7, -1e+30 }
 0x230   : > { %v913_v16 = vsel %vm5827_vm1, %v898_v14, -inf }
 0x231   : > { %v697_v25 = vpop.f32.mrf.mxu2 }
 0x232   : > { %v698_v26 = vadd.f32 %v5188_v12, %v697_v25 }
 0x234   : > { %1184 = vmatpush.msrb.mxu0 %v698_v26 }
 0x239   : > { %v700_v28 = vpop.f32.mrf.mxu2 }
 0x23a   : > { %v701_v30 = vadd.f32 %v5188_v12, %v700_v28  ;;  %v824_v44 = vpop.f32.mrf.mxu3 }
 0x23b   : > { %v891_v17 = vmul.f32 0.17677669, %v824_v44 }
 0x23c   : > { %v844_v31 = vpop.f32.mrf.mxu0  ;;  %1207 = vmatpush.msra.mxu1 %v701_v30 }
 0x23d   : > { %v892_v34 = vmul.f32 0.17677669, %v844_v31 }
 0x23f   : > { %v900_v37 = vsel %vm555_vm0, %v892_v34, -1e+30 }
 0x240   : > { %v919_v40 = vsel %vm5827_vm1, %v900_v37, -inf }
 0x241   : > { %920 = vmax.xlane.f32.xlu0 %v919_v40  ;;  %v703_v43 = vpop.f32.mrf.mxu2 }
 0x242   : > { %v704_v45 = vadd.f32 %v5188_v12, %v703_v43 }
 0x244   : > { %1230 = vmatpush.msra.mxu2 %v704_v45 }
 0x24a   : > { %v864_v47 = vpop.f32.mrf.mxu3 }
 0x24b   : > { %v893_v49 = vmul.f32 0.17677669, %v864_v47 }
 0x24c   : > { %v884_v51 = vpop.f32.mrf.mxu0 }
 0x24d   : > { %v894_v52 = vmul.f32 0.17677669, %v884_v51  ;;  %v901_v54 = vsel %vm555_vm0, %v893_v49, -1e+30 }
 0x24e   : > { %v922_v56 = vsel %vm5827_vm1, %v901_v54, -inf }
 0x24f   : > { %923 = vmax.xlane.f32.xlu1 %v922_v56  ;;  %v5210_v58 = vsel %vm555_vm0, %v894_v52, -1e+30 }
 0x250   : > { %v925_v59 = vsel %vm5827_vm1, %v5210_v58, -inf }
 0x251   : > { %926 = vmax.xlane.f32.xlu0 %v925_v59 }
 0x257   : > { %908 = vmax.xlane.f32.xlu1 %v907_v63 }
 0x28c   : > { %v906_v0 = vpop.xlane.xlu0 %905 }
 0x28d   : > { %v928_v1 = vsub.f32 %v895_v13, %v906_v0  ;;  %v899_v13 = vsel %vm555_vm0, %v891_v17, -1e+30 }
 0x28e   : > { %v916_v19 = vsel %vm5827_vm1, %v899_v13, -inf }
 0x28f   : > { %v936_v2 = vmul.f32 1.442695, %v928_v1 }
 0x291   : > { %4526 = vpow2.f32 %v936_v2  ;;  %v706_v2 = vpop.f32.mrf.mxu2 }
 0x292   : > { %v707_v17 = vadd.f32 %v5188_v12, %v706_v2  ;;  %v1364_v2 = vld [vmem:[#allocation11 + $0x1d0] sm:$0xff] }
 0x297   : > { %v5217_v4 = vpop.eup %4526 }
 0x298   : > { %v952_v6 = vsel %vm5827_vm1, %v5217_v4, 0.0 }
 0x299   : > { %953 = vadd.xlane.f32.xlu2 %v952_v6 }
 0x29c   : > { %v912_v10 = vpop.xlane.xlu0 %911 }
 0x29d   : > { %v930_v11 = vsub.f32 %v897_v21, %v912_v10 }
 0x29f   : > { %v940_v15 = vmul.f32 1.442695, %v930_v11 }
 0x2a1   : > { %4528 = vpow2.f32 %v940_v15  ;;  %914 = vmax.xlane.f32.xlu2 %v913_v16 }
 0x2a7   : > { %v5226_v18 = vpop.eup %4528 }
 0x2a8   : > { %v958_v20 = vsel %vm5827_vm1, %v5226_v18, 0.0 }
 0x2a9   : > { %917 = vmax.xlane.f32.xlu2 %v916_v19  ;;  %959 = vadd.xlane.f32.xlu1 %v958_v20 }
 0x2b4   : > { %v921_v21 = vpop.xlane.xlu0 %920 }
 0x2b5   : > { %v933_v24 = vsub.f32 %v900_v37, %v921_v21 }
 0x2b7   : > { %v946_v26 = vmul.f32 1.442695, %v933_v24 }
 0x2c2   : > { %v924_v22 = vpop.xlane.xlu1 %923 }
 0x2c3   : > { %v934_v23 = vsub.f32 %v901_v54, %v924_v22 }
 0x2c4   : > { %v927_v49 = vpop.xlane.xlu0 %926 }
 0x2c5   : > { %v948_v25 = vmul.f32 1.442695, %v934_v23  ;;  %v935_v54 = vsub.f32 %v5210_v58, %v927_v49 }
 0x2c7   : > { %4530 = vpow2.f32 %v948_v25  ;;  %v950_v0 = vmul.f32 1.442695, %v935_v54  ;;  %v1409_v54 = vld [vmem:[#allocation11 + $0x318] sm:$0xff] }
 0x2c8   : > { %4532 = vpow2.f32 %v946_v26  ;;  %v1372_v26 = vld [vmem:[#allocation11 + $0x210] sm:$0xff] }
 0x2c9   : > { %1375 = vmatpush.msrb.mxu2 %v1372_v26  ;;  %v1397_v26 = vld [vmem:[#allocation11 + $0x2b8] sm:$0xff] }
 0x2ca   : > { %v909_v27 = vpop.xlane.xlu1 %908 }
 0x2cb   : > { %v929_v28 = vsub.f32 %v896_v61, %v909_v27 }
 0x2cd   : > { %v5231_v30 = vpop.eup %4530  ;;  %v938_v31 = vmul.f32 1.442695, %v929_v28 }
 0x2ce   : > { %v970_v34 = vsel %vm5827_vm1, %v5231_v30, 0.0  ;;  %v5235_v40 = vpop.eup %4532 }
 0x2cf   : > { %4534 = vpow2.f32 %v938_v31  ;;  %971 = vadd.xlane.f32.xlu1 %v970_v34  ;;  %v967_v37 = vsel %vm5827_vm1, %v5235_v40, 0.0  ;;  %v1371_v34 = vld [vmem:[#allocation11 + $0x208] sm:$0xff] }
 0x2d0   : > { %1376 = vmatpush.msrb.mxu2 %v1371_v34 }
 0x2d5   : > { %v5237_v43 = vpop.eup %4534 }
 0x2d6   : > { %v955_v44 = vsel %vm5827_vm1, %v5237_v43, 0.0 }
 0x2d7   : > { %968 = vadd.xlane.f32.xlu1 %v967_v37  ;;  %956 = vadd.xlane.f32.xlu2 %v955_v44 }
 0x30c   : > { %v954_v45 = vpop.xlane.xlu2 %953 }
 0x30d   : > { %4536 = vrcp.f32 %v954_v45  ;;  %v987_v57 = vand.u32 2147483648, %v954_v45  ;;  %v985_v63 = vand.u32 2147483647, %v954_v45  ;;  %vm981_vm3 = vweird.f32 %v954_v45 }
 0x30f   : > { %v988_v6 = vor.u32 1.1754944e-38, %v987_v57  ;;  %vm986_vm5 = vcmp.eq.f32.partialorder %v985_v63, 8.507059e+37  ;;  %v1408_v57 = vld [vmem:[#allocation11 + $0x310] sm:$0xff]  ;;  %v1366_v63 = vld [vmem:[#allocation11 + $0x1e0] sm:$0xff] }
 0x313   : > { %v4537_v47 = vpop.eup %4536 }
 0x314   : > { %v977_v50 = vmul.f32 %v4537_v47, %v954_v45  ;;  %v915_v51 = vpop.xlane.xlu2 %914  ;;  %vm982_vm2 = vweird.f32 %v4537_v47 }
 0x315   : > { %v931_v52 = vsub.f32 %v898_v14, %v915_v51  ;;  %vm983_vm4 = vmor %vm981_vm3, %vm982_vm2  ;;  %v1410_v51 = vld [vmem:[#allocation11 + $0x320] sm:$0xff] }
 0x316   : > { %v978_v56 = vsub.f32 1.0, %v977_v50 }
 0x317   : > { %v942_v59 = vmul.f32 1.442695, %v931_v52  ;;  %v1369_v52 = vld [vmem:[#allocation11 + $0x1f8] sm:$0xff] }
 0x318   : > { %v979_v61 = vmul.f32 %v4537_v47, %v978_v56  ;;  %v1368_v56 = vld [vmem:[#allocation11 + $0x1f0] sm:$0xff] }
 0x319   : > { %4538 = vpow2.f32 %v942_v59  ;;  %v1367_v59 = vld [vmem:[#allocation11 + $0x1e8] sm:$0xff] }
 0x31a   : > { %v980_v1 = vadd.f32 %v4537_v47, %v979_v61  ;;  %v1407_v61 = vld [vmem:[#allocation11 + $0x308] sm:$0xff] }
 0x31c   : > { %v984_v7 = vsel %vm983_vm4, %v4537_v47, %v980_v1  ;;  %v918_v10 = vpop.xlane.xlu2 %917  ;;  %v960_v11 = vpop.xlane.xlu1 %959  ;;  %v1370_v47 = vld [vmem:[#allocation11 + $0x200] sm:$0xff]  ;;  %v1365_v1 = vld [vmem:[#allocation11 + $0x1d8] sm:$0xff] }
 0x31d   : > { %v989_v14 = vsel %vm986_vm5, %v988_v6, %v984_v7  ;;  %v932_v15 = vsub.f32 %v899_v13, %v918_v10  ;;  %4540 = vrcp.f32 %v960_v11  ;;  %v1015_v28 = vand.u32 2147483647, %v960_v11  ;;  %1377 = vmatpush.msrb.mxu2 %v1370_v47  ;;  %v1404_v6 = vld [vmem:[#allocation11 + $0x2f0] sm:$0xff]  ;;  %v1363_v7 = vld [vmem:[#allocation11 + $0x1c8] sm:$0xff] }
 0x31e   : > { %4542 = vpow2.f32 %v950_v0  ;;  %v990_v58 = vmul.f32 %v5217_v4, %v989_v14  ;;  %v1017_v4 = vand.u32 2147483648, %v960_v11  ;;  %vm1011_vm8 = vweird.f32 %v960_v11  ;;  %v1406_v0 = vld [vmem:[#allocation11 + $0x300] sm:$0xff]  ;;  %v1403_v10 = vld [vmem:[#allocation11 + $0x2e8] sm:$0xff]  ;;  %v1361_v14 = vld [vmem:[#allocation11 + $0x1b8] sm:$0xff] }
 0x31f   : > { %v5245_v16 = vpop.eup %4538  ;;  %v944_v19 = vmul.f32 1.442695, %v932_v15  ;;  %vm1016_vm10 = vcmp.eq.f32.partialorder %v1015_v28, 8.507059e+37  ;;  %1378 = vmatpush.msrb.mxu2 %v1369_v52  ;;  %v1402_v15 = vld [vmem:[#allocation11 + $0x2e0] sm:$0xff] }
 0x320   : > { %4377 = vmatmul.msk.f32.vlgmr.msrb.gmra.mxu3 %vm1096_vm6, %v990_v58  ;;  %v961_v20 = vsel %vm5827_vm1, %v5245_v16, 0.0  ;;  %v1018_v44 = vor.u32 1.1754944e-38, %v1017_v4  ;;  %v1360_v58 = vld [vmem:[#allocation11 + $0x1b0] sm:$0xff]  ;;  %v1357_v4 = vld [vmem:[#allocation11 + $0x198] sm:$0xff] }
 0x321   : > { %4544 = vpow2.f32 %v944_v19  ;;  %1253 = vmatpush.msrb.mxu3 %v707_v17  ;;  %962 = vadd.xlane.f32.xlu0 %v961_v20  ;;  %v1401_v17 = vld [vmem:[#allocation11 + $0x2d8] sm:$0xff]  ;;  %v1359_v19 = vld [vmem:[#allocation11 + $0x1a8] sm:$0xff] }
 0x322   : > { %1379 = vmatpush.msrb.mxu2 %v1368_v56 }
 0x323   : > { %v4541_v21 = vpop.eup %4540 }
 0x324   : > { %v5251_v13 = vpop.eup %4542  ;;  %v1007_v22 = vmul.f32 %v4541_v21, %v960_v11  ;;  %vm1012_vm7 = vweird.f32 %v4541_v21  ;;  %1380 = vmatpush.msrb.mxu2 %v1367_v59  ;;  %v1362_v11 = vld [vmem:[#allocation11 + $0x1c0] sm:$0xff] }
 0x325   : > { %v973_v25 = vsel %vm5827_vm1, %v5251_v13, 0.0  ;;  %vm1013_vm9 = vmor %vm1011_vm8, %vm1012_vm7 }
 0x326   : > { %v1008_v23 = vsub.f32 1.0, %v1007_v22  ;;  %1381 = vmatpush.msrb.mxu2 %v1366_v63  ;;  %v1358_v22 = vld [vmem:[#allocation11 + $0x1a0] sm:$0xff] }
 0x327   : > { %v5253_v24 = vpop.eup %4544 }
 0x328   : > { %v1009_v27 = vmul.f32 %v4541_v21, %v1008_v23  ;;  %v964_v31 = vsel %vm5827_vm1, %v5253_v24, 0.0  ;;  %1382 = vmatpush.msrb.mxu2 %v1365_v1  ;;  %v1399_v23 = vld [vmem:[#allocation11 + $0x2c8] sm:$0xff] }
 0x329   : > { %974 = vadd.xlane.f32.xlu0 %v973_v25  ;;  %965 = vadd.xlane.f32.xlu2 %v964_v31  ;;  %v1398_v25 = vld [vmem:[#allocation11 + $0x2c0] sm:$0xff] }
 0x32a   : > { %v1010_v37 = vadd.f32 %v4541_v21, %v1009_v27  ;;  %1383 = vmatpush.msrb.mxu2 %v1364_v2 }
 0x32c   : > { %v1014_v45 = vsel %vm1013_vm9, %v4541_v21, %v1010_v37  ;;  %1384 = vmatpush.msrb.mxu2 %v1363_v7  ;;  %v1400_v21 = vld [vmem:[#allocation11 + $0x2d0] sm:$0xff] }
 0x32d   : > { %v1019_v49 = vsel %vm1016_vm10, %v1018_v44, %v1014_v45  ;;  %v1396_v37 = vld [vmem:[#allocation11 + $0x2b0] sm:$0xff]  ;;  %v1395_v45 = vld [vmem:[#allocation11 + $0x2a8] sm:$0xff] }
 0x32e   : > { %v1020_v50 = vmul.f32 %v5226_v18, %v1019_v49  ;;  %v1405_v18 = vld [vmem:[#allocation11 + $0x2f8] sm:$0xff]  ;;  %1385 = vmatpush.msrb.mxu2 %v1362_v11 }
 0x330   : > { %4379 = vmatmul.msk.f32.vlgmr.msra.gmra.mxu3 %vm1096_vm6, %v1020_v50  ;;  %1386 = vmatpush.msrb.mxu2 %v1361_v14 }
 0x331   : > { %1413 = vmatpush.msra.mxu3 %v1410_v51 }
 0x332   : > { %1387 = vmatpush.msrb.mxu2 %v1360_v58 }
 0x333   : > { %1414 = vmatpush.msra.mxu3 %v1409_v54 }
 0x334   : > { %1388 = vmatpush.msrb.mxu2 %v1359_v19  ;;  %v709_v19 = vpop.f32.mrf.mxu2 }
 0x335   : > { %1415 = vmatpush.msra.mxu3 %v1408_v57 }
 0x336   : > { %1389 = vmatpush.msrb.mxu2 %v1358_v22 }
 0x337   : > { %1416 = vmatpush.msra.mxu3 %v1407_v61 }
 0x338   : > { %1390 = vmatpush.msrb.mxu2 %v1357_v4 }
 0x339   : > { %1417 = vmatpush.msra.mxu3 %v1406_v0 }
 0x33b   : > { %1418 = vmatpush.msra.mxu3 %v1405_v18 }
 0x33d   : > { %1419 = vmatpush.msra.mxu3 %v1404_v6 }
 0x33f   : > { %1420 = vmatpush.msra.mxu3 %v1403_v10 }
 0x341   : > { %1421 = vmatpush.msra.mxu3 %v1402_v15 }
 0x342   : > { %v972_v20 = vpop.xlane.xlu1 %971 }
 0x343   : > { %4546 = vrcp.f32 %v972_v20  ;;  %1422 = vmatpush.msra.mxu3 %v1401_v17  ;;  %v1077_v47 = vand.u32 2147483648, %v972_v20  ;;  %v1075_v50 = vand.u32 2147483647, %v972_v20  ;;  %vm1071_vm12 = vweird.f32 %v972_v20 }
 0x345   : > { %1423 = vmatpush.msra.mxu3 %v1400_v21  ;;  %v1078_v54 = vor.u32 1.1754944e-38, %v1077_v47  ;;  %vm1076_vm14 = vcmp.eq.f32.partialorder %v1075_v50, 8.507059e+37  ;;  %v1469_v50 = vld [vmem:[#allocation11 + $0x430] sm:$0xff] }
 0x347   : > { %1424 = vmatpush.msra.mxu3 %v1399_v23 }
 0x349   : > { %v4547_v27 = vpop.eup %4546  ;;  %1425 = vmatpush.msra.mxu3 %v1398_v25  ;;  %v710_v25 = vadd.f32 %v5188_v12, %v709_v19  ;;  %v1299_v19 = vld [vmem:[#allocation11 + $0x490] sm:$0xff] }
 0x34a   : > { %v1067_v28 = vmul.f32 %v4547_v27, %v972_v20  ;;  %v957_v31 = vpop.xlane.xlu2 %956  ;;  %v969_v34 = vpop.xlane.xlu1 %968  ;;  %vm1072_vm11 = vweird.f32 %v4547_v27 }
 0x34b   : > { %4548 = vrcp.f32 %v957_v31  ;;  %1426 = vmatpush.msra.mxu3 %v1397_v26  ;;  %vm1073_vm13 = vmor %vm1071_vm12, %vm1072_vm11  ;;  %v1002_v18 = vand.u32 2147483648, %v957_v31  ;;  %v1000_v7 = vand.u32 2147483647, %v957_v31  ;;  %v1062_v10 = vand.u32 2147483648, %v969_v34 }
 0x34c   : > { %v1068_v44 = vsub.f32 1.0, %v1067_v28  ;;  %4550 = vrcp.f32 %v969_v34  ;;  %v1060_v14 = vand.u32 2147483647, %v969_v34  ;;  %vm996_vm3 = vweird.f32 %v957_v31 }
 0x34d   : > { %1427 = vmatpush.msra.mxu3 %v1396_v37  ;;  %v1003_v58 = vor.u32 1.1754944e-38, %v1002_v18  ;;  %vm1056_vm5 = vweird.f32 %v969_v34  ;;  %vm1001_vm7 = vcmp.eq.f32.partialorder %v1000_v7, 8.507059e+37  ;;  %v1301_v18 = vld [vmem:[#allocation11 + $0x4a0] sm:$0xff] }
 0x34e   : > { %v1069_v49 = vmul.f32 %v4547_v27, %v1068_v44  ;;  %vm1061_vm9 = vcmp.eq.f32.partialorder %v1060_v14, 8.507059e+37 }
 0x34f   : > { %1428 = vmatpush.msra.mxu3 %v1395_v45  ;;  %v1304_v45 = vld [vmem:[#allocation11 + $0x4b8] sm:$0xff] }
 0x350   : > { %v1070_v51 = vadd.f32 %v4547_v27, %v1069_v49  ;;  %1337 = vmatpush.msrb.mxu1 %v1304_v45 }
 0x351   : > { %v4549_v52 = vpop.eup %4548 }
 0x352   : > { %v4551_v56 = vpop.eup %4550  ;;  %v1074_v57 = vsel %vm1073_vm13, %v4547_v27, %v1070_v51  ;;  %v992_v59 = vmul.f32 %v4549_v52, %v957_v31  ;;  %vm997_vm15 = vweird.f32 %v4549_v52 }
 0x353   : > { %v1079_v61 = vsel %vm1076_vm14, %v1078_v54, %v1074_v57  ;;  %v1052_v63 = vmul.f32 %v4551_v56, %v969_v34  ;;  %vm1057_vm2 = vweird.f32 %v4551_v56  ;;  %vm998_vm4 = vmor %vm996_vm3, %vm997_vm15  ;;  %v1303_v54 = vld [vmem:[#allocation11 + $0x4b0] sm:$0xff] }
 0x354   : > { %v993_v0 = vsub.f32 1.0, %v992_v59  ;;  %v1080_v1 = vmul.f32 %v5231_v30, %v1079_v61  ;;  %vm1058_vm8 = vmor %vm1056_vm5, %vm1057_vm2  ;;  %v1063_v30 = vor.u32 1.1754944e-38, %v1062_v10  ;;  %v1468_v61 = vld [vmem:[#allocation11 + $0x428] sm:$0xff]  ;;  %1338 = vmatpush.msrb.mxu1 %v1303_v54  ;;  %v1300_v10 = vld [vmem:[#allocation11 + $0x498] sm:$0xff] }
 0x355   : > { %v1053_v2 = vsub.f32 1.0, %v1052_v63  ;;  %v1302_v63 = vld [vmem:[#allocation11 + $0x4a8] sm:$0xff] }
 0x356   : > { %v994_v6 = vmul.f32 %v4549_v52, %v993_v0  ;;  %4383 = vmatmul.msk.f32.vlgmr.msrb.gmra.mxu3 %vm1096_vm6, %v1080_v1  ;;  %1339 = vmatpush.msrb.mxu1 %v1302_v63 }
 0x357   : > { %v1054_v11 = vmul.f32 %v4551_v56, %v1053_v2  ;;  %v1467_v2 = vld [vmem:[#allocation11 + $0x420] sm:$0xff] }
 0x358   : > { %v995_v15 = vadd.f32 %v4549_v52, %v994_v6  ;;  %1340 = vmatpush.msrb.mxu1 %v1301_v18 }
 0x359   : > { %v1055_v17 = vadd.f32 %v4551_v56, %v1054_v11 }
 0x35a   : > { %v999_v20 = vsel %vm998_vm4, %v4549_v52, %v995_v15  ;;  %v1466_v15 = vld [vmem:[#allocation11 + $0x418] sm:$0xff]  ;;  %1341 = vmatpush.msrb.mxu1 %v1300_v10 }
 0x35b   : > { %v1004_v21 = vsel %vm1001_vm7, %v1003_v58, %v999_v20  ;;  %v1059_v22 = vsel %vm1058_vm8, %v4551_v56, %v1055_v17 }
 0x35c   : > { %v1064_v23 = vsel %vm1061_vm9, %v1063_v30, %v1059_v22  ;;  %v1005_v4 = vmul.f32 %v5237_v43, %v1004_v21  ;;  %v1465_v21 = vld [vmem:[#allocation11 + $0x410] sm:$0xff]  ;;  %1342 = vmatpush.msrb.mxu1 %v1299_v19  ;;  %vm1316_vm9 = vcmask 1041409  }
 0x35d   : > { %v1065_v26 = vmul.f32 %v5235_v40, %v1064_v23  ;;  %v1464_v23 = vld [vmem:[#allocation11 + $0x408] sm:$0xff] }
 0x35e   : > { %4378 = vmatmul.msk.f32.vlgmr.msra.gmra.mxu0 %vm1096_vm6, %v1005_v4  ;;  %1429 = vmatmul.f32.vlgmr.msra.gmra.mxu3 %v545_v33  ;;  %v1298_v4 = vld [vmem:[#allocation11 + $0x488] sm:$0xff] }
 0x35f   : > { %4382 = vmatmul.msk.f32.vlgmr.msra.gmra.mxu2 %vm1096_vm6, %v1065_v26  ;;  %1276 = vmatpush.msra.mxu0 %v710_v25  ;;  %v1297_v25 = vld [vmem:[#allocation11 + $0x480] sm:$0xff] }
 0x360   : > { %v1463_v26 = vld [vmem:[#allocation11 + $0x400] sm:$0xff]  ;;  %1343 = vmatpush.msrb.mxu1 %v1298_v4 }
 0x362   : > { %1344 = vmatpush.msrb.mxu1 %v1297_v25 }
 0x366   : > { %1432 = vmatmul.f32.gmra.mxu3 %v546_v36 }
 0x367   : > { %1391 = vmatmul.f32.vlgmr.msrb.gmra.mxu2 %v5131_v29 }
 0x36e   : > { %1435 = vmatmul.f32.gmra.mxu3 %v547_v39 }
 0x376   : > { %1438 = vmatmul.f32.gmra.mxu3 %v548_v42 }
 0x37e   : > { %1441 = vmatmul.f32.gmra.mxu3 %v549_v48 }
 0x386   : > { %1444 = vmatmul.f32.gmra.mxu3 %v550_v55 }
 0x38e   : > { %1447 = vmatmul.f32.gmra.mxu3 %v551_v62 }
 0x394   : > { %v963_v33 = vpop.xlane.xlu0 %962 }
 0x395   : > { %4552 = vrcp.f32 %v963_v33  ;;  %v1032_v43 = vand.u32 2147483648, %v963_v33  ;;  %v1030_v27 = vand.u32 2147483647, %v963_v33  ;;  %vm1026_vm11 = vweird.f32 %v963_v33 }
 0x396   : > { %1450 = vmatmul.f32.gmra.mxu3 %v552_v5 }
 0x397   : > { %v1033_v62 = vor.u32 1.1754944e-38, %v1032_v43  ;;  %vm1031_vm13 = vcmp.eq.f32.partialorder %v1030_v27, 8.507059e+37  ;;  %v1293_v43 = vld [vmem:[#allocation11 + $0x460] sm:$0xff]  ;;  %v1292_v27 = vld [vmem:[#allocation11 + $0x458] sm:$0xff] }
 0x39b   : > { %v4553_v36 = vpop.eup %4552 }
 0x39c   : > { %v1022_v12 = vmul.f32 %v4553_v36, %v963_v33  ;;  %v975_v39 = vpop.xlane.xlu0 %974  ;;  %v966_v40 = vpop.xlane.xlu2 %965  ;;  %vm1027_vm10 = vweird.f32 %v4553_v36  ;;  %v1296_v33 = vld [vmem:[#allocation11 + $0x478] sm:$0xff] }
 0x39d   : > { %4554 = vrcp.f32 %v975_v39  ;;  %vm1028_vm12 = vmor %vm1026_vm11, %vm1027_vm10  ;;  %v1092_v51 = vand.u32 2147483648, %v975_v39  ;;  %v1090_v57 = vand.u32 2147483647, %v975_v39  ;;  %v1047_v59 = vand.u32 2147483648, %v966_v40  ;;  %1345 = vmatpush.msrb.mxu1 %v1296_v33 }
 0x39e   : > { %v1023_v42 = vsub.f32 1.0, %v1022_v12  ;;  %4556 = vrcp.f32 %v966_v40  ;;  %v1045_v1 = vand.u32 2147483647, %v966_v40  ;;  %vm1086_vm2 = vweird.f32 %v975_v39  ;;  %v1461_v12 = vld [vmem:[#allocation11 + $0x3f0] sm:$0xff] }
 0x39f   : > { %v1093_v6 = vor.u32 1.1754944e-38, %v1092_v51  ;;  %vm1041_vm4 = vweird.f32 %v966_v40  ;;  %vm1091_vm5 = vcmp.eq.f32.partialorder %v1090_v57, 8.507059e+37  ;;  %v1048_v14 = vor.u32 1.1754944e-38, %v1047_v59 }
 0x3a0   : > { %v1024_v48 = vmul.f32 %v4553_v36, %v1023_v42  ;;  %vm1046_vm8 = vcmp.eq.f32.partialorder %v1045_v1, 8.507059e+37  ;;  %v1458_v42 = vld [vmem:[#allocation11 + $0x3d8] sm:$0xff]  ;;  %vm1319_vm10 = vcmask 1042434   ;;  %vm1322_vm11 = vcmask 1043459  }
 0x3a2   : > { %v1025_v55 = vadd.f32 %v4553_v36, %v1024_v48  ;;  %v1457_v48 = vld [vmem:[#allocation11 + $0x3d0] sm:$0xff] }
 0x3a3   : > { %v4555_v28 = vpop.eup %4554 }
 0x3a4   : > { %v4557_v31 = vpop.eup %4556  ;;  %v1029_v34 = vsel %vm1028_vm12, %v4553_v36, %v1025_v55  ;;  %v1082_v5 = vmul.f32 %v4555_v28, %v975_v39  ;;  %vm1087_vm14 = vweird.f32 %v4555_v28  ;;  %v1462_v36 = vld [vmem:[#allocation11 + $0x3f8] sm:$0xff]  ;;  %v1459_v39 = vld [vmem:[#allocation11 + $0x3e0] sm:$0xff]  ;;  %v1456_v55 = vld [vmem:[#allocation11 + $0x3c8] sm:$0xff]  ;;  %vm1325_vm12 = vcmask 1044484  }
 0x3a5   : > { %v1034_v37 = vsel %vm1031_vm13, %v1033_v62, %v1029_v34  ;;  %v1037_v44 = vmul.f32 %v4557_v31, %v966_v40  ;;  %vm1042_vm15 = vweird.f32 %v4557_v31  ;;  %vm1088_vm3 = vmor %vm1086_vm2, %vm1087_vm14  ;;  %v1294_v40 = vld [vmem:[#allocation11 + $0x468] sm:$0xff]  ;;  %v1455_v62 = vld [vmem:[#allocation11 + $0x3c0] sm:$0xff]  ;;  %vm1328_vm13 = vcmask 1045509  }
 0x3a6   : > { %v1083_v47 = vsub.f32 1.0, %v1082_v5  ;;  %v1035_v49 = vmul.f32 %v5245_v16, %v1034_v37  ;;  %vm1043_vm7 = vmor %vm1041_vm4, %vm1042_vm15  ;;  %v1454_v34 = vld [vmem:[#allocation11 + $0x3b8] sm:$0xff]  ;;  %v1289_v5 = vld [vmem:[#allocation11 + $0x440] sm:$0xff]  ;;  %v1117_v37 = vpop.f32.mrf.mxu3  ;;  %vm1331_vm14 = vcmask 1046534   ;;  %vm5828_vm15 = vcmask 1047559  }
 0x3a7   : > { %v1038_v52 = vsub.f32 1.0, %v1037_v44 }
 0x3a8   : > { %v1084_v56 = vmul.f32 %v4555_v28, %v1083_v47  ;;  %4380 = vmatmul.msk.f32.vlgmr.msrb.gmra.mxu0 %vm1096_vm6, %v1035_v49  ;;  %v5298_v47 = vld [vmem:[#allocation11 + $0x328] ss:$0 sm:$0xff] }
 0x3a9   : > { %v1039_v0 = vmul.f32 %v4557_v31, %v1038_v52  ;;  %1472 = vmatpush.msrb.mxu0 %v1469_v50  ;;  %v4504_v52 = vld [vmem:[#allocation11 + $0x218] ss:$0 sm:$0xff] }
 0x3aa   : > { %v1085_v16 = vadd.f32 %v4555_v28, %v1084_v56 }
 0x3ab   : > { %v1040_v7 = vadd.f32 %v4557_v31, %v1039_v0  ;;  %1473 = vmatpush.msrb.mxu0 %v1468_v61 }
 0x3ac   : > { %v1089_v11 = vsel %vm1088_vm3, %v4555_v28, %v1085_v16  ;;  %v1291_v28 = vld [vmem:[#allocation11 + $0x450] sm:$0xff] }
 0x3ad   : > { %v1094_v58 = vsel %vm1091_vm5, %v1093_v6, %v1089_v11  ;;  %v1044_v17 = vsel %vm1043_vm7, %v4557_v31, %v1040_v7  ;;  %1474 = vmatpush.msrb.mxu0 %v1467_v2  ;;  %v1290_v31 = vld [vmem:[#allocation11 + $0x448] sm:$0xff] }
 0x3ae   : > { %v1049_v20 = vsel %vm1046_vm8, %v1048_v14, %v1044_v17  ;;  %v1095_v30 = vmul.f32 %v5251_v13, %v1094_v58  ;;  %v1295_v13 = vld [vmem:[#allocation11 + $0x470] sm:$0xff]  ;;  %v1281_v14 = vmax.f32 %v1117_v37, 0.0 }
 0x3af   : > { %1475 = vmatpush.msrb.mxu0 %v1466_v15  ;;  %v1050_v22 = vmul.f32 %v5253_v24, %v1049_v20  ;;  %v1460_v24 = vld [vmem:[#allocation11 + $0x3e8] sm:$0xff]  ;;  %1346 = vmatpush.msrb.mxu1 %v1295_v13 }
 0x3b0   : > { %4384 = vmatmul.msk.f32.vlgmr.msra.gmra.mxu0 %vm1096_vm6, %v1095_v30 }
 0x3b1   : > { %4381 = vmatmul.msk.f32.vlgmr.msra.gmra.mxu1 %vm1096_vm6, %v1050_v22  ;;  %1476 = vmatpush.msrb.mxu0 %v1465_v21 }
 0x3b2   : > { %1347 = vmatpush.msrb.mxu1 %v1294_v40 }
 0x3b3   : > { %1477 = vmatpush.msrb.mxu0 %v1464_v23  ;;  %v1163_v44 = vpop.f32.mrf.mxu3 }
 0x3b4   : > { %1348 = vmatpush.msrb.mxu1 %v1293_v43  ;;  %v1283_v11 = vmax.f32 %v1163_v44, 0.0 }
 0x3b5   : > { %1478 = vmatpush.msrb.mxu0 %v1463_v26 }
 0x3b6   : > { %1349 = vmatpush.msrb.mxu1 %v1292_v27  ;;  %v1318_v30 = vrot.slane %v1283_v11, 6 }
 0x3b7   : > { %1479 = vmatpush.msrb.mxu0 %v1462_v36 }
 0x3b8   : > { %1350 = vmatpush.msrb.mxu1 %v1291_v28  ;;  %v5329_v28 = vld [vmem:[#allocation11 + $0x438] ss:$0 sm:$0xff] }
 0x3b9   : > { %1480 = vmatpush.msrb.mxu0 %v1461_v12 }
 0x3ba   : > { %1351 = vmatpush.msrb.mxu1 %v1290_v31 }
 0x3bb   : > { %1481 = vmatpush.msrb.mxu0 %v1460_v24 }
 0x3bc   : > { %1352 = vmatpush.msrb.mxu1 %v1289_v5 }
 0x3bd   : > { %1482 = vmatpush.msrb.mxu0 %v1459_v39 }
 0x3bf   : > { %1483 = vmatpush.msrb.mxu0 %v1458_v42 }
 0x3c1   : > { %1484 = vmatpush.msrb.mxu0 %v1457_v48 }
 0x3c3   : > { %1485 = vmatpush.msrb.mxu0 %v1456_v55 }
 0x3c5   : > { %1486 = vmatpush.msrb.mxu0 %v1455_v62 }
 0x3c7   : > { %1487 = vmatpush.msrb.mxu0 %v1454_v34 }
 0x3c8   : > { %1488 = vmatmul.f32.vlgmr.msrb.gmra.mxu0 %v5135_v32 }
 0x3d0   : > { %1491 = vmatmul.f32.gmra.mxu0 %v5140_v35 }
 0x3d8   : > { %1494 = vmatmul.f32.gmra.mxu0 %v5145_v38 }
 0x3d9   : > { %v5296_v45 = vpop.f32.mrf.mxu3 }
 0x3da   : > { %v1287_v21 = vmax.f32 %v5296_v45, 0.0 }
 0x3db   : > { %v1140_v16 = vpop.f32.mrf.mxu0 }
 0x3dc   : > { %v1282_v7 = vmax.f32 %v1140_v16, 0.0  ;;  %v1330_v36 = vrot.slane %v1287_v21, 2 }
 0x3e0   : > { %1497 = vmatmul.f32.gmra.mxu0 %v5150_v41 }
 0x3e1   : > { %v1430_v49 = vpop.f32.mrf.mxu3 }
 0x3e2   : > { %v1232_v50 = vpop.f32.mrf.mxu2  ;;  %v1431_v51 = vadd.f32 %v5298_v47, %v1430_v49 }
 0x3e3   : > { %v1286_v17 = vmax.f32 %v1232_v50, 0.0 }
 0x3e4   : > { %1543 = vmatpush.xpose.msra.mxu1 %v1431_v51 }
 0x3e5   : > { %v1327_v26 = vrot.slane %v1286_v17, 3 }
 0x3e8   : > { %1500 = vmatmul.f32.gmra.mxu0 %v5155_v46 }
 0x3e9   : > { %v1433_v32 = vpop.f32.mrf.mxu3 }
 0x3ea   : > { %v1392_v54 = vpop.f32.mrf.mxu2  ;;  %v1434_v35 = vadd.f32 %v5298_v47, %v1433_v32 }
 0x3eb   : > { %v5304_v56 = vadd.f32 %v4504_v52, %v1392_v54 }
 0x3ec   : > { %1563 = vmatpush.xpose.msra.mxu2 %v1434_v35 }
 0x3ed   : > { %v1514_v38 = vrot.slane %v5304_v56, 1  ;;  %v1516_v46 = vrot.slane %v5304_v56, 3  ;;  %v1518_v1 = vrot.slane %v5304_v56, 5  ;;  %v1520_v2 = vrot.slane %v5304_v56, 7 }
 0x3ee   : > { %v1515_v27 = vrot.slane %v5304_v56, 2  ;;  %v1517_v31 = vrot.slane %v5304_v56, 4  ;;  %v1519_v44 = vrot.slane %v5304_v56, 6 }
 0x3ef   : > { %1564 = vmatmul.f32.vlgmr.msra.gmra.mxu2 %v1514_v38 }
 0x3f0   : > { %1503 = vmatmul.f32.gmra.mxu0 %v5160_v53 }
 0x3f1   : > { %v1436_v41 = vpop.f32.mrf.mxu3 }
 0x3f2   : > { %v1437_v40 = vadd.f32 %v5298_v47, %v1436_v41 }
 0x3f8   : > { %1506 = vmatmul.f32.gmra.mxu0 %v5165_v60 }
 0x3f9   : > { %v1439_v57 = vpop.f32.mrf.mxu3 }
 0x3fa   : > { %v1440_v59 = vadd.f32 %v5298_v47, %v1439_v57 }
 0x3fc   : > { %1603 = vmatpush.xpose.msrb.mxu2 %v1440_v59 }
 0x3ff   : > { %1604 = vmatmul.f32.vlgmr.msrb.gmra.mxu2 %v1516_v46 }
 0x400   : > { %1509 = vmatmul.f32.gmra.mxu0 %v5170_v3  ;;  %v1315_v3 = vrot.slane %v1282_v7, 7 }
 0x401   : > { %v1442_v61 = vpop.f32.mrf.mxu3 }
 0x402   : > { %v1317_v58 = vsel %vm1316_vm9, %v1315_v3, %v1281_v14  ;;  %v1443_v43 = vadd.f32 %v5298_v47, %v1442_v61 }
 0x403   : > { %v1320_v4 = vsel %vm1319_vm10, %v1318_v30, %v1317_v58 }
 0x409   : > { %v1445_v63 = vpop.f32.mrf.mxu3 }
 0x40a   : > { %v1446_v0 = vadd.f32 %v5298_v47, %v1445_v63 }
 0x40c   : > { %1643 = vmatpush.xpose.msra.mxu2 %v1446_v0 }
 0x40f   : > { %1644 = vmatmul.f32.vlgmr.msra.gmra.mxu2 %v1518_v1 }
 0x411   : > { %v1448_v53 = vpop.f32.mrf.mxu3 }
 0x412   : > { %v1449_v55 = vadd.f32 %v5298_v47, %v1448_v53 }
 0x419   : > { %v1451_v18 = vpop.f32.mrf.mxu3 }
 0x41a   : > { %v1452_v60 = vadd.f32 %v5298_v47, %v1451_v18 }
 0x41c   : > { %1683 = vmatpush.xpose.msrb.mxu2 %v1452_v60 }
 0x41f   : > { %1684 = vmatmul.f32.vlgmr.msrb.gmra.mxu2 %v1520_v2 }
 0x425   : > { %v1186_v6 = vpop.f32.mrf.mxu0 }
 0x426   : > { %v1284_v10 = vmax.f32 %v1186_v6, 0.0 }
 0x428   : > { %v1321_v19 = vrot.slane %v1284_v10, 5 }
 0x42a   : > { %v1323_v33 = vsel %vm1322_vm11, %v1321_v19, %v1320_v4 }
 0x42d   : > { %v1278_v15 = vpop.f32.mrf.mxu0 }
 0x42e   : > { %v1209_v20 = vpop.f32.mrf.mxu1  ;;  %v1288_v23 = vmax.f32 %v1278_v15, 0.0 }
 0x42f   : > { %v1285_v22 = vmax.f32 %v1209_v20, 0.0 }
 0x430   : > { %v1333_v12 = vrot.slane %v1288_v23, 1 }
 0x431   : > { %v1324_v25 = vrot.slane %v1285_v22, 4 }
 0x433   : > { %v1326_v13 = vsel %vm1325_vm12, %v1324_v25, %v1323_v33 }
 0x434   : > { %v1329_v24 = vsel %vm1328_vm13, %v1327_v26, %v1326_v13 }
 0x435   : > { %v1332_v39 = vsel %vm1331_vm14, %v1330_v36, %v1329_v24 }
 0x436   : > { %v1335_v42 = vsel %vm5828_vm15, %v1333_v12, %v1332_v39 }
 0x437   : > { %1353 = vmatmul.f32.vlgmr.msrb.gmra.mxu1 %v1335_v42 }
 0x438   : > { %1583 = vmatpush.xpose.msrb.mxu1 %v1437_v40 }
 0x43f   : > { %1544 = vmatmul.f32.vlgmr.msra.gmra.mxu1 %v5304_v56 }
 0x440   : > { %1623 = vmatpush.xpose.msra.mxu1 %v1443_v43 }
 0x445   : > { %v1489_v48 = vpop.f32.mrf.mxu0 }
 0x446   : > { %v1490_v34 = vadd.f32 %v5329_v28, %v1489_v48 }
 0x447   : > { %1584 = vmatmul.f32.vlgmr.msrb.gmra.mxu1 %v1515_v27 }
 0x448   : > { %1663 = vmatpush.xpose.msrb.mxu1 %v1449_v55 }
 0x44d   : > { %v1492_v62 = vpop.f32.mrf.mxu0 }
 0x44e   : > { %v1493_v5 = vadd.f32 %v5329_v28, %v1492_v62 }
 0x44f   : > { %1624 = vmatmul.f32.vlgmr.msra.gmra.mxu1 %v1517_v31 }
 0x450   : > { %1914 = vmatpush.msra.mxu1 %v1490_v34  ;;  %1937 = vmatpush.msra.mxu2 %v1493_v5 }
 0x455   : > { %v1495_v37 = vpop.f32.mrf.mxu0 }
 0x456   : > { %v1496_v45 = vadd.f32 %v5329_v28, %v1495_v37 }
 0x457   : > { %1664 = vmatmul.f32.vlgmr.msrb.gmra.mxu1 %v1519_v44 }
 0x458   : > { %1960 = vmatpush.msrb.mxu1 %v1496_v45 }
 0x45d   : > { %v1498_v47 = vpop.f32.mrf.mxu0 }
 0x45e   : > { %v1499_v49 = vadd.f32 %v5329_v28, %v1498_v47 }
 0x460   : > { %1983 = vmatpush.msrb.mxu2 %v1499_v49 }
 0x472   : > { %v1565_v50 = vpop.f32.mrf.mxu2 }
 0x473   : > { %v1689_v51 = vmul.f32 0.17677669, %v1565_v50 }
 0x475   : > { %v1697_v52 = vsel %vm555_vm0, %v1689_v51, -1e+30 }
 0x476   : > { %v1707_v32 = vsel %vm5827_vm1, %v1697_v52, -inf }
 0x477   : > { %1708 = vmax.xlane.f32.xlu2 %v1707_v32 }
 0x482   : > { %v1605_v35 = vpop.f32.mrf.mxu2 }
 0x483   : > { %v1691_v46 = vmul.f32 0.17677669, %v1605_v35 }
 0x485   : > { %v1699_v0 = vsel %vm555_vm0, %v1691_v46, -1e+30 }
 0x486   : > { %v1713_v18 = vsel %vm5827_vm1, %v1699_v0, -inf }
 0x492   : > { %v1645_v41 = vpop.f32.mrf.mxu2 }
 0x493   : > { %v1693_v16 = vmul.f32 0.17677669, %v1645_v41 }
 0x495   : > { %v1701_v10 = vsel %vm555_vm0, %v1693_v16, -1e+30 }
 0x496   : > { %v1719_v15 = vsel %vm5827_vm1, %v1701_v10, -inf }
 0x4a2   : > { %v1685_v1 = vpop.f32.mrf.mxu2 }
 0x4a3   : > { %v1695_v2 = vmul.f32 0.17677669, %v1685_v1  ;;  %v5395_v1 = vpop.f32.mrf.mxu0 }
 0x4a5   : > { %v1703_v3 = vsel %vm555_vm0, %v1695_v2, -1e+30 }
 0x4a6   : > { %v1725_v14 = vsel %vm5827_vm1, %v1703_v3, -inf }
 0x4b4   : > { %v5340_v54 = vpop.f32.mrf.mxu1 }
 0x4bc   : > { %v1545_v56 = vpop.f32.mrf.mxu1 }
 0x4bd   : > { %v1688_v38 = vmul.f32 0.17677669, %v1545_v56 }
 0x4bf   : > { %v1696_v57 = vsel %vm555_vm0, %v1688_v38, -1e+30 }
 0x4c0   : > { %v1704_v59 = vsel %vm5827_vm1, %v1696_v57, -inf }
 0x4c1   : > { %1705 = vmax.xlane.f32.xlu1 %v1704_v59 }
 0x4c4   : > { %v1585_v61 = vpop.f32.mrf.mxu1 }
 0x4c5   : > { %v1690_v63 = vmul.f32 0.17677669, %v1585_v61 }
 0x4c7   : > { %v1698_v53 = vsel %vm555_vm0, %v1690_v63, -1e+30 }
 0x4c8   : > { %v1710_v60 = vsel %vm5827_vm1, %v1698_v53, -inf }
 0x4c9   : > { %1714 = vmax.xlane.f32.xlu1 %v1713_v18  ;;  %1711 = vmax.xlane.f32.xlu0 %v1710_v60 }
 0x4cc   : > { %v1625_v6 = vpop.f32.mrf.mxu1 }
 0x4cd   : > { %v1692_v7 = vmul.f32 0.17677669, %v1625_v6 }
 0x4cf   : > { %v1700_v11 = vsel %vm555_vm0, %v1692_v7, -1e+30 }
 0x4d0   : > { %v1716_v58 = vsel %vm5827_vm1, %v1700_v11, -inf }
 0x4d1   : > { %1726 = vmax.xlane.f32.xlu1 %v1725_v14  ;;  %1720 = vmax.xlane.f32.xlu0 %v1719_v15 }
 0x4d2   : > { %1717 = vmax.xlane.f32.xlu2 %v1716_v58 }
 0x4d4   : > { %v1665_v17 = vpop.f32.mrf.mxu1 }
 0x4d5   : > { %v1694_v19 = vmul.f32 0.17677669, %v1665_v17 }
 0x4d7   : > { %v1702_v20 = vsel %vm555_vm0, %v1694_v19, -1e+30 }
 0x4d8   : > { %v1722_v30 = vsel %vm5827_vm1, %v1702_v20, -inf }
 0x4da   : > { %1723 = vmax.xlane.f32.xlu2 %v1722_v30 }
 0x4ea   : > { %v1709_v21 = vpop.xlane.xlu2 %1708 }
 0x4eb   : > { %v1729_v22 = vsub.f32 %v1697_v52, %v1709_v21 }
 0x4ed   : > { %v1738_v23 = vmul.f32 1.442695, %v1729_v22 }
 0x4ef   : > { %4558 = vpow2.f32 %v1738_v23 }
 0x4f5   : > { %v5363_v4 = vpop.eup %4558 }
 0x4f6   : > { %v1755_v25 = vsel %vm5827_vm1, %v5363_v4, 0.0 }
 0x4f7   : > { %1756 = vadd.xlane.f32.xlu1 %v1755_v25 }
 0x534   : > { %v1706_v26 = vpop.xlane.xlu1 %1705 }
 0x535   : > { %v1728_v33 = vsub.f32 %v1696_v57, %v1706_v26 }
 0x537   : > { %v1736_v36 = vmul.f32 1.442695, %v1728_v33 }
 0x539   : > { %4560 = vpow2.f32 %v1736_v36 }
 0x53c   : > { %v1715_v13 = vpop.xlane.xlu1 %1714  ;;  %v1712_v12 = vpop.xlane.xlu0 %1711 }
 0x53d   : > { %v1731_v24 = vsub.f32 %v1699_v0, %v1715_v13  ;;  %v1730_v39 = vsub.f32 %v1698_v53, %v1712_v12 }
 0x53f   : > { %v5367_v40 = vpop.eup %4560  ;;  %v1742_v42 = vmul.f32 1.442695, %v1731_v24  ;;  %v1740_v43 = vmul.f32 1.442695, %v1730_v39 }
 0x540   : > { %v1752_v48 = vsel %vm5827_vm1, %v5367_v40, 0.0 }
 0x541   : > { %4562 = vpow2.f32 %v1742_v42  ;;  %1753 = vadd.xlane.f32.xlu0 %v1752_v48 }
 0x542   : > { %4564 = vpow2.f32 %v1740_v43 }
 0x544   : > { %v1727_v27 = vpop.xlane.xlu1 %1726  ;;  %v1721_v55 = vpop.xlane.xlu0 %1720 }
 0x545   : > { %v1735_v62 = vsub.f32 %v1703_v3, %v1727_v27  ;;  %v1733_v31 = vsub.f32 %v1701_v10, %v1721_v55  ;;  %v1718_v34 = vpop.xlane.xlu2 %1717  ;;  %v1504_v10 = vpop.f32.mrf.mxu0 }
 0x546   : > { %v1732_v5 = vsub.f32 %v1700_v11, %v1718_v34  ;;  %v1505_v58 = vadd.f32 %v5329_v28, %v1504_v10 }
 0x547   : > { %v5371_v37 = vpop.eup %4562  ;;  %v1750_v44 = vmul.f32 1.442695, %v1735_v62  ;;  %v1746_v45 = vmul.f32 1.442695, %v1733_v31 }
 0x548   : > { %v5373_v47 = vpop.eup %4564  ;;  %v1744_v49 = vmul.f32 1.442695, %v1732_v5  ;;  %v1761_v50 = vsel %vm5827_vm1, %v5371_v37, 0.0 }
 0x549   : > { %4566 = vpow2.f32 %v1750_v44  ;;  %1762 = vadd.xlane.f32.xlu0 %v1761_v50  ;;  %v1758_v51 = vsel %vm5827_vm1, %v5373_v47, 0.0 }
 0x54a   : > { %4568 = vpow2.f32 %v1746_v45  ;;  %1759 = vadd.xlane.f32.xlu2 %v1758_v51 }
 0x54b   : > { %4570 = vpow2.f32 %v1744_v49 }
 0x54d   : > { %v1724_v52 = vpop.xlane.xlu2 %1723  ;;  %v1507_v39 = vpop.f32.mrf.mxu0 }
 0x54e   : > { %v1734_v32 = vsub.f32 %v1702_v20, %v1724_v52 }
 0x54f   : > { %v5379_v35 = vpop.eup %4566 }
 0x550   : > { %v5381_v56 = vpop.eup %4568  ;;  %v1748_v38 = vmul.f32 1.442695, %v1734_v32  ;;  %v1773_v41 = vsel %vm5827_vm1, %v5379_v35, 0.0 }
 0x551   : > { %v5385_v57 = vpop.eup %4570  ;;  %1774 = vadd.xlane.f32.xlu0 %v1773_v41  ;;  %v1767_v59 = vsel %vm5827_vm1, %v5381_v56, 0.0 }
 0x552   : > { %4572 = vpow2.f32 %v1748_v38  ;;  %v1764_v46 = vsel %vm5827_vm1, %v5385_v57, 0.0  ;;  %1768 = vadd.xlane.f32.xlu2 %v1767_v59  ;;  %v1502_v38 = vadd.f32 %v5329_v28, %v5395_v1 }
 0x553   : > { %1765 = vadd.xlane.f32.xlu1 %v1764_v46 }
 0x558   : > { %v5391_v61 = vpop.eup %4572 }
 0x559   : > { %v1770_v63 = vsel %vm5827_vm1, %v5391_v61, 0.0 }
 0x55b   : > { %1771 = vadd.xlane.f32.xlu1 %v1770_v63 }
 0x56a   : > { %v1757_v0 = vpop.xlane.xlu1 %1756 }
 0x56b   : > { %4574 = vrcp.f32 %v1757_v0  ;;  %v1802_v16 = vand.u32 2147483648, %v1757_v0  ;;  %v1800_v6 = vand.u32 2147483647, %v1757_v0  ;;  %vm1796_vm2 = vweird.f32 %v1757_v0 }
 0x56d   : > { %v1803_v3 = vor.u32 1.1754944e-38, %v1802_v16  ;;  %vm1801_vm4 = vcmp.eq.f32.partialorder %v1800_v6, 8.507059e+37 }
 0x571   : > { %v4575_v53 = vpop.eup %4574 }
 0x572   : > { %v1792_v18 = vmul.f32 %v4575_v53, %v1757_v0  ;;  %vm1797_vm0 = vweird.f32 %v4575_v53 }
 0x573   : > { %vm1798_vm3 = vmor %vm1796_vm2, %vm1797_vm0 }
 0x574   : > { %v1793_v60 = vsub.f32 1.0, %v1792_v18 }
 0x576   : > { %v1794_v2 = vmul.f32 %v4575_v53, %v1793_v60 }
 0x578   : > { %v1795_v7 = vadd.f32 %v4575_v53, %v1794_v2 }
 0x57a   : > { %v1799_v11 = vsel %vm1798_vm3, %v4575_v53, %v1795_v7  ;;  %v1510_v7 = vpop.f32.mrf.mxu0 }
 0x57b   : > { %v1804_v14 = vsel %vm1801_vm4, %v1803_v3, %v1799_v11 }
 0x57c   : > { %v1805_v15 = vmul.f32 %v5363_v4, %v1804_v14 }
 0x57e   : > { %4386 = vmatmul.msk.f32.vlgmr.msra.gmra.mxu2 %vm1096_vm6, %v1805_v15 }
 0x57f   : > { %2029 = vmatpush.msra.mxu2 %v1505_v58 }
 0x5b4   : > { %v1754_v17 = vpop.xlane.xlu0 %1753 }
 0x5b5   : > { %4576 = vrcp.f32 %v1754_v17  ;;  %v1785_v26 = vand.u32 2147483647, %v1754_v17  ;;  %v1787_v33 = vand.u32 2147483648, %v1754_v17  ;;  %vm1781_vm7 = vweird.f32 %v1754_v17 }
 0x5b7   : > { %vm1786_vm0 = vcmp.eq.f32.partialorder %v1785_v26, 8.507059e+37  ;;  %v1788_v48 = vor.u32 1.1754944e-38, %v1787_v33 }
 0x5bb   : > { %v4577_v19 = vpop.eup %4576 }
 0x5bc   : > { %v1777_v20 = vmul.f32 %v4577_v19, %v1754_v17  ;;  %v1763_v30 = vpop.xlane.xlu0 %1762  ;;  %vm1782_vm5 = vweird.f32 %v4577_v19 }
 0x5bd   : > { %4578 = vrcp.f32 %v1763_v30  ;;  %v1760_v21 = vpop.xlane.xlu2 %1759  ;;  %vm5400_vm8 = vmor %vm1781_vm7, %vm1782_vm5  ;;  %v1830_v31 = vand.u32 2147483647, %v1763_v30  ;;  %v1832_v34 = vand.u32 2147483648, %v1763_v30  ;;  %vm1826_vm4 = vweird.f32 %v1763_v30 }
 0x5be   : > { %v1778_v22 = vsub.f32 1.0, %v1777_v20  ;;  %4580 = vrcp.f32 %v1760_v21  ;;  %v1817_v49 = vand.u32 2147483648, %v1760_v21  ;;  %v1815_v51 = vand.u32 2147483647, %v1760_v21 }
 0x5bf   : > { %vm1811_vm7 = vweird.f32 %v1760_v21  ;;  %v1833_v63 = vor.u32 1.1754944e-38, %v1832_v34 }
 0x5c0   : > { %v1779_v23 = vmul.f32 %v4577_v19, %v1778_v22  ;;  %v1818_v0 = vor.u32 1.1754944e-38, %v1817_v49  ;;  %vm1816_vm1 = vcmp.eq.f32.partialorder %v1815_v51, 8.507059e+37  ;;  %v2092_v49 = vld [vmem:[#allocation11 + $0x4e8] sm:$0xff] }
 0x5c2   : > { %v1780_v25 = vadd.f32 %v4577_v19, %v1779_v23 }
 0x5c3   : > { %v4579_v4 = vpop.eup %4578 }
 0x5c4   : > { %v4581_v36 = vpop.eup %4580  ;;  %v1822_v12 = vmul.f32 %v4579_v4, %v1763_v30  ;;  %v5404_v24 = vpop.xlane.xlu0 %1774  ;;  %v1784_v42 = vsel %vm5400_vm8, %v4577_v19, %v1780_v25  ;;  %vm1827_vm2 = vweird.f32 %v4579_v4  ;;  %v1511_v19 = vadd.f32 %v5329_v28, %v1510_v7  ;;  %v2207_v7 = vld [vmem:[#allocation11 + $0x598] sm:$0xff] }
 0x5c5   : > { %v1807_v43 = vmul.f32 %v4581_v36, %v1760_v21  ;;  %4582 = vrcp.f32 %v5404_v24  ;;  %v5411_v62 = vpop.xlane.xlu2 %1768  ;;  %v1789_v44 = vsel %vm1786_vm0, %v1788_v48, %v1784_v42  ;;  %vm1812_vm3 = vweird.f32 %v4581_v36  ;;  %vm1828_vm5 = vmor %vm1826_vm4, %vm1827_vm2 }
 0x5c6   : > { %v1823_v27 = vsub.f32 1.0, %v1822_v12  ;;  %v5409_v55 = vpop.xlane.xlu1 %1765  ;;  %v1790_v59 = vmul.f32 %v5367_v40, %v1789_v44  ;;  %vm1813_vm8 = vmor %vm1811_vm7, %vm1812_vm3  ;;  %vm1831_vm0 = vcmp.eq.f32.partialorder %v1830_v31, 8.507059e+37  ;;  %v1508_v21 = vadd.f32 %v5329_v28, %v1507_v39 }
 0x5c7   : > { %v1808_v5 = vsub.f32 1.0, %v1807_v43  ;;  %4584 = vrcp.f32 %v5409_v55  ;;  %v1845_v14 = vand.u32 2147483647, %v5409_v55  ;;  %v1847_v15 = vand.u32 2147483648, %v5409_v55 }
 0x5c8   : > { %v1824_v45 = vmul.f32 %v4579_v4, %v1823_v27  ;;  %4586 = vrcp.f32 %v5411_v62  ;;  %4385 = vmatmul.msk.f32.vlgmr.msra.gmra.mxu1 %vm1096_vm6, %v1790_v59  ;;  %vm1841_vm2 = vweird.f32 %v5409_v55  ;;  %v1860_v22 = vand.u32 2147483647, %v5411_v62  ;;  %v2279_v59 = vld [vmem:[#allocation11 + $0x640] sm:$0xff] }
 0x5c9   : > { %v1809_v50 = vmul.f32 %v4581_v36, %v1808_v5  ;;  %2006 = vmatpush.msra.mxu1 %v1502_v38  ;;  %v1862_v23 = vand.u32 2147483648, %v5411_v62  ;;  %vm1886_vm4 = vweird.f32 %v5404_v24  ;;  %vm1846_vm7 = vcmp.eq.f32.partialorder %v1845_v14, 8.507059e+37  ;;  %v2204_v14 = vld [vmem:[#allocation11 + $0x580] sm:$0xff] }
 0x5ca   : > { %v1825_v52 = vadd.f32 %v4579_v4, %v1824_v45  ;;  %v1848_v28 = vor.u32 1.1754944e-38, %v1847_v15  ;;  %v1890_v13 = vand.u32 2147483647, %v5404_v24  ;;  %v1892_v27 = vand.u32 2147483648, %v5404_v24  ;;  %v2281_v45 = vld [vmem:[#allocation11 + $0x650] sm:$0xff]  ;;  %v2271_v15 = vld [vmem:[#allocation11 + $0x600] sm:$0xff] }
 0x5cb   : > { %v5415_v32 = vpop.eup %4582  ;;  %v1810_v41 = vadd.f32 %v4581_v36, %v1809_v50  ;;  %v1863_v39 = vor.u32 1.1754944e-38, %v1862_v23  ;;  %v2213_v50 = vld [vmem:[#allocation11 + $0x5c8] sm:$0xff]  ;;  %v2267_v23 = vld [vmem:[#allocation11 + $0x5e0] sm:$0xff] }
 0x5cc   : > { %v1829_v46 = vsel %vm1828_vm5, %v4579_v4, %v1825_v52  ;;  %v1882_v53 = vmul.f32 %v5415_v32, %v5404_v24  ;;  %v1893_v52 = vor.u32 1.1754944e-38, %v1892_v27  ;;  %v2212_v24 = vld [vmem:[#allocation11 + $0x5c0] sm:$0xff]  ;;  %v2196_v27 = vld [vmem:[%s5112_s16 + $0x30] sm:$0xff] }
 0x5cd   : > { %v4585_v18 = vpop.eup %4584  ;;  %v1814_v60 = vsel %vm1813_vm8, %v4581_v36, %v1810_v41  ;;  %v1834_v16 = vsel %vm1831_vm0, %v1833_v63, %v1829_v46  ;;  %vm1856_vm8 = vweird.f32 %v5411_v62  ;;  %vm1887_vm0 = vweird.f32 %v5415_v32  ;;  %v2211_v63 = vld [vmem:[#allocation11 + $0x5b8] sm:$0xff] }
 0x5ce   : > { %v1819_v1 = vsel %vm1816_vm1, %v1818_v0, %v1814_v60  ;;  %v1837_v2 = vmul.f32 %v4585_v18, %v5409_v55  ;;  %v5424_v6 = vpop.xlane.xlu1 %1771  ;;  %v4587_v40 = vpop.eup %4586  ;;  %v1883_v3 = vsub.f32 1.0, %v1882_v53  ;;  %v1835_v17 = vmul.f32 %v5371_v37, %v1834_v16  ;;  %v2278_v0 = vld [vmem:[#allocation11 + $0x638] sm:$0xff]  ;;  %v2210_v53 = vld [vmem:[#allocation11 + $0x5b0] sm:$0xff] }
 0x5cf   : > { %4588 = vrcp.f32 %v5424_v6  ;;  %v1852_v11 = vmul.f32 %v4587_v40, %v5411_v62  ;;  %v1820_v58 = vmul.f32 %v5373_v47, %v1819_v1  ;;  %vm1842_vm1 = vweird.f32 %v4585_v18  ;;  %v2277_v16 = vld [vmem:[#allocation11 + $0x630] sm:$0xff]  ;;  %v2209_v1 = vld [vmem:[#allocation11 + $0x5a8] sm:$0xff] }
 0x5d0   : > { %v1838_v10 = vsub.f32 1.0, %v1837_v2  ;;  %4388 = vmatmul.msk.f32.vlgmr.msrb.gmra.mxu2 %vm1096_vm6, %v1835_v17  ;;  %v1884_v25 = vmul.f32 %v5415_v32, %v1883_v3  ;;  %vm1857_vm3 = vweird.f32 %v4587_v40  ;;  %vm1843_vm5 = vmor %vm1841_vm2, %vm1842_vm1  ;;  %vm1861_vm1 = vcmp.eq.f32.partialorder %v1860_v22, 8.507059e+37  ;;  %v2276_v2 = vld [vmem:[#allocation11 + $0x628] sm:$0xff]  ;;  %v2206_v3 = vld [vmem:[#allocation11 + $0x590] sm:$0xff] }
 0x5d1   : > { %v1853_v30 = vsub.f32 1.0, %v1852_v11  ;;  %2075 = vmatpush.msrb.mxu2 %v1511_v19  ;;  %4387 = vmatmul.msk.f32.vlgmr.msrb.gmra.mxu1 %vm1096_vm6, %v1820_v58  ;;  %vm1858_vm15 = vmor %vm1856_vm8, %vm1857_vm3  ;;  %v1877_v62 = vand.u32 2147483648, %v5424_v6  ;;  %v1875_v5 = vand.u32 2147483647, %v5424_v6  ;;  %vm1871_vm3 = vweird.f32 %v5424_v6  ;;  %v2272_v11 = vld [vmem:[#allocation11 + $0x608] sm:$0xff]  ;;  %v2203_v58 = vld [vmem:[#allocation11 + $0x578] sm:$0xff] }
 0x5d2   : > { %v1839_v20 = vmul.f32 %v4585_v18, %v1838_v10  ;;  %2052 = vmatpush.msrb.mxu1 %v1508_v21  ;;  %v1885_v42 = vadd.f32 %v5415_v32, %v1884_v25  ;;  %v2205_v10 = vld [vmem:[#allocation11 + $0x588] sm:$0xff]  ;;  %v2270_v17 = vld [vmem:[#allocation11 + $0x5f8] sm:$0xff]  ;;  %v2202_v19 = vld [vmem:[#allocation11 + $0x570] sm:$0xff]  ;;  %vm5854_vm8 = vcmask 1047559  }
 0x5d3   : > { %v1854_v26 = vmul.f32 %v4587_v40, %v1853_v30  ;;  %v1878_v38 = vor.u32 1.1754944e-38, %v1877_v62  ;;  %v2201_v30 = vld [vmem:[#allocation11 + $0x568] sm:$0xff]  ;;  %v2200_v22 = vld [vmem:[#allocation11 + $0x560] sm:$0xff]  ;;  %v2199_v25 = vld [vmem:[#allocation11 + $0x558] sm:$0xff] }
 0x5d4   : > { %v1840_v47 = vadd.f32 %v4585_v18, %v1839_v20  ;;  %v2269_v20 = vld [vmem:[#allocation11 + $0x5f0] sm:$0xff]  ;;  %v2268_v21 = vld [vmem:[#allocation11 + $0x5e8] sm:$0xff] }
 0x5d5   : > { %v4589_v37 = vpop.eup %4588  ;;  %v1855_v4 = vadd.f32 %v4587_v40, %v1854_v26  ;;  %v2198_v26 = vld [vmem:[#allocation11 + $0x550] sm:$0xff] }
 0x5d6   : > { %v1844_v33 = vsel %vm1843_vm5, %v4585_v18, %v1840_v47  ;;  %v1867_v36 = vmul.f32 %v4589_v37, %v5424_v6  ;;  %vm1872_vm2 = vweird.f32 %v4589_v37  ;;  %v2208_v6 = vld [vmem:[#allocation11 + $0x5a0] sm:$0xff]  ;;  %v2266_v47 = vld [vmem:[#allocation11 + $0x5d8] sm:$0xff]  ;;  %v2097_v62 = vld [vmem:[#allocation11 + $0x510] sm:$0xff] }
 0x5d7   : > { %v1849_v12 = vsel %vm1846_vm7, %v1848_v28, %v1844_v33  ;;  %v1859_v43 = vsel %vm1858_vm15, %v4587_v40, %v1855_v4  ;;  %vm5456_vm15 = vmor %vm1886_vm4, %vm1887_vm0  ;;  %vm1891_vm4 = vcmp.eq.f32.partialorder %v1890_v13, 8.507059e+37  ;;  %vm1876_vm7 = vcmp.eq.f32.partialorder %v1875_v5, 8.507059e+37  ;;  %v2275_v40 = vld [vmem:[#allocation11 + $0x620] sm:$0xff]  ;;  %v2192_v33 = vld [vmem:[%s5112_s16 + $0x10] sm:$0xff] }
 0x5d8   : > { %v1868_v48 = vsub.f32 1.0, %v1867_v36  ;;  %v1864_v55 = vsel %vm1861_vm1, %v1863_v39, %v1859_v43  ;;  %v1850_v31 = vmul.f32 %v5385_v57, %v1849_v12  ;;  %v1889_v57 = vsel %vm5456_vm15, %v5415_v32, %v1885_v42  ;;  %vm1873_vm5 = vmor %vm1871_vm3, %vm1872_vm2  ;;  %v2191_v28 = vld [vmem:[%s5112_s16 + $0x8] sm:$0xff]  ;;  %v2193_v4 = vld [vmem:[%s5112_s16 + $0x18] sm:$0xff] }
 0x5d9   : > { %v1865_v44 = vmul.f32 %v5381_v56, %v1864_v55  ;;  %v2280_v56 = vld [vmem:[#allocation11 + $0x648] sm:$0xff]  ;;  %v1894_v46 = vsel %vm1891_vm4, %v1893_v52, %v1889_v57  ;;  %v2103_v36 = vld [vmem:[#allocation11 + $0x540] sm:$0xff]  ;;  %v2102_v13 = vld [vmem:[#allocation11 + $0x538] sm:$0xff]  ;;  %vm2265_vm0 = vcmp.lt.s32.totalorder %v5183_v8, 3  ;;  %vm5855_vm1 = vcmask 57344  }
 0x5da   : > { %v1869_v34 = vmul.f32 %v4589_v37, %v1868_v48  ;;  %4389 = vmatmul.msk.f32.vlgmr.msra.gmra.mxu1 %vm1096_vm6, %v1850_v31  ;;  %v1895_v60 = vmul.f32 %v5379_v35, %v1894_v46  ;;  %v2273_v35 = vld [vmem:[#allocation11 + $0x610] sm:$0xff]  ;;  %2129 = vmatpush.msrb.mxu3 %v2103_v36  ;;  %v2100_v39 = vld [vmem:[#allocation11 + $0x528] sm:$0xff]  ;;  %v2194_v42 = vld [vmem:[%s5112_s16 + $0x20] sm:$0xff] }
 0x5db   : > { %4390 = vmatmul.msk.f32.vlgmr.msra.gmra.mxu2 %vm1096_vm6, %v1865_v44  ;;  %2216 = vmatpush.msra.mxu1 %v2213_v50  ;;  %v2101_v12 = vld [vmem:[#allocation11 + $0x530] sm:$0xff]  ;;  %v2099_v43 = vld [vmem:[#allocation11 + $0x520] sm:$0xff]  ;;  %v2098_v55 = vld [vmem:[#allocation11 + $0x518] sm:$0xff] }
 0x5dc   : > { %v1870_v51 = vadd.f32 %v4589_v37, %v1869_v34  ;;  %2284 = vmatpush.msra.mxu2 %v2281_v45  ;;  %2130 = vmatpush.msrb.mxu3 %v2102_v13  ;;  %v2195_v48 = vld [vmem:[%s5112_s16 + $0x28] sm:$0xff]  ;;  %v2096_v31 = vld [vmem:[#allocation11 + $0x508] sm:$0xff]  ;;  %v2197_v5 = vld [vmem:[%s5112_s16 + $0x38] sm:$0xff] }
 0x5dd   : > { %2217 = vmatpush.msra.mxu1 %v2212_v24  ;;  %v2095_v34 = vld [vmem:[#allocation11 + $0x500] sm:$0xff]  ;;  %v2094_v44 = vld [vmem:[#allocation11 + $0x4f8] sm:$0xff]  ;;  %v2093_v45 = vld [vmem:[#allocation11 + $0x4f0] sm:$0xff] }
 0x5de   : > { %v1874_v41 = vsel %vm1873_vm5, %v4589_v37, %v1870_v51  ;;  %2285 = vmatpush.msra.mxu2 %v2280_v56  ;;  %v2190_v37 = vld [vmem:[%s5112_s16] sm:$0xff]  ;;  %2131 = vmatpush.msrb.mxu3 %v2101_v12  ;;  %v2091_v50 = vld [vmem:[#allocation11 + $0x4e0] sm:$0xff]  ;;  %v2089_v51 = vld [vmem:[#allocation11 + $0x4d0] sm:$0xff] }
 0x5df   : > { %v1879_v32 = vsel %vm1876_vm7, %v1878_v38, %v1874_v41  ;;  %2218 = vmatpush.msra.mxu1 %v2211_v63  ;;  %v2090_v57 = vld [vmem:[#allocation11 + $0x4d8] sm:$0xff]  ;;  %v2088_v56 = vld [vmem:[#allocation11 + $0x4c8] sm:$0xff]  ;;  %v2319_v52 = vld [vmem:[#allocation11 + $0x760] sm:$0xff] }
 0x5e0   : > { %2286 = vmatpush.msra.mxu2 %v2279_v59  ;;  %v1880_v18 = vmul.f32 %v5391_v61, %v1879_v32  ;;  %v2274_v61 = vld [vmem:[#allocation11 + $0x618] sm:$0xff]  ;;  %2132 = vmatpush.msrb.mxu3 %v2100_v39  ;;  %v2317_v24 = vld [vmem:[#allocation11 + $0x750] sm:$0xff]  ;;  %v2316_v41 = vld [vmem:[#allocation11 + $0x748] sm:$0xff] }
 0x5e1   : > { %2219 = vmatpush.msra.mxu1 %v2210_v53  ;;  %v2318_v38 = vld [vmem:[#allocation11 + $0x758] sm:$0xff]  ;;  %v2315_v59 = vld [vmem:[#allocation11 + $0x740] sm:$0xff]  ;;  %v2313_v63 = vld [vmem:[#allocation11 + $0x730] sm:$0xff] }
 0x5e2   : > { %2287 = vmatpush.msra.mxu2 %v2278_v0  ;;  %4391 = vmatmul.msk.f32.vlgmr.msrb.gmra.mxu1 %vm1096_vm6, %v1880_v18  ;;  %v2314_v46 = vld [vmem:[#allocation11 + $0x738] sm:$0xff]  ;;  %v2312_v0 = vld [vmem:[#allocation11 + $0x728] sm:$0xff]  ;;  %v2311_v53 = vld [vmem:[#allocation11 + $0x720] sm:$0xff] }
 0x5e3   : > { %4392 = vmatmul.msk.f32.vlgmr.msrb.gmra.mxu2 %vm1096_vm6, %v1895_v60  ;;  %2220 = vmatpush.msra.mxu1 %v2209_v1  ;;  %v2310_v60 = vld [vmem:[#allocation11 + $0x718] sm:$0xff]  ;;  %vm5856_vm2 = vmmov %vm5855_vm1 }
 0x5e4   : > { %2288 = vmatpush.msra.mxu2 %v2277_v16  ;;  %2133 = vmatpush.msrb.mxu3 %v2099_v43  ;;  %v2309_v16 = vld [vmem:[#allocation11 + $0x710] sm:$0xff]  ;;  %vm5857_vm15 = vmmov %vm5855_vm1 }
 0x5e5   : > { %2221 = vmatpush.msra.mxu1 %v2208_v6  ;;  %v2307_v6 = vld [vmem:[#allocation11 + $0x700] sm:$0xff]  ;;  %vm5858_vm3 = vmmov %vm5855_vm1 }
 0x5e6   : > { %2289 = vmatpush.msra.mxu2 %v2276_v2  ;;  %2134 = vmatpush.msrb.mxu3 %v2098_v55  ;;  %v2308_v2 = vld [vmem:[#allocation11 + $0x708] sm:$0xff]  ;;  %vm5859_vm5 = vmmov %vm5855_vm1 }
 0x5e7   : > { %2222 = vmatpush.msra.mxu1 %v2207_v7  ;;  %v2306_v7 = vld [vmem:[#allocation11 + $0x6f8] sm:$0xff]  ;;  %vm5860_vm4 = vmmov %vm5855_vm1 }
 0x5e8   : > { %2290 = vmatpush.msra.mxu2 %v2275_v40  ;;  %2135 = vmatpush.msrb.mxu3 %v2097_v62  ;;  %vm5861_vm7 = vmmov %vm5855_vm1 }
 0x5e9   : > { %2223 = vmatpush.msra.mxu1 %v2206_v3 }
 0x5ea   : > { %2291 = vmatpush.msra.mxu2 %v2274_v61  ;;  %2136 = vmatpush.msrb.mxu3 %v2096_v31 }
 0x5eb   : > { %2224 = vmatpush.msra.mxu1 %v2205_v10 }
 0x5ec   : > { %2292 = vmatpush.msra.mxu2 %v2273_v35  ;;  %2137 = vmatpush.msrb.mxu3 %v2095_v34  ;;  %v2305_v35 = vld [vmem:[#allocation11 + $0x6f0] sm:$0xff] }
 0x5ed   : > { %2225 = vmatpush.msra.mxu1 %v2204_v14  ;;  %v2304_v14 = vld [vmem:[#allocation11 + $0x6e8] sm:$0xff] }
 0x5ee   : > { %2293 = vmatpush.msra.mxu2 %v2272_v11  ;;  %2138 = vmatpush.msrb.mxu3 %v2094_v44 }
 0x5ef   : > { %2226 = vmatpush.msra.mxu1 %v2203_v58 }
 0x5f0   : > { %2294 = vmatpush.msra.mxu2 %v2271_v15  ;;  %2139 = vmatpush.msrb.mxu3 %v2093_v45 }
 0x5f1   : > { %2227 = vmatpush.msra.mxu1 %v2202_v19 }
 0x5f2   : > { %2295 = vmatpush.msra.mxu2 %v2270_v17  ;;  %2140 = vmatpush.msrb.mxu3 %v2092_v49 }
 0x5f3   : > { %2228 = vmatpush.msra.mxu1 %v2201_v30 }
 0x5f4   : > { %2296 = vmatpush.msra.mxu2 %v2269_v20  ;;  %2141 = vmatpush.msrb.mxu3 %v2091_v50 }
 0x5f5   : > { %2229 = vmatpush.msra.mxu1 %v2200_v22 }
 0x5f6   : > { %2297 = vmatpush.msra.mxu2 %v2268_v21  ;;  %2142 = vmatpush.msrb.mxu3 %v2090_v57 }
 0x5f7   : > { %2230 = vmatpush.msra.mxu1 %v2199_v25 }
 0x5f8   : > { %2298 = vmatpush.msra.mxu2 %v2267_v23  ;;  %2143 = vmatpush.msrb.mxu3 %v2089_v51 }
 0x5f9   : > { %2231 = vmatpush.msra.mxu1 %v2198_v26 }
 0x5fa   : > { %2299 = vmatpush.msra.mxu2 %v2266_v47  ;;  %2232 = vmatmul.f32.vlgmr.msra.gmra.mxu1 %v2190_v37 }
 0x5fb   : > { %2300 = vmatmul.f32.vlgmr.msra.gmra.mxu2 %v5131_v29  ;;  %2144 = vmatpush.msrb.mxu3 %v2088_v56  ;;  %v2166_v56 = vld [vmem:[#allocation11 + $0xba0] sm:$0xff] }
 0x5fc   : > { %2169 = vmatpush.msra.mxu0 %v2166_v56  ;;  %v4508_v56 = vld [vmem:[#allocation11 + $0x658] ss:$0 sm:$0xff] }
 0x5fd   : > { %2322 = vmatpush.msra.mxu3 %v2319_v52  ;;  %v2165_v52 = vld [vmem:[#allocation11 + $0xb98] sm:$0xff] }
 0x5fe   : > { %2170 = vmatpush.msra.mxu0 %v2165_v52 }
 0x5ff   : > { %2323 = vmatpush.msra.mxu3 %v2318_v38  ;;  %v2164_v38 = vld [vmem:[#allocation11 + $0xb90] sm:$0xff] }
 0x600   : > { %2171 = vmatpush.msra.mxu0 %v2164_v38 }
 0x601   : > { %2324 = vmatpush.msra.mxu3 %v2317_v24  ;;  %v1939_v18 = vpop.f32.mrf.mxu2 }
 0x602   : > { %2235 = vmatmul.f32.gmra.mxu1 %v2191_v28  ;;  %v2081_v10 = vmax.f32 %v1939_v18, 0.0 }
 0x603   : > { %2325 = vmatpush.msra.mxu3 %v2316_v41 }
 0x604   : > { %v2114_v20 = vrot.slane %v2081_v10, 7  ;;  %v2153_v10 = vld [vmem:[#allocation11 + $0xb38] sm:$0xff] }
 0x605   : > { %2326 = vmatpush.msra.mxu3 %v2315_v59  ;;  %v2163_v59 = vld [vmem:[#allocation11 + $0xb88] sm:$0xff] }
 0x606   : > { %2172 = vmatpush.msra.mxu0 %v2163_v59 }
 0x607   : > { %2327 = vmatpush.msra.mxu3 %v2314_v46 }
 0x609   : > { %2328 = vmatpush.msra.mxu3 %v2313_v63  ;;  %v2161_v63 = vld [vmem:[#allocation11 + $0xb78] sm:$0xff] }
 0x60a   : > { %2238 = vmatmul.f32.gmra.mxu1 %v2192_v33 }
 0x60b   : > { %2329 = vmatpush.msra.mxu3 %v2312_v0  ;;  %v2160_v0 = vld [vmem:[#allocation11 + $0xb70] sm:$0xff] }
 0x60d   : > { %2330 = vmatpush.msra.mxu3 %v2311_v53 }
 0x60f   : > { %2331 = vmatpush.msra.mxu3 %v2310_v60  ;;  %v2159_v60 = vld [vmem:[#allocation11 + $0xb68] sm:$0xff] }
 0x611   : > { %2332 = vmatpush.msra.mxu3 %v2309_v16 }
 0x612   : > { %2241 = vmatmul.f32.gmra.mxu1 %v2193_v4 }
 0x613   : > { %2333 = vmatpush.msra.mxu3 %v2308_v2  ;;  %v2157_v2 = vld [vmem:[#allocation11 + $0xb58] sm:$0xff] }
 0x615   : > { %2334 = vmatpush.msra.mxu3 %v2307_v6  ;;  %v2156_v6 = vld [vmem:[#allocation11 + $0xb50] sm:$0xff] }
 0x617   : > { %2335 = vmatpush.msra.mxu3 %v2306_v7 }
 0x619   : > { %2336 = vmatpush.msra.mxu3 %v2305_v35  ;;  %v2154_v35 = vld [vmem:[#allocation11 + $0xb40] sm:$0xff] }
 0x61a   : > { %2244 = vmatmul.f32.gmra.mxu1 %v2194_v42 }
 0x61b   : > { %2337 = vmatpush.msra.mxu3 %v2304_v14 }
 0x622   : > { %2247 = vmatmul.f32.gmra.mxu1 %v2195_v48  ;;  %v4507_v48 = vld [vmem:[#allocation11 + $0x5d0] ss:$0 sm:$0xff] }
 0x62a   : > { %2250 = vmatmul.f32.gmra.mxu1 %v2196_v27 }
 0x632   : > { %2253 = vmatmul.f32.gmra.mxu1 %v2197_v5 }
 0x645   : > { %v1916_v32 = vpop.f32.mrf.mxu1 }
 0x646   : > { %v2080_v15 = vmax.f32 %v1916_v32, 0.0  ;;  %v2162_v32 = vld [vmem:[#allocation11 + $0xb80] sm:$0xff] }
 0x647   : > { %2173 = vmatpush.msra.mxu0 %v2162_v32 }
 0x648   : > { %v2115_v22 = vsel %vm1316_vm9, %v2114_v20, %v2080_v15  ;;  %v2377_v20 = vld [vmem:[#allocation11 + $0x868] sm:$0xff] }
 0x649   : > { %2174 = vmatpush.msra.mxu0 %v2161_v63 }
 0x64b   : > { %2175 = vmatpush.msra.mxu0 %v2160_v0 }
 0x64d   : > { %2176 = vmatpush.msra.mxu0 %v2159_v60 }
 0x64e   : > { %v1962_v1 = vpop.f32.mrf.mxu1 }
 0x64f   : > { %v2082_v3 = vmax.f32 %v1962_v1, 0.0  ;;  %v2158_v1 = vld [vmem:[#allocation11 + $0xb60] sm:$0xff] }
 0x650   : > { %2177 = vmatpush.msra.mxu0 %v2158_v1 }
 0x651   : > { %v2116_v58 = vrot.slane %v2082_v3, 6 }
 0x652   : > { %2178 = vmatpush.msra.mxu0 %v2157_v2 }
 0x653   : > { %v1985_v40 = vpop.f32.mrf.mxu2  ;;  %v2117_v25 = vsel %vm1319_vm10, %v2116_v58, %v2115_v22  ;;  %v2151_v58 = vld [vmem:[#allocation11 + $0xb28] sm:$0xff]  ;;  %v2374_v22 = vld [vmem:[#allocation11 + $0x850] sm:$0xff] }
 0x654   : > { %v2083_v11 = vmax.f32 %v1985_v40, 0.0  ;;  %2179 = vmatpush.msra.mxu0 %v2156_v6 }
 0x656   : > { %v2118_v30 = vrot.slane %v2083_v11, 5  ;;  %v2152_v11 = vld [vmem:[#allocation11 + $0xb30] sm:$0xff] }
 0x657   : > { %v2008_v61 = vpop.f32.mrf.mxu1 }
 0x658   : > { %v2084_v17 = vmax.f32 %v2008_v61, 0.0  ;;  %v2119_v37 = vsel %vm1322_vm11, %v2118_v30, %v2117_v25  ;;  %v2155_v61 = vld [vmem:[#allocation11 + $0xb48] sm:$0xff]  ;;  %v2376_v30 = vld [vmem:[#allocation11 + $0x860] sm:$0xff] }
 0x659   : > { %2180 = vmatpush.msra.mxu0 %v2155_v61  ;;  %v2372_v25 = vld [vmem:[#allocation11 + $0x840] sm:$0xff] }
 0x65a   : > { %v2120_v47 = vrot.slane %v2084_v17, 4  ;;  %v2378_v17 = vld [vmem:[#allocation11 + $0x870] sm:$0xff] }
 0x65b   : > { %2181 = vmatpush.msra.mxu0 %v2154_v35 }
 0x65c   : > { %v2121_v33 = vsel %vm1325_vm12, %v2120_v47, %v2119_v37  ;;  %v2371_v47 = vld [vmem:[#allocation11 + $0x838] sm:$0xff]  ;;  %v2369_v37 = vld [vmem:[#allocation11 + $0x828] sm:$0xff] }
 0x65d   : > { %2182 = vmatpush.msra.mxu0 %v2153_v10 }
 0x65e   : > { %v2031_v19 = vpop.f32.mrf.mxu2 }
 0x65f   : > { %v2085_v21 = vmax.f32 %v2031_v19, 0.0  ;;  %v2054_v23 = vpop.f32.mrf.mxu1  ;;  %2183 = vmatpush.msra.mxu0 %v2152_v11 }
 0x660   : > { %v2086_v26 = vmax.f32 %v2054_v23, 0.0  ;;  %v2373_v23 = vld [vmem:[#allocation11 + $0x848] sm:$0xff] }
 0x661   : > { %v2122_v28 = vrot.slane %v2085_v21, 3  ;;  %2184 = vmatpush.msra.mxu0 %v2151_v58  ;;  %v2375_v21 = vld [vmem:[#allocation11 + $0x858] sm:$0xff] }
 0x662   : > { %v2124_v4 = vrot.slane %v2086_v26, 2  ;;  %v2370_v26 = vld [vmem:[#allocation11 + $0x830] sm:$0xff] }
 0x663   : > { %v2123_v13 = vsel %vm1328_vm13, %v2122_v28, %v2121_v33  ;;  %2381 = vmatpush.msrb.mxu0 %v2378_v17  ;;  %v2368_v28 = vld [vmem:[#allocation11 + $0x820] sm:$0xff]  ;;  %v2367_v33 = vld [vmem:[#allocation11 + $0x818] sm:$0xff] }
 0x664   : > { %v2125_v42 = vsel %vm1331_vm14, %v2124_v4, %v2123_v13  ;;  %v2366_v4 = vld [vmem:[#allocation11 + $0x810] sm:$0xff]  ;;  %v2364_v13 = vld [vmem:[#allocation11 + $0x800] sm:$0xff] }
 0x665   : > { %2382 = vmatpush.msrb.mxu0 %v2377_v20 }
 0x666   : > { %v2077_v36 = vpop.f32.mrf.mxu2 }
 0x667   : > { %v2087_v12 = vmax.f32 %v2077_v36, 0.0  ;;  %2383 = vmatpush.msrb.mxu0 %v2376_v30  ;;  %v2365_v36 = vld [vmem:[#allocation11 + $0x808] sm:$0xff] }
 0x669   : > { %v2126_v39 = vrot.slane %v2087_v12, 1  ;;  %2384 = vmatpush.msrb.mxu0 %v2375_v21  ;;  %v2363_v12 = vld [vmem:[#allocation11 + $0x7f8] sm:$0xff] }
 0x66b   : > { %v2127_v43 = vsel %vm5854_vm8, %v2126_v39, %v2125_v42  ;;  %2385 = vmatpush.msrb.mxu0 %v2374_v22  ;;  %v4506_v39 = vld [vmem:[#allocation11 + $0x4c0] ss:$0 sm:$0xff]  ;;  %v4509_v42 = vld [vmem:[#allocation11 + $0x548] ss:$0 sm:$0xff]  ;;  %vm5862_vm8 = vmmov %vm5855_vm1 }
 0x66c   : > { %2145 = vmatmul.f32.vlgmr.msrb.gmra.mxu3 %v2127_v43 }
 0x66d   : > { %2386 = vmatpush.msrb.mxu0 %v2373_v23 }
 0x66f   : > { %2387 = vmatpush.msrb.mxu0 %v2372_v25  ;;  %v4512_v25 = vld [vmem:[#allocation11 + $0x878] ss:$0 sm:$0xff] }
 0x671   : > { %2388 = vmatpush.msrb.mxu0 %v2371_v47 }
 0x673   : > { %2389 = vmatpush.msrb.mxu0 %v2370_v26 }
 0x675   : > { %2390 = vmatpush.msrb.mxu0 %v2369_v37 }
 0x677   : > { %v2233_v27 = vpop.f32.mrf.mxu1  ;;  %2391 = vmatpush.msrb.mxu0 %v2368_v28 }
 0x678   : > { %v5486_v55 = vadd.f32 %v4507_v48, %v2233_v27 }
 0x679   : > { %2392 = vmatpush.msrb.mxu0 %v2367_v33 }
 0x67a   : > { %v2257_v62 = vmax.f32 %v5486_v55, 0.0 }
 0x67b   : > { %2393 = vmatpush.msrb.mxu0 %v2366_v4 }
 0x67c   : > { %2338 = vmatmul.f32.vlgmr.msra.gmra.mxu3 %v2257_v62 }
 0x67d   : > { %2394 = vmatpush.msrb.mxu0 %v2365_v36 }
 0x67e   : > { %v2301_v38 = vpop.f32.mrf.mxu2 }
 0x67f   : > { %v2236_v31 = vpop.f32.mrf.mxu1  ;;  %2395 = vmatpush.msrb.mxu0 %v2364_v13  ;;  %v2302_v59 = vadd.f32 %v4508_v56, %v2301_v38 }
 0x680   : > { %v5491_v34 = vadd.f32 %v4507_v48, %v2236_v31 }
 0x681   : > { %2396 = vmatpush.msrb.mxu0 %v2363_v12  ;;  %v2424_v60 = vrot.slane %v2302_v59, 2  ;;  %v2425_v6 = vrot.slane %v2302_v59, 3  ;;  %v2426_v35 = vrot.slane %v2302_v59, 4  ;;  %v2428_v20 = vrot.slane %v2302_v59, 6 }
 0x682   : > { %v2258_v5 = vmax.f32 %v5491_v34, 0.0  ;;  %v2429_v22 = vrot.slane %v2302_v59, 7 }
 0x684   : > { %2341 = vmatmul.f32.gmra.mxu3 %v2258_v5 }
 0x687   : > { %v2239_v44 = vpop.f32.mrf.mxu1 }
 0x688   : > { %v5496_v45 = vadd.f32 %v4507_v48, %v2239_v44 }
 0x68a   : > { %v2259_v49 = vmax.f32 %v5496_v45, 0.0 }
 0x68c   : > { %2344 = vmatmul.f32.gmra.mxu3 %v2259_v49 }
 0x68f   : > { %v2242_v50 = vpop.f32.mrf.mxu1 }
 0x690   : > { %v5501_v57 = vadd.f32 %v4507_v48, %v2242_v50  ;;  %v4510_v50 = vld [vmem:[#allocation11 + $0x768] ss:$0 sm:$0xff] }
 0x692   : > { %v2260_v51 = vmax.f32 %v5501_v57, 0.0 }
 0x694   : > { %2347 = vmatmul.f32.gmra.mxu3 %v2260_v51 }
 0x697   : > { %v2245_v24 = vpop.f32.mrf.mxu1 }
 0x698   : > { %v5506_v41 = vadd.f32 %v4507_v48, %v2245_v24 }
 0x69a   : > { %v2261_v46 = vmax.f32 %v5506_v41, 0.0 }
 0x69c   : > { %2350 = vmatmul.f32.gmra.mxu3 %v2261_v46 }
 0x69f   : > { %v2248_v53 = vpop.f32.mrf.mxu1 }
 0x6a0   : > { %v5511_v18 = vadd.f32 %v4507_v48, %v2248_v53 }
 0x6a2   : > { %v2262_v16 = vmax.f32 %v5511_v18, 0.0 }
 0x6a4   : > { %2353 = vmatmul.f32.gmra.mxu3 %v2262_v16 }
 0x6a7   : > { %v2251_v40 = vpop.f32.mrf.mxu1 }
 0x6a8   : > { %v5516_v7 = vadd.f32 %v4507_v48, %v2251_v40 }
 0x6aa   : > { %v2263_v3 = vmax.f32 %v5516_v7, 0.0 }
 0x6ac   : > { %2356 = vmatmul.f32.gmra.mxu3 %v2263_v3 }
 0x6af   : > { %v2254_v14 = vpop.f32.mrf.mxu1 }
 0x6b0   : > { %v5521_v15 = vadd.f32 %v4507_v48, %v2254_v14  ;;  %v1355_v48 = vadd.f32 %v4506_v39, %v5340_v54  ;;  %v2423_v54 = vrot.slane %v2302_v59, 1  ;;  %v2427_v14 = vrot.slane %v2302_v59, 5 }
 0x6b2   : > { %v2264_v19 = vmax.f32 %v5521_v15, 0.0 }
 0x6b4   : > { %2359 = vmatmul.f32.gmra.mxu3 %v2264_v19 }
 0x6ef   : > { %v2146_v43 = vpop.f32.mrf.mxu3 }
 0x6f0   : > { %v2147_v27 = vadd.f32 %v4509_v42, %v2146_v43 }
 0x6f2   : > { %v2149_v31 = vadd.f32 %v2147_v27, %v1355_v48 }
 0x6f4   : > { %v2150_v44 = vmax.f32 %v2149_v31, 0.0 }
 0x6f6   : > { %2185 = vmatmul.f32.vlgmr.msra.gmra.mxu0 %v2150_v44 }
 0x6fe   : > { %2397 = vmatmul.f32.vlgmr.msrb.gmra.mxu0 %v5486_v55 }
 0x6ff   : > { %v2339_v52 = vpop.f32.mrf.mxu3 }
 0x700   : > { %v2340_v24 = vadd.f32 %v4510_v50, %v2339_v52 }
 0x702   : > { %2452 = vmatpush.xpose.msrb.mxu2 %v2340_v24 }
 0x705   : > { %2453 = vmatmul.f32.vlgmr.msrb.gmra.mxu2 %v2302_v59 }
 0x706   : > { %2400 = vmatmul.f32.gmra.mxu0 %v5491_v34 }
 0x707   : > { %v2342_v32 = vpop.f32.mrf.mxu3 }
 0x708   : > { %v2343_v63 = vadd.f32 %v4510_v50, %v2342_v32 }
 0x70a   : > { %2472 = vmatpush.xpose.msra.mxu2 %v2343_v63 }
 0x70d   : > { %2473 = vmatmul.f32.vlgmr.msra.gmra.mxu2 %v2423_v54 }
 0x70e   : > { %2403 = vmatmul.f32.gmra.mxu0 %v5496_v45 }
 0x70f   : > { %v2345_v0 = vpop.f32.mrf.mxu3 }
 0x710   : > { %v2346_v53 = vadd.f32 %v4510_v50, %v2345_v0 }
 0x712   : > { %2492 = vmatpush.xpose.msrb.mxu2 %v2346_v53 }
 0x715   : > { %2493 = vmatmul.f32.vlgmr.msrb.gmra.mxu2 %v2424_v60 }
 0x716   : > { %2406 = vmatmul.f32.gmra.mxu0 %v5501_v57 }
 0x717   : > { %v2348_v1 = vpop.f32.mrf.mxu3 }
 0x718   : > { %v2349_v2 = vadd.f32 %v4510_v50, %v2348_v1 }
 0x71a   : > { %2512 = vmatpush.xpose.msra.mxu2 %v2349_v2 }
 0x71d   : > { %2513 = vmatmul.f32.vlgmr.msra.gmra.mxu2 %v2425_v6 }
 0x71e   : > { %2409 = vmatmul.f32.gmra.mxu0 %v5506_v41 }
 0x71f   : > { %v2351_v40 = vpop.f32.mrf.mxu3 }
 0x720   : > { %v2352_v61 = vadd.f32 %v4510_v50, %v2351_v40 }
 0x722   : > { %2532 = vmatpush.xpose.msrb.mxu2 %v2352_v61 }
 0x725   : > { %2533 = vmatmul.f32.vlgmr.msrb.gmra.mxu2 %v2426_v35 }
 0x726   : > { %2412 = vmatmul.f32.gmra.mxu0 %v5511_v18 }
 0x727   : > { %v2354_v10 = vpop.f32.mrf.mxu3 }
 0x728   : > { %v2355_v11 = vadd.f32 %v4510_v50, %v2354_v10 }
 0x72a   : > { %2552 = vmatpush.xpose.msra.mxu2 %v2355_v11 }
 0x72d   : > { %2553 = vmatmul.f32.vlgmr.msra.gmra.mxu2 %v2427_v14 }
 0x72e   : > { %2415 = vmatmul.f32.gmra.mxu0 %v5516_v7 }
 0x72f   : > { %v2357_v58 = vpop.f32.mrf.mxu3 }
 0x730   : > { %v2358_v17 = vadd.f32 %v4510_v50, %v2357_v58 }
 0x732   : > { %2572 = vmatpush.xpose.msrb.mxu2 %v2358_v17 }
 0x735   : > { %2573 = vmatmul.f32.vlgmr.msrb.gmra.mxu2 %v2428_v20 }
 0x736   : > { %2418 = vmatmul.f32.gmra.mxu0 %v5521_v15 }
 0x737   : > { %v2360_v30 = vpop.f32.mrf.mxu3 }
 0x738   : > { %v2361_v21 = vadd.f32 %v4510_v50, %v2360_v30 }
 0x73a   : > { %2592 = vmatpush.xpose.msrb.mxu1 %v2361_v21 }
 0x73d   : > { %2593 = vmatmul.f32.vlgmr.msrb.gmra.mxu1 %v2429_v22 }
 0x773   : > { %v5535_v23 = vpop.f32.mrf.mxu0 }
 0x77b   : > { %v2398_v47 = vpop.f32.mrf.mxu0 }
 0x77c   : > { %v2399_v26 = vadd.f32 %v4512_v25, %v2398_v47 }
 0x77e   : > { %2823 = vmatpush.msra.mxu2 %v2399_v26 }
 0x783   : > { %v2401_v37 = vpop.f32.mrf.mxu0 }
 0x784   : > { %v2402_v28 = vadd.f32 %v4512_v25, %v2401_v37 }
 0x786   : > { %2846 = vmatpush.msrb.mxu3 %v2402_v28 }
 0x788   : > { %v2454_v33 = vpop.f32.mrf.mxu2 }
 0x789   : > { %v2597_v38 = vmul.f32 0.17677669, %v2454_v33 }
 0x78b   : > { %v2404_v4 = vpop.f32.mrf.mxu0  ;;  %v2605_v63 = vsel %vm2265_vm0, %v2597_v38, -1e+30 }
 0x78c   : > { %v2405_v36 = vadd.f32 %v4512_v25, %v2404_v4  ;;  %v2613_v53 = vsel %vm5857_vm15, %v2605_v63, -inf  ;;  %vm5864_vm15 = vmmov %vm5855_vm1 }
 0x78e   : > { %2869 = vmatpush.msra.mxu0 %v2405_v36 }
 0x790   : > { %v2474_v13 = vpop.f32.mrf.mxu2 }
 0x791   : > { %v2598_v12 = vmul.f32 0.17677669, %v2474_v13 }
 0x793   : > { %v2407_v39 = vpop.f32.mrf.mxu0  ;;  %v2606_v43 = vsel %vm2265_vm0, %v2598_v12, -1e+30 }
 0x794   : > { %v2408_v42 = vadd.f32 %v4512_v25, %v2407_v39  ;;  %v2616_v48 = vsel %vm5855_vm1, %v2606_v43, -inf }
 0x795   : > { %2617 = vmax.xlane.f32.xlu1 %v2616_v48 }
 0x796   : > { %2892 = vmatpush.msra.mxu1 %v2408_v42 }
 0x798   : > { %v2494_v27 = vpop.f32.mrf.mxu2 }
 0x799   : > { %v2599_v31 = vmul.f32 0.17677669, %v2494_v27 }
 0x79b   : > { %v2410_v44 = vpop.f32.mrf.mxu0  ;;  %v2607_v56 = vsel %vm2265_vm0, %v2599_v31, -1e+30 }
 0x79c   : > { %v2411_v50 = vadd.f32 %v4512_v25, %v2410_v44  ;;  %v2619_v52 = vsel %vm5856_vm2, %v2607_v56, -inf  ;;  %vm5863_vm2 = vmmov %vm5855_vm1 }
 0x79d   : > { %2620 = vmax.xlane.f32.xlu2 %v2619_v52 }
 0x79e   : > { %2915 = vmatpush.msrb.mxu2 %v2411_v50 }
 0x7a0   : > { %v2514_v24 = vpop.f32.mrf.mxu2 }
 0x7a1   : > { %v2600_v59 = vmul.f32 0.17677669, %v2514_v24 }
 0x7a3   : > { %v2413_v32 = vpop.f32.mrf.mxu0  ;;  %v2608_v0 = vsel %vm2265_vm0, %v2600_v59, -1e+30 }
 0x7a4   : > { %v2414_v54 = vadd.f32 %v4512_v25, %v2413_v32  ;;  %v2622_v60 = vsel %vm5858_vm3, %v2608_v0, -inf  ;;  %vm5865_vm3 = vmmov %vm5855_vm1 }
 0x7a5   : > { %2614 = vmax.xlane.f32.xlu2 %v2613_v53  ;;  %2623 = vmax.xlane.f32.xlu1 %v2622_v60 }
 0x7a6   : > { %2938 = vmatpush.msra.mxu3 %v2414_v54 }
 0x7a8   : > { %v2534_v1 = vpop.f32.mrf.mxu2 }
 0x7a9   : > { %v2601_v47 = vmul.f32 0.17677669, %v2534_v1 }
 0x7ab   : > { %v2416_v2 = vpop.f32.mrf.mxu0  ;;  %v2609_v37 = vsel %vm2265_vm0, %v2601_v47, -1e+30 }
 0x7ac   : > { %v2417_v6 = vadd.f32 %v4512_v25, %v2416_v2  ;;  %v2625_v28 = vsel %vm5862_vm8, %v2609_v37, -inf  ;;  %vm5869_vm8 = vmmov %vm5855_vm1 }
 0x7ae   : > { %2961 = vmatpush.msrb.mxu0 %v2417_v6 }
 0x7b0   : > { %v2554_v40 = vpop.f32.mrf.mxu2 }
 0x7b1   : > { %v2602_v61 = vmul.f32 0.17677669, %v2554_v40 }
 0x7b3   : > { %v2419_v35 = vpop.f32.mrf.mxu0  ;;  %v2610_v11 = vsel %vm2265_vm0, %v2602_v61, -1e+30 }
 0x7b4   : > { %v2420_v10 = vadd.f32 %v4512_v25, %v2419_v35  ;;  %v2628_v14 = vsel %vm5859_vm5, %v2610_v11, -inf  ;;  %vm5866_vm5 = vmmov %vm5855_vm1 }
 0x7b5   : > { %2629 = vmax.xlane.f32.xlu2 %v2628_v14 }
 0x7b6   : > { %2984 = vmatpush.msrb.mxu1 %v2420_v10 }
 0x7b8   : > { %v2574_v58 = vpop.f32.mrf.mxu2 }
 0x7b9   : > { %v2603_v17 = vmul.f32 0.17677669, %v2574_v58 }
 0x7ba   : > { %v2594_v20 = vpop.f32.mrf.mxu1 }
 0x7bb   : > { %v2604_v30 = vmul.f32 0.17677669, %v2594_v20  ;;  %v2611_v21 = vsel %vm2265_vm0, %v2603_v17, -1e+30 }
 0x7bc   : > { %v2631_v22 = vsel %vm5860_vm4, %v2611_v21, -inf  ;;  %vm5867_vm4 = vmmov %vm5855_vm1 }
 0x7bd   : > { %2632 = vmax.xlane.f32.xlu0 %v2631_v22  ;;  %v2612_v25 = vsel %vm2265_vm0, %v2604_v30, -1e+30 }
 0x7be   : > { %v2634_v26 = vsel %vm5861_vm7, %v2612_v25, -inf  ;;  %vm5868_vm7 = vmmov %vm5855_vm1 }
 0x7bf   : > { %2635 = vmax.xlane.f32.xlu1 %v2634_v26 }
 0x7c5   : > { %2626 = vmax.xlane.f32.xlu0 %v2625_v28 }
 0x808   : > { %v2618_v33 = vpop.xlane.xlu1 %2617 }
 0x809   : > { %v2638_v13 = vsub.f32 %v2606_v43, %v2618_v33 }
 0x80b   : > { %v2647_v39 = vmul.f32 1.442695, %v2638_v13 }
 0x810   : > { %v2621_v4 = vpop.xlane.xlu2 %2620 }
 0x811   : > { %v2639_v36 = vsub.f32 %v2607_v56, %v2621_v4 }
 0x813   : > { %v2649_v12 = vmul.f32 1.442695, %v2639_v36 }
 0x815   : > { %4590 = vpow2.f32 %v2649_v12 }
 0x816   : > { %4592 = vpow2.f32 %v2647_v39 }
 0x818   : > { %v2615_v42 = vpop.xlane.xlu2 %2614  ;;  %v2624_v48 = vpop.xlane.xlu1 %2623 }
 0x819   : > { %v2637_v27 = vsub.f32 %v2605_v63, %v2615_v42  ;;  %v2640_v50 = vsub.f32 %v2608_v0, %v2624_v48 }
 0x81b   : > { %v5562_v31 = vpop.eup %4590  ;;  %v2645_v44 = vmul.f32 1.442695, %v2637_v27  ;;  %v2651_v38 = vmul.f32 1.442695, %v2640_v50 }
 0x81c   : > { %v2667_v52 = vsel %vm5855_vm1, %v5562_v31, 0.0  ;;  %v5566_v24 = vpop.eup %4592 }
 0x81d   : > { %4594 = vpow2.f32 %v2645_v44  ;;  %2668 = vadd.xlane.f32.xlu0 %v2667_v52  ;;  %v2664_v59 = vsel %vm5864_vm15, %v5566_v24, 0.0 }
 0x81e   : > { %4596 = vpow2.f32 %v2651_v38 }
 0x823   : > { %v5568_v43 = vpop.eup %4594 }
 0x824   : > { %v2661_v56 = vsel %vm5863_vm2, %v5568_v43, 0.0  ;;  %v5574_v63 = vpop.eup %4596 }
 0x825   : > { %2662 = vadd.xlane.f32.xlu1 %v2661_v56  ;;  %2665 = vadd.xlane.f32.xlu0 %v2664_v59  ;;  %v2670_v53 = vsel %vm5865_vm3, %v5574_v63, 0.0 }
 0x828   : > { %v2630_v32 = vpop.xlane.xlu2 %2629 }
 0x829   : > { %v2642_v54 = vsub.f32 %v2610_v11, %v2630_v32 }
 0x82b   : > { %v2655_v0 = vmul.f32 1.442695, %v2642_v54  ;;  %v3111_v54 = vld [vmem:[#allocation11 + $0x7e8] sm:$0xff] }
 0x82d   : > { %4598 = vpow2.f32 %v2655_v0  ;;  %2671 = vadd.xlane.f32.xlu0 %v2670_v53 }
 0x830   : > { %v2633_v60 = vpop.xlane.xlu0 %2632 }
 0x831   : > { %v2643_v1 = vsub.f32 %v2611_v21, %v2633_v60 }
 0x832   : > { %v2636_v61 = vpop.xlane.xlu1 %2635 }
 0x833   : > { %v5578_v2 = vpop.eup %4598  ;;  %v2657_v6 = vmul.f32 1.442695, %v2643_v1  ;;  %v2644_v14 = vsub.f32 %v2612_v25, %v2636_v61 }
 0x834   : > { %v2676_v40 = vsel %vm5866_vm5, %v5578_v2, 0.0 }
 0x835   : > { %4600 = vpow2.f32 %v2657_v6  ;;  %2677 = vadd.xlane.f32.xlu1 %v2676_v40  ;;  %v2659_v20 = vmul.f32 1.442695, %v2644_v14  ;;  %v3110_v40 = vld [vmem:[#allocation11 + $0x7e0] sm:$0xff]  ;;  %v3109_v14 = vld [vmem:[#allocation11 + $0x7d8] sm:$0xff] }
 0x838   : > { %v2627_v35 = vpop.xlane.xlu0 %2626 }
 0x839   : > { %v2641_v10 = vsub.f32 %v2609_v37, %v2627_v35 }
 0x83b   : > { %v5582_v11 = vpop.eup %4600  ;;  %v2653_v58 = vmul.f32 1.442695, %v2641_v10 }
 0x83c   : > { %v2679_v17 = vsel %vm5867_vm4, %v5582_v11, 0.0 }
 0x83d   : > { %4602 = vpow2.f32 %v2653_v58  ;;  %2680 = vadd.xlane.f32.xlu2 %v2679_v17 }
 0x83e   : > { %4604 = vpow2.f32 %v2659_v20 }
 0x843   : > { %v5586_v30 = vpop.eup %4602 }
 0x844   : > { %v2673_v21 = vsel %vm5868_vm7, %v5586_v30, 0.0  ;;  %v5590_v22 = vpop.eup %4604 }
 0x845   : > { %2674 = vadd.xlane.f32.xlu2 %v2673_v21  ;;  %v2682_v47 = vsel %vm5869_vm8, %v5590_v22, 0.0 }
 0x84d   : > { %2683 = vadd.xlane.f32.xlu2 %v2682_v47 }
 0x890   : > { %v2669_v25 = vpop.xlane.xlu0 %2668 }
 0x891   : > { %4606 = vrcp.f32 %v2669_v25  ;;  %v2726_v36 = vand.u32 2147483648, %v2669_v25  ;;  %v2724_v12 = vand.u32 2147483647, %v2669_v25  ;;  %vm2720_vm2 = vweird.f32 %v2669_v25 }
 0x893   : > { %v2727_v48 = vor.u32 1.1754944e-38, %v2726_v36  ;;  %vm2725_vm3 = vcmp.eq.f32.partialorder %v2724_v12, 8.507059e+37 }
 0x897   : > { %v4607_v26 = vpop.eup %4606 }
 0x898   : > { %v2716_v37 = vmul.f32 %v4607_v26, %v2669_v25  ;;  %v2663_v28 = vpop.xlane.xlu1 %2662  ;;  %v2666_v33 = vpop.xlane.xlu0 %2665  ;;  %vm2721_vm1 = vweird.f32 %v4607_v26 }
 0x899   : > { %4608 = vrcp.f32 %v2663_v28  ;;  %vm2722_vm15 = vmor %vm2720_vm2, %vm2721_vm1  ;;  %v2696_v0 = vand.u32 2147483648, %v2663_v28  ;;  %v2694_v1 = vand.u32 2147483647, %v2663_v28  ;;  %v2711_v6 = vand.u32 2147483648, %v2666_v33 }
 0x89a   : > { %v2717_v4 = vsub.f32 1.0, %v2716_v37  ;;  %4610 = vrcp.f32 %v2666_v33  ;;  %v2709_v35 = vand.u32 2147483647, %v2666_v33  ;;  %vm2690_vm7 = vweird.f32 %v2663_v28 }
 0x89b   : > { %vm2705_vm1 = vweird.f32 %v2666_v33  ;;  %vm2695_vm2 = vcmp.eq.f32.partialorder %v2694_v1, 8.507059e+37  ;;  %v2712_v21 = vor.u32 1.1754944e-38, %v2711_v6  ;;  %v3070_v1 = vld [vmem:[#allocation11 + $0x6c0] sm:$0xff] }
 0x89c   : > { %v2718_v13 = vmul.f32 %v4607_v26, %v2717_v4 }
 0x89e   : > { %v2719_v39 = vadd.f32 %v4607_v26, %v2718_v13  ;;  %v3107_v13 = vld [vmem:[#allocation11 + $0x7c8] sm:$0xff] }
 0x89f   : > { %v4609_v42 = vpop.eup %4608 }
 0x8a0   : > { %v4611_v27 = vpop.eup %4610  ;;  %v2723_v44 = vsel %vm2722_vm15, %v4607_v26, %v2719_v39  ;;  %v2686_v50 = vmul.f32 %v4609_v42, %v2663_v28  ;;  %v5594_v52 = vpop.xlane.xlu0 %2671  ;;  %vm2691_vm5 = vweird.f32 %v4609_v42  ;;  %v3108_v26 = vld [vmem:[#allocation11 + $0x7d0] sm:$0xff] }
 0x8a1   : > { %v2728_v38 = vsel %vm2725_vm3, %v2727_v48, %v2723_v44  ;;  %v2701_v56 = vmul.f32 %v4611_v27, %v2666_v33  ;;  %4612 = vrcp.f32 %v5594_v52  ;;  %vm2706_vm4 = vweird.f32 %v4611_v27  ;;  %vm2692_vm8 = vmor %vm2690_vm7, %vm2691_vm5 }
 0x8a2   : > { %v2729_v59 = vmul.f32 %v5562_v31, %v2728_v38  ;;  %v2687_v32 = vsub.f32 1.0, %v2686_v50  ;;  %v2697_v31 = vor.u32 1.1754944e-38, %v2696_v0  ;;  %vm2707_vm15 = vmor %vm2705_vm1, %vm2706_vm4  ;;  %vm2710_vm3 = vcmp.eq.f32.partialorder %v2709_v35, 8.507059e+37  ;;  %v3072_v50 = vld [vmem:[#allocation11 + $0x6d0] sm:$0xff] }
 0x8a3   : > { %v2702_v53 = vsub.f32 1.0, %v2701_v56  ;;  %v2741_v39 = vand.u32 2147483648, %v5594_v52  ;;  %v2739_v44 = vand.u32 2147483647, %v5594_v52  ;;  %vm2735_vm4 = vweird.f32 %v5594_v52 }
 0x8a4   : > { %v2688_v60 = vmul.f32 %v4609_v42, %v2687_v32  ;;  %4395 = vmatmul.msk.f32.vlgmr.msra.gmra.mxu0 %vm1096_vm6, %v2729_v59  ;;  %v3071_v59 = vld [vmem:[#allocation11 + $0x6c8] sm:$0xff] }
 0x8a5   : > { %v2703_v61 = vmul.f32 %v4611_v27, %v2702_v53  ;;  %3114 = vmatpush.msra.mxu0 %v3111_v54  ;;  %v2742_v56 = vor.u32 1.1754944e-38, %v2741_v39  ;;  %v3104_v53 = vld [vmem:[#allocation11 + $0x7b0] sm:$0xff]  ;;  %v3066_v39 = vld [vmem:[#allocation11 + $0x6a0] sm:$0xff] }
 0x8a6   : > { %v2689_v10 = vadd.f32 %v4609_v42, %v2688_v60 }
 0x8a7   : > { %v4613_v58 = vpop.eup %4612  ;;  %v2704_v17 = vadd.f32 %v4611_v27, %v2703_v61  ;;  %3115 = vmatpush.msra.mxu0 %v3110_v40  ;;  %v3103_v40 = vld [vmem:[#allocation11 + $0x7a8] sm:$0xff]  ;;  %v3170_v61 = vld [vmem:[#allocation11 + $0x8f8] sm:$0xff] }
 0x8a8   : > { %v2693_v20 = vsel %vm2692_vm8, %v4609_v42, %v2689_v10  ;;  %v2731_v47 = vmul.f32 %v4613_v58, %v5594_v52  ;;  %v5600_v25 = vpop.xlane.xlu1 %2677  ;;  %v3073_v42 = vld [vmem:[#allocation11 + $0x6d8] sm:$0xff]  ;;  %vm2736_vm5 = vweird.f32 %v4613_v58  ;;  %vm2740_vm8 = vcmp.eq.f32.partialorder %v2739_v44, 8.507059e+37  ;;  %v3099_v44 = vld [vmem:[#allocation11 + $0x788] sm:$0xff] }
 0x8a9   : > { %v2698_v37 = vsel %vm2695_vm2, %v2697_v31, %v2693_v20  ;;  %v2708_v4 = vsel %vm2707_vm15, %v4611_v27, %v2704_v17  ;;  %4614 = vrcp.f32 %v5600_v25  ;;  %3116 = vmatpush.msra.mxu0 %v3109_v14  ;;  %v3106_v27 = vld [vmem:[#allocation11 + $0x7c0] sm:$0xff]  ;;  %vm2737_vm7 = vmor %vm2735_vm4, %vm2736_vm5  ;;  %v2771_v35 = vand.u32 2147483648, %v5600_v25  ;;  %v3069_v10 = vld [vmem:[#allocation11 + $0x6b8] sm:$0xff] }
 0x8aa   : > { %v2699_v28 = vmul.f32 %v5568_v43, %v2698_v37  ;;  %v2713_v36 = vsel %vm2710_vm3, %v2712_v21, %v2708_v4  ;;  %v2732_v33 = vsub.f32 1.0, %v2731_v47  ;;  %v3102_v31 = vld [vmem:[#allocation11 + $0x7a0] sm:$0xff]  ;;  %v3169_v17 = vld [vmem:[#allocation11 + $0x8f0] sm:$0xff]  ;;  %vm2765_vm2 = vweird.f32 %v5600_v25  ;;  %v3101_v21 = vld [vmem:[#allocation11 + $0x798] sm:$0xff] }
 0x8ab   : > { %v2714_v12 = vmul.f32 %v5566_v24, %v2713_v36  ;;  %3117 = vmatpush.msra.mxu0 %v3108_v26  ;;  %v3105_v24 = vld [vmem:[#allocation11 + $0x7b8] sm:$0xff]  ;;  %v3068_v20 = vld [vmem:[#allocation11 + $0x6b0] sm:$0xff]  ;;  %v3168_v47 = vld [vmem:[#allocation11 + $0x8e8] sm:$0xff]  ;;  %v2772_v37 = vor.u32 1.1754944e-38, %v2771_v35 }
 0x8ac   : > { %v2733_v48 = vmul.f32 %v4613_v58, %v2732_v33  ;;  %4393 = vmatmul.msk.f32.vlgmr.msra.gmra.mxu2 %vm1096_vm6, %v2699_v28  ;;  %v3067_v4 = vld [vmem:[#allocation11 + $0x6a8] sm:$0xff]  ;;  %v3096_v35 = vld [vmem:[#allocation11 + $0x770] sm:$0xff] }
 0x8ad   : > { %4394 = vmatmul.msk.f32.vlgmr.msrb.gmra.mxu3 %vm1096_vm6, %v2714_v12  ;;  %3118 = vmatpush.msra.mxu0 %v3107_v13  ;;  %v3100_v13 = vld [vmem:[#allocation11 + $0x790] sm:$0xff]  ;;  %v3167_v12 = vld [vmem:[#allocation11 + $0x8e0] sm:$0xff] }
 0x8ae   : > { %v2734_v43 = vadd.f32 %v4613_v58, %v2733_v48  ;;  %3076 = vmatpush.msrb.mxu3 %v3073_v42 }
 0x8af   : > { %v4615_v38 = vpop.eup %4614  ;;  %3119 = vmatpush.msra.mxu0 %v3106_v27 }
 0x8b0   : > { %v2738_v32 = vsel %vm2737_vm7, %v4613_v58, %v2734_v43  ;;  %v2761_v54 = vmul.f32 %v4615_v38, %v5600_v25  ;;  %3077 = vmatpush.msrb.mxu3 %v3072_v50  ;;  %v5611_v0 = vpop.xlane.xlu2 %2680  ;;  %vm2766_vm1 = vweird.f32 %v4615_v38  ;;  %v2769_v58 = vand.u32 2147483647, %v5600_v25  ;;  %v3065_v50 = vld [vmem:[#allocation11 + $0x698] sm:$0xff] }
 0x8b1   : > { %v2743_v60 = vsel %vm2740_vm8, %v2742_v56, %v2738_v32  ;;  %4616 = vrcp.f32 %v5611_v0  ;;  %3120 = vmatpush.msra.mxu0 %v3105_v24  ;;  %vm2767_vm15 = vmor %vm2765_vm2, %vm2766_vm1  ;;  %v2786_v27 = vand.u32 2147483648, %v5611_v0  ;;  %v3166_v43 = vld [vmem:[#allocation11 + $0x8d8] sm:$0xff]  ;;  %v3098_v56 = vld [vmem:[#allocation11 + $0x780] sm:$0xff]  ;;  %vm2780_vm4 = vweird.f32 %v5611_v0 }
 0x8b2   : > { %v2744_v52 = vmul.f32 %v5574_v63, %v2743_v60  ;;  %v2762_v6 = vsub.f32 1.0, %v2761_v54  ;;  %3078 = vmatpush.msrb.mxu3 %v3071_v59  ;;  %vm2770_vm3 = vcmp.eq.f32.partialorder %v2769_v58, 8.507059e+37  ;;  %v3064_v59 = vld [vmem:[#allocation11 + $0x690] sm:$0xff]  ;;  %v3097_v54 = vld [vmem:[#allocation11 + $0x778] sm:$0xff] }
 0x8b3   : > { %3121 = vmatpush.msra.mxu0 %v3104_v53  ;;  %v2787_v60 = vor.u32 1.1754944e-38, %v2786_v27  ;;  %v3159_v27 = vld [vmem:[#allocation11 + $0x8a0] sm:$0xff] }
 0x8b4   : > { %v2763_v14 = vmul.f32 %v4615_v38, %v2762_v6  ;;  %3079 = vmatpush.msrb.mxu3 %v3070_v1  ;;  %4396 = vmatmul.msk.f32.vlgmr.msra.gmra.mxu1 %vm1096_vm6, %v2744_v52  ;;  %v3063_v1 = vld [vmem:[#allocation11 + $0x688] sm:$0xff] }
 0x8b5   : > { %3122 = vmatpush.msra.mxu0 %v3103_v40  ;;  %3173 = vmatpush.msra.mxu1 %v3170_v61  ;;  %v3164_v52 = vld [vmem:[#allocation11 + $0x8c8] sm:$0xff] }
 0x8b6   : > { %v2764_v63 = vadd.f32 %v4615_v38, %v2763_v14  ;;  %3080 = vmatpush.msrb.mxu3 %v3069_v10 }
 0x8b7   : > { %v4617_v26 = vpop.eup %4616  ;;  %3123 = vmatpush.msra.mxu0 %v3102_v31  ;;  %3174 = vmatpush.msra.mxu1 %v3169_v17  ;;  %v3163_v31 = vld [vmem:[#allocation11 + $0x8c0] sm:$0xff] }
 0x8b8   : > { %v2768_v28 = vsel %vm2767_vm15, %v4615_v38, %v2764_v63  ;;  %v2776_v36 = vmul.f32 %v4617_v26, %v5611_v0  ;;  %3081 = vmatpush.msrb.mxu3 %v3068_v20  ;;  %v5621_v33 = vpop.xlane.xlu2 %2674  ;;  %vm2781_vm5 = vweird.f32 %v4617_v26  ;;  %v2784_v38 = vand.u32 2147483647, %v5611_v0  ;;  %v3062_v0 = vld [vmem:[#allocation11 + $0x680] sm:$0xff]  ;;  %v3061_v20 = vld [vmem:[#allocation11 + $0x678] sm:$0xff] }
 0x8b9   : > { %v2773_v25 = vsel %vm2770_vm3, %v2772_v37, %v2768_v28  ;;  %4618 = vrcp.f32 %v5621_v33  ;;  %3124 = vmatpush.msra.mxu0 %v3101_v21  ;;  %3175 = vmatpush.msra.mxu1 %v3168_v47  ;;  %vm2782_vm7 = vmor %vm2780_vm4, %vm2781_vm5  ;;  %v2756_v17 = vand.u32 2147483648, %v5621_v33  ;;  %v2754_v21 = vand.u32 2147483647, %v5621_v33  ;;  %v3162_v47 = vld [vmem:[#allocation11 + $0x8b8] sm:$0xff] }
 0x8ba   : > { %v2774_v42 = vmul.f32 %v5578_v2, %v2773_v25  ;;  %v2777_v48 = vsub.f32 1.0, %v2776_v36  ;;  %3082 = vmatpush.msrb.mxu3 %v3067_v4  ;;  %v3165_v2 = vld [vmem:[#allocation11 + $0x8d0] sm:$0xff]  ;;  %vm2785_vm8 = vcmp.eq.f32.partialorder %v2784_v38, 8.507059e+37  ;;  %vm2750_vm2 = vweird.f32 %v5621_v33  ;;  %v3059_v36 = vld [vmem:[#allocation11 + $0x668] sm:$0xff] }
 0x8bb   : > { %3125 = vmatpush.msra.mxu0 %v3100_v13  ;;  %3176 = vmatpush.msra.mxu1 %v3167_v12  ;;  %v2757_v28 = vor.u32 1.1754944e-38, %v2756_v17  ;;  %vm2755_vm3 = vcmp.eq.f32.partialorder %v2754_v21, 8.507059e+37  ;;  %v3160_v25 = vld [vmem:[#allocation11 + $0x8a8] sm:$0xff] }
 0x8bc   : > { %v2778_v24 = vmul.f32 %v4617_v26, %v2777_v48  ;;  %3083 = vmatpush.msrb.mxu3 %v3066_v39 }
 0x8bd   : > { %4398 = vmatmul.msk.f32.vlgmr.msra.gmra.mxu3 %vm1096_vm6, %v2774_v42  ;;  %3126 = vmatpush.msra.mxu0 %v3099_v44  ;;  %v3058_v42 = vld [vmem:[#allocation11 + $0x660] sm:$0xff] }
 0x8be   : > { %v2779_v32 = vadd.f32 %v4617_v26, %v2778_v24  ;;  %3084 = vmatpush.msrb.mxu3 %v3065_v50  ;;  %3177 = vmatpush.msra.mxu1 %v3166_v43  ;;  %v3158_v24 = vld [vmem:[#allocation11 + $0x898] sm:$0xff] }
 0x8bf   : > { %v4619_v53 = vpop.eup %4618  ;;  %3127 = vmatpush.msra.mxu0 %v3098_v56  ;;  %v3157_v56 = vld [vmem:[#allocation11 + $0x890] sm:$0xff] }
 0x8c0   : > { %v2783_v6 = vsel %vm2782_vm7, %v4617_v26, %v2779_v32  ;;  %v2746_v40 = vmul.f32 %v4619_v53, %v5621_v33  ;;  %3085 = vmatpush.msrb.mxu3 %v3064_v59  ;;  %v2684_v61 = vpop.xlane.xlu2 %2683  ;;  %3178 = vmatpush.msra.mxu1 %v3165_v2  ;;  %vm2751_vm1 = vweird.f32 %v4619_v53  ;;  %v3060_v26 = vld [vmem:[#allocation11 + $0x670] sm:$0xff] }
 0x8c1   : > { %v2788_v10 = vsel %vm2785_vm8, %v2787_v60, %v2783_v6  ;;  %4620 = vrcp.f32 %v2684_v61  ;;  %3128 = vmatpush.msra.mxu0 %v3097_v54  ;;  %vm2752_vm15 = vmor %vm2750_vm2, %vm2751_vm1  ;;  %v2801_v33 = vand.u32 2147483648, %v2684_v61  ;;  %v2799_v43 = vand.u32 2147483647, %v2684_v61  ;;  %v3156_v54 = vld [vmem:[#allocation11 + $0x888] sm:$0xff]  ;;  %v5664_v6 = vld [vmem:[#allocation11 + $0x7f0] ss:$0 sm:$0xff] }
 0x8c2   : > { %v2789_v14 = vmul.f32 %v5582_v11, %v2788_v10  ;;  %v2747_v58 = vsub.f32 1.0, %v2746_v40  ;;  %3086 = vmatpush.msrb.mxu3 %v3063_v1  ;;  %3179 = vmatpush.msra.mxu1 %v3164_v52  ;;  %v3161_v11 = vld [vmem:[#allocation11 + $0x8b0] sm:$0xff]  ;;  %vm2795_vm4 = vweird.f32 %v2684_v61  ;;  %vm5870_vm1 = vcmask 1047559  }
 0x8c3   : > { %3129 = vmatpush.msra.mxu0 %v3096_v35  ;;  %vm2800_vm8 = vcmp.eq.f32.partialorder %v2799_v43, 8.507059e+37  ;;  %vm5871_vm2 = vcmask 57344  }
 0x8c4   : > { %v2748_v63 = vmul.f32 %v4619_v53, %v2747_v58  ;;  %3087 = vmatpush.msrb.mxu3 %v3062_v0  ;;  %4399 = vmatmul.msk.f32.vlgmr.msrb.gmra.mxu0 %vm1096_vm6, %v2789_v14 }
 0x8c5   : > { %3180 = vmatpush.msra.mxu1 %v3163_v31 }
 0x8c6   : > { %v2749_v37 = vadd.f32 %v4619_v53, %v2748_v63  ;;  %3088 = vmatpush.msrb.mxu3 %v3061_v20  ;;  %v4514_v63 = vld [vmem:[#allocation11 + $0x6e0] ss:$0 sm:$0xff] }
 0x8c7   : > { %v4621_v4 = vpop.eup %4620  ;;  %3181 = vmatpush.msra.mxu1 %v3162_v47 }
 0x8c8   : > { %v2753_v13 = vsel %vm2752_vm15, %v4619_v53, %v2749_v37  ;;  %v2791_v12 = vmul.f32 %v4621_v4, %v2684_v61  ;;  %3089 = vmatpush.msrb.mxu3 %v3060_v26  ;;  %vm2796_vm5 = vweird.f32 %v4621_v4  ;;  %vm5872_vm15 = vmmov %vm5871_vm2 }
 0x8c9   : > { %v2758_v39 = vsel %vm2755_vm3, %v2757_v28, %v2753_v13  ;;  %3182 = vmatpush.msra.mxu1 %v3161_v11  ;;  %vm2797_vm7 = vmor %vm2795_vm4, %vm2796_vm5 }
 0x8ca   : > { %v2759_v48 = vmul.f32 %v5586_v30, %v2758_v39  ;;  %v2792_v44 = vsub.f32 1.0, %v2791_v12  ;;  %3090 = vmatpush.msrb.mxu3 %v3059_v36  ;;  %v2802_v30 = vor.u32 1.1754944e-38, %v2801_v33  ;;  %vm5873_vm3 = vmmov %vm5871_vm2 }
 0x8cb   : > { %3183 = vmatpush.msra.mxu1 %v3160_v25  ;;  %vm5874_vm5 = vmmov %vm5871_vm2 }
 0x8cc   : > { %v2793_v50 = vmul.f32 %v4621_v4, %v2792_v44  ;;  %3091 = vmatpush.msrb.mxu3 %v3058_v42  ;;  %4397 = vmatmul.msk.f32.vlgmr.msrb.gmra.mxu2 %vm1096_vm6, %v2759_v48  ;;  %vm5875_vm4 = vmmov %vm5871_vm2 }
 0x8cd   : > { %3092 = vmatmul.f32.vlgmr.msrb.gmra.mxu3 %v5131_v29  ;;  %3130 = vmatmul.f32.vlgmr.msra.gmra.mxu0 %v2257_v62  ;;  %v3155_v29 = vld [vmem:[#allocation11 + $0x880] sm:$0xff]  ;;  %v3011_v62 = vld [vmem:[#allocation11 + $0x978] sm:$0xff] }
 0x8ce   : > { %v2794_v38 = vadd.f32 %v4621_v4, %v2793_v50  ;;  %3184 = vmatpush.msra.mxu1 %v3159_v27 }
 0x8d0   : > { %v2798_v59 = vsel %vm2797_vm7, %v4621_v4, %v2794_v38  ;;  %3185 = vmatpush.msra.mxu1 %v3158_v24  ;;  %vm5876_vm7 = vmmov %vm5871_vm2 }
 0x8d1   : > { %v2803_v2 = vsel %vm2800_vm8, %v2802_v30, %v2798_v59  ;;  %vm5877_vm8 = vmmov %vm5871_vm2 }
 0x8d2   : > { %v2804_v32 = vmul.f32 %v5590_v22, %v2803_v2  ;;  %3186 = vmatpush.msra.mxu1 %v3157_v56 }
 0x8d4   : > { %4400 = vmatmul.msk.f32.vlgmr.msrb.gmra.mxu1 %vm1096_vm6, %v2804_v32 }
 0x8d5   : > { %3133 = vmatmul.f32.gmra.mxu0 %v2258_v5  ;;  %3187 = vmatpush.msra.mxu1 %v3156_v54  ;;  %v3009_v5 = vld [vmem:[#allocation11 + $0x968] sm:$0xff] }
 0x8d7   : > { %3188 = vmatpush.msra.mxu1 %v3155_v29 }
 0x8dc   : > { %3189 = vmatmul.f32.vlgmr.msra.gmra.mxu1 %v5486_v55  ;;  %v3012_v55 = vld [vmem:[#allocation11 + $0x980] sm:$0xff] }
 0x8dd   : > { %3136 = vmatmul.f32.gmra.mxu0 %v2259_v49  ;;  %3038 = vmatpush.msra.mxu2 %v3012_v55  ;;  %v3007_v49 = vld [vmem:[#allocation11 + $0x958] sm:$0xff] }
 0x8df   : > { %3039 = vmatpush.msra.mxu2 %v3011_v62 }
 0x8e4   : > { %3192 = vmatmul.f32.gmra.mxu1 %v5491_v34  ;;  %v3010_v34 = vld [vmem:[#allocation11 + $0x970] sm:$0xff] }
 0x8e5   : > { %3139 = vmatmul.f32.gmra.mxu0 %v2260_v51  ;;  %3040 = vmatpush.msra.mxu2 %v3010_v34  ;;  %v3005_v51 = vld [vmem:[#allocation11 + $0x948] sm:$0xff] }
 0x8e7   : > { %3041 = vmatpush.msra.mxu2 %v3009_v5 }
 0x8ec   : > { %3195 = vmatmul.f32.gmra.mxu1 %v5496_v45  ;;  %v3008_v45 = vld [vmem:[#allocation11 + $0x960] sm:$0xff] }
 0x8ed   : > { %3142 = vmatmul.f32.gmra.mxu0 %v2261_v46  ;;  %3042 = vmatpush.msra.mxu2 %v3008_v45  ;;  %v3003_v46 = vld [vmem:[#allocation11 + $0x938] sm:$0xff] }
 0x8ef   : > { %3043 = vmatpush.msra.mxu2 %v3007_v49 }
 0x8f4   : > { %3198 = vmatmul.f32.gmra.mxu1 %v5501_v57  ;;  %v3006_v57 = vld [vmem:[#allocation11 + $0x950] sm:$0xff] }
 0x8f5   : > { %3145 = vmatmul.f32.gmra.mxu0 %v2262_v16  ;;  %3044 = vmatpush.msra.mxu2 %v3006_v57  ;;  %v3001_v16 = vld [vmem:[#allocation11 + $0x928] sm:$0xff] }
 0x8f7   : > { %3045 = vmatpush.msra.mxu2 %v3005_v51 }
 0x8fc   : > { %3201 = vmatmul.f32.gmra.mxu1 %v5506_v41  ;;  %v3004_v41 = vld [vmem:[#allocation11 + $0x940] sm:$0xff] }
 0x8fd   : > { %3148 = vmatmul.f32.gmra.mxu0 %v2263_v3  ;;  %3046 = vmatpush.msra.mxu2 %v3004_v41  ;;  %v2999_v3 = vld [vmem:[#allocation11 + $0x918] sm:$0xff]  ;;  %v5679_v41 = vld [vmem:[#allocation11 + $0x900] ss:$0 sm:$0xff] }
 0x8ff   : > { %3047 = vmatpush.msra.mxu2 %v3003_v46 }
 0x904   : > { %3204 = vmatmul.f32.gmra.mxu1 %v5511_v18  ;;  %v3002_v18 = vld [vmem:[#allocation11 + $0x930] sm:$0xff] }
 0x905   : > { %3151 = vmatmul.f32.gmra.mxu0 %v2264_v19  ;;  %3048 = vmatpush.msra.mxu2 %v3002_v18  ;;  %v2997_v19 = vld [vmem:[#allocation11 + $0x908] sm:$0xff] }
 0x907   : > { %3049 = vmatpush.msra.mxu2 %v3001_v16 }
 0x90c   : > { %3207 = vmatmul.f32.gmra.mxu1 %v5516_v7  ;;  %v3000_v7 = vld [vmem:[#allocation11 + $0x920] sm:$0xff] }
 0x90d   : > { %3050 = vmatpush.msra.mxu2 %v3000_v7 }
 0x90f   : > { %3051 = vmatpush.msra.mxu2 %v2999_v3 }
 0x914   : > { %3210 = vmatmul.f32.gmra.mxu1 %v5521_v15  ;;  %v2998_v15 = vld [vmem:[#allocation11 + $0x910] sm:$0xff] }
 0x915   : > { %3052 = vmatpush.msra.mxu2 %v2998_v15 }
 0x917   : > { %3053 = vmatpush.msra.mxu2 %v2997_v19 }
 0x921   : > { %v2871_v22 = vpop.f32.mrf.mxu0 }
 0x922   : > { %v2991_v10 = vmax.f32 %v2871_v22, 0.0 }
 0x924   : > { %v3025_v20 = vrot.slane %v2991_v10, 6 }
 0x92f   : > { %v2825_v52 = vpop.f32.mrf.mxu2 }
 0x930   : > { %v2848_v53 = vpop.f32.mrf.mxu3  ;;  %v2989_v14 = vmax.f32 %v2825_v52, 0.0 }
 0x931   : > { %v2990_v1 = vmax.f32 %v2848_v53, 0.0  ;;  %v2894_v40 = vpop.f32.mrf.mxu1 }
 0x932   : > { %v2992_v58 = vmax.f32 %v2894_v40, 0.0 }
 0x933   : > { %v3023_v35 = vrot.slane %v2990_v1, 7 }
 0x934   : > { %v3027_v21 = vrot.slane %v2992_v58, 5 }
 0x935   : > { %v3024_v17 = vsel %vm1316_vm9, %v3023_v35, %v2989_v14 }
 0x936   : > { %v3026_v37 = vsel %vm1319_vm10, %v3025_v20, %v3024_v17 }
 0x937   : > { %v3028_v42 = vsel %vm1322_vm11, %v3027_v21, %v3026_v37 }
 0x940   : > { %v2940_v61 = vpop.f32.mrf.mxu3 }
 0x941   : > { %v2963_v60 = vpop.f32.mrf.mxu0  ;;  %v2994_v47 = vmax.f32 %v2940_v61, 0.0 }
 0x942   : > { %v2995_v11 = vmax.f32 %v2963_v60, 0.0 }
 0x943   : > { %v3031_v48 = vrot.slane %v2994_v47, 3 }
 0x944   : > { %v3033_v33 = vrot.slane %v2995_v11, 2 }
 0x94a   : > { %v3131_v0 = vpop.f32.mrf.mxu0 }
 0x94b   : > { %v3132_v31 = vadd.f32 %v5664_v6, %v3131_v0 }
 0x94d   : > { %3244 = vmatpush.xpose.msrb.mxu2 %v3132_v31 }
 0x94f   : > { %v2917_v26 = vpop.f32.mrf.mxu2 }
 0x950   : > { %v3093_v4 = vpop.f32.mrf.mxu3  ;;  %v2993_v28 = vmax.f32 %v2917_v26, 0.0 }
 0x951   : > { %v2986_v36 = vpop.f32.mrf.mxu1  ;;  %v3094_v13 = vadd.f32 %v4514_v63, %v3093_v4 }
 0x952   : > { %v3029_v12 = vrot.slane %v2993_v28, 4  ;;  %v2996_v25 = vmax.f32 %v2986_v36, 0.0  ;;  %v3134_v39 = vpop.f32.mrf.mxu0 }
 0x953   : > { %v3135_v44 = vadd.f32 %v5664_v6, %v3134_v39  ;;  %v3215_v38 = vrot.slane %v3094_v13, 1  ;;  %v3217_v29 = vrot.slane %v3094_v13, 3  ;;  %v3216_v55 = vrot.slane %v3094_v13, 2 }
 0x954   : > { %v3030_v27 = vsel %vm1325_vm12, %v3029_v12, %v3028_v42  ;;  %v3035_v50 = vrot.slane %v2996_v25, 1  ;;  %v3218_v5 = vrot.slane %v3094_v13, 4  ;;  %v3219_v51 = vrot.slane %v3094_v13, 5 }
 0x955   : > { %v3032_v43 = vsel %vm1328_vm13, %v3031_v48, %v3030_v27  ;;  %3264 = vmatpush.xpose.msra.mxu3 %v3135_v44  ;;  %v3220_v3 = vrot.slane %v3094_v13, 6  ;;  %v3221_v1 = vrot.slane %v3094_v13, 7 }
 0x956   : > { %v3034_v24 = vsel %vm1331_vm14, %v3033_v33, %v3032_v43 }
 0x957   : > { %v3036_v30 = vsel %vm5870_vm1, %v3035_v50, %v3034_v24  ;;  %vm5878_vm1 = vmmov %vm5871_vm2 }
 0x958   : > { %3265 = vmatmul.f32.vlgmr.msra.gmra.mxu3 %v3215_v38  ;;  %3054 = vmatmul.f32.vlgmr.msra.gmra.mxu2 %v3036_v30 }
 0x959   : > { %v3190_v54 = vpop.f32.mrf.mxu1 }
 0x95a   : > { %v3137_v56 = vpop.f32.mrf.mxu0  ;;  %v3191_v7 = vadd.f32 %v5679_v41, %v3190_v54 }
 0x95b   : > { %v3138_v59 = vadd.f32 %v5664_v6, %v3137_v56 }
 0x95d   : > { %3284 = vmatpush.xpose.msra.mxu2 %v3138_v59 }
 0x960   : > { %3245 = vmatmul.f32.vlgmr.msrb.gmra.mxu2 %v3094_v13 }
 0x961   : > { %v3193_v45 = vpop.f32.mrf.mxu1 }
 0x962   : > { %v3140_v2 = vpop.f32.mrf.mxu0  ;;  %v3194_v53 = vadd.f32 %v5679_v41, %v3193_v45 }
 0x963   : > { %v3141_v32 = vadd.f32 %v5664_v6, %v3140_v2 }
 0x965   : > { %3304 = vmatpush.xpose.msrb.mxu3 %v3141_v32 }
 0x968   : > { %3305 = vmatmul.f32.vlgmr.msrb.gmra.mxu3 %v3217_v29  ;;  %3285 = vmatmul.f32.vlgmr.msra.gmra.mxu2 %v3216_v55 }
 0x969   : > { %v3196_v46 = vpop.f32.mrf.mxu1 }
 0x96a   : > { %v3143_v62 = vpop.f32.mrf.mxu0  ;;  %v3197_v15 = vadd.f32 %v5679_v41, %v3196_v46 }
 0x96b   : > { %v3144_v34 = vadd.f32 %v5664_v6, %v3143_v62 }
 0x96d   : > { %3324 = vmatpush.xpose.msrb.mxu2 %v3144_v34 }
 0x970   : > { %3325 = vmatmul.f32.vlgmr.msrb.gmra.mxu2 %v3218_v5 }
 0x971   : > { %v3199_v60 = vpop.f32.mrf.mxu1 }
 0x972   : > { %v3146_v49 = vpop.f32.mrf.mxu0  ;;  %v3200_v52 = vadd.f32 %v5679_v41, %v3199_v60 }
 0x973   : > { %v3147_v57 = vadd.f32 %v5664_v6, %v3146_v49 }
 0x975   : > { %3344 = vmatpush.xpose.msra.mxu3 %v3147_v57 }
 0x978   : > { %3345 = vmatmul.f32.vlgmr.msra.gmra.mxu3 %v3219_v51 }
 0x97a   : > { %v3149_v18 = vpop.f32.mrf.mxu0 }
 0x97b   : > { %v3150_v16 = vadd.f32 %v5664_v6, %v3149_v18 }
 0x97d   : > { %3364 = vmatpush.xpose.msra.mxu2 %v3150_v16 }
 0x980   : > { %3365 = vmatmul.f32.vlgmr.msra.gmra.mxu2 %v3220_v3 }
 0x981   : > { %3615 = vmatpush.msrb.mxu2 %v3191_v7 }
 0x982   : > { %v3152_v19 = vpop.f32.mrf.mxu0 }
 0x983   : > { %3661 = vmatpush.msra.mxu2 %v3197_v15  ;;  %v3153_v22 = vadd.f32 %v5664_v6, %v3152_v19 }
 0x985   : > { %3384 = vmatpush.xpose.msrb.mxu3 %v3153_v22 }
 0x988   : > { %3385 = vmatmul.f32.vlgmr.msrb.gmra.mxu3 %v3221_v1 }
 0x989   : > { %3638 = vmatpush.msra.mxu3 %v3194_v53 }
 0x98b   : > { %3684 = vmatpush.msrb.mxu3 %v3200_v52 }
 0x9db   : > { %v3266_v40 = vpop.f32.mrf.mxu3  ;;  %v5687_v61 = vpop.f32.mrf.mxu2 }
 0x9dc   : > { %v3390_v35 = vmul.f32 0.17677669, %v3266_v40 }
 0x9de   : > { %v3398_v10 = vsel %vm2265_vm0, %v3390_v35, -1e+30 }
 0x9df   : > { %v3408_v0 = vsel %vm5871_vm2, %v3398_v10, -inf  ;;  %vm5879_vm2 = vmmov %vm5878_vm1 }
 0x9e0   : > { %3409 = vmax.xlane.f32.xlu1 %v3408_v0 }
 0x9e3   : > { %v3246_v6 = vpop.f32.mrf.mxu2 }
 0x9e4   : > { %v3389_v14 = vmul.f32 0.17677669, %v3246_v6 }
 0x9e6   : > { %v3397_v58 = vsel %vm2265_vm0, %v3389_v14, -1e+30 }
 0x9e7   : > { %v3405_v31 = vsel %vm5872_vm15, %v3397_v58, -inf }
 0x9e8   : > { %3406 = vmax.xlane.f32.xlu0 %v3405_v31 }
 0x9eb   : > { %v3306_v17 = vpop.f32.mrf.mxu3  ;;  %v3286_v20 = vpop.f32.mrf.mxu2 }
 0x9ec   : > { %v3392_v63 = vmul.f32 0.17677669, %v3306_v17  ;;  %v3391_v21 = vmul.f32 0.17677669, %v3286_v20 }
 0x9ee   : > { %v3400_v47 = vsel %vm2265_vm0, %v3392_v63, -1e+30  ;;  %v3399_v26 = vsel %vm2265_vm0, %v3391_v21, -1e+30 }
 0x9ef   : > { %v3414_v37 = vsel %vm5873_vm3, %v3400_v47, -inf  ;;  %v3411_v11 = vsel %vm5874_vm5, %v3399_v26, -inf }
 0x9f0   : > { %3415 = vmax.xlane.f32.xlu0 %v3414_v37  ;;  %3412 = vmax.xlane.f32.xlu2 %v3411_v11 }
 0x9f3   : > { %v3326_v4 = vpop.f32.mrf.mxu2 }
 0x9f4   : > { %v3393_v28 = vmul.f32 0.17677669, %v3326_v4 }
 0x9f6   : > { %v3401_v36 = vsel %vm2265_vm0, %v3393_v28, -1e+30 }
 0x9f7   : > { %v3417_v13 = vsel %vm5875_vm4, %v3401_v36, -inf }
 0x9f8   : > { %3418 = vmax.xlane.f32.xlu1 %v3417_v13 }
 0x9fb   : > { %v3346_v12 = vpop.f32.mrf.mxu3 }
 0x9fc   : > { %v3394_v25 = vmul.f32 0.17677669, %v3346_v12 }
 0x9fe   : > { %v3402_v39 = vsel %vm2265_vm0, %v3394_v25, -1e+30 }
 0x9ff   : > { %v3420_v42 = vsel %vm5876_vm7, %v3402_v39, -inf }
 0xa00   : > { %3421 = vmax.xlane.f32.xlu2 %v3420_v42 }
 0xa03   : > { %v3366_v48 = vpop.f32.mrf.mxu2 }
 0xa04   : > { %v3395_v44 = vmul.f32 0.17677669, %v3366_v48 }
 0xa06   : > { %v3403_v33 = vsel %vm2265_vm0, %v3395_v44, -1e+30 }
 0xa07   : > { %v3423_v27 = vsel %vm5877_vm8, %v3403_v33, -inf }
 0xa08   : > { %3424 = vmax.xlane.f32.xlu0 %v3423_v27 }
 0xa0b   : > { %v3386_v50 = vpop.f32.mrf.mxu3 }
 0xa0c   : > { %v3396_v43 = vmul.f32 0.17677669, %v3386_v50 }
 0xa0e   : > { %v3404_v24 = vsel %vm2265_vm0, %v3396_v43, -1e+30  ;;  %vm5880_vm0 = vmmov %vm5878_vm1 }
 0xa0f   : > { %v3426_v38 = vsel %vm5878_vm1, %v3404_v24, -inf  ;;  %vm5881_vm15 = vmmov %vm5880_vm0 }
 0xa10   : > { %3427 = vmax.xlane.f32.xlu1 %v3426_v38  ;;  %vm5882_vm3 = vmmov %vm5880_vm0 }
 0xa11   : > { %vm5883_vm5 = vmmov %vm5880_vm0 }
 0xa12   : > { %vm5884_vm4 = vmmov %vm5880_vm0 }
 0xa13   : > { %vm5885_vm7 = vmmov %vm5880_vm0 }
 0xa14   : > { %vm5886_vm8 = vmmov %vm5880_vm0 }
 0xa53   : > { %v3410_v30 = vpop.xlane.xlu1 %3409 }
 0xa54   : > { %v3430_v56 = vsub.f32 %v3398_v10, %v3410_v30 }
 0xa56   : > { %v3439_v59 = vmul.f32 1.442695, %v3430_v56 }
 0xa58   : > { %4622 = vpow2.f32 %v3439_v59 }
 0xa5b   : > { %v3407_v2 = vpop.xlane.xlu0 %3406 }
 0xa5c   : > { %v3429_v32 = vsub.f32 %v3397_v58, %v3407_v2 }
 0xa5e   : > { %v5713_v54 = vpop.eup %4622  ;;  %v3437_v29 = vmul.f32 1.442695, %v3429_v32 }
 0xa5f   : > { %v3456_v55 = vsel %vm5879_vm2, %v5713_v54, 0.0 }
 0xa60   : > { %4624 = vpow2.f32 %v3437_v29  ;;  %3457 = vadd.xlane.f32.xlu0 %v3456_v55 }
 0xa63   : > { %v3416_v62 = vpop.xlane.xlu0 %3415  ;;  %v3413_v8 = vpop.xlane.xlu2 %3412 }
 0xa64   : > { %v3432_v34 = vsub.f32 %v3400_v47, %v3416_v62  ;;  %v3431_v5 = vsub.f32 %v3399_v26, %v3413_v8  ;;  %v3202_v26 = vpop.f32.mrf.mxu1 }
 0xa66   : > { %v5717_v45 = vpop.eup %4624  ;;  %v3443_v49 = vmul.f32 1.442695, %v3432_v34  ;;  %v3441_v57 = vmul.f32 1.442695, %v3431_v5 }
 0xa67   : > { %v3453_v51 = vsel %vm5880_vm0, %v5717_v45, 0.0 }
 0xa68   : > { %4626 = vpow2.f32 %v3443_v49  ;;  %3454 = vadd.xlane.f32.xlu2 %v3453_v51 }
 0xa69   : > { %4628 = vpow2.f32 %v3441_v57 }
 0xa6b   : > { %v3419_v46 = vpop.xlane.xlu1 %3418 }
 0xa6c   : > { %v3433_v18 = vsub.f32 %v3401_v36, %v3419_v46  ;;  %v3205_v13 = vpop.f32.mrf.mxu1 }
 0xa6d   : > { %v3206_v30 = vadd.f32 %v5679_v41, %v3205_v13 }
 0xa6e   : > { %v5721_v16 = vpop.eup %4626  ;;  %v3445_v7 = vmul.f32 1.442695, %v3433_v18  ;;  %v3203_v18 = vadd.f32 %v5679_v41, %v3202_v26 }
 0xa6f   : > { %v5723_v3 = vpop.eup %4628  ;;  %v3462_v15 = vsel %vm5881_vm15, %v5721_v16, 0.0 }
 0xa70   : > { %4630 = vpow2.f32 %v3445_v7  ;;  %3463 = vadd.xlane.f32.xlu2 %v3462_v15  ;;  %v3459_v19 = vsel %vm5882_vm3, %v5723_v3, 0.0 }
 0xa71   : > { %3460 = vadd.xlane.f32.xlu1 %v3459_v19 }
 0xa73   : > { %v3422_v22 = vpop.xlane.xlu2 %3421 }
 0xa74   : > { %v3434_v53 = vsub.f32 %v3402_v39, %v3422_v22  ;;  %v3208_v32 = vpop.f32.mrf.mxu1 }
 0xa75   : > { %v3209_v13 = vadd.f32 %v5679_v41, %v3208_v32 }
 0xa76   : > { %v5729_v60 = vpop.eup %4630  ;;  %v3447_v1 = vmul.f32 1.442695, %v3434_v53 }
 0xa77   : > { %v3465_v52 = vsel %vm5883_vm5, %v5729_v60, 0.0 }
 0xa78   : > { %4632 = vpow2.f32 %v3447_v1  ;;  %3466 = vadd.xlane.f32.xlu0 %v3465_v52 }
 0xa7b   : > { %v3425_v40 = vpop.xlane.xlu0 %3424 }
 0xa7c   : > { %v3435_v35 = vsub.f32 %v3403_v33, %v3425_v40 }
 0xa7e   : > { %v5733_v10 = vpop.eup %4632  ;;  %v3449_v0 = vmul.f32 1.442695, %v3435_v35 }
 0xa7f   : > { %v3468_v6 = vsel %vm5884_vm4, %v5733_v10, 0.0 }
 0xa80   : > { %4634 = vpow2.f32 %v3449_v0  ;;  %3469 = vadd.xlane.f32.xlu1 %v3468_v6  ;;  %v3211_v6 = vpop.f32.mrf.mxu1 }
 0xa83   : > { %v3428_v14 = vpop.xlane.xlu1 %3427 }
 0xa84   : > { %v3436_v58 = vsub.f32 %v3404_v24, %v3428_v14 }
 0xa86   : > { %v5737_v31 = vpop.eup %4634  ;;  %v3451_v17 = vmul.f32 1.442695, %v3436_v58 }
 0xa87   : > { %v3471_v20 = vsel %vm5885_vm7, %v5737_v31, 0.0 }
 0xa88   : > { %4636 = vpow2.f32 %v3451_v17  ;;  %3472 = vadd.xlane.f32.xlu2 %v3471_v20 }
 0xa8e   : > { %v5741_v63 = vpop.eup %4636 }
 0xa8f   : > { %v3474_v21 = vsel %vm5886_vm8, %v5741_v63, 0.0 }
 0xa90   : > { %3475 = vadd.xlane.f32.xlu0 %v3474_v21 }
 0xad3   : > { %v3458_v47 = vpop.xlane.xlu0 %3457 }
 0xad4   : > { %4638 = vrcp.f32 %v3458_v47  ;;  %v3503_v36 = vand.u32 2147483648, %v3458_v47  ;;  %v3501_v25 = vand.u32 2147483647, %v3458_v47  ;;  %vm3497_vm2 = vweird.f32 %v3458_v47 }
 0xad6   : > { %v3504_v48 = vor.u32 1.1754944e-38, %v3503_v36  ;;  %vm3502_vm15 = vcmp.eq.f32.partialorder %v3501_v25, 8.507059e+37 }
 0xada   : > { %v4639_v37 = vpop.eup %4638 }
 0xadb   : > { %v3493_v11 = vmul.f32 %v4639_v37, %v3458_v47  ;;  %v3455_v4 = vpop.xlane.xlu2 %3454  ;;  %vm3498_vm1 = vweird.f32 %v4639_v37 }
 0xadc   : > { %4640 = vrcp.f32 %v3455_v4  ;;  %vm3499_vm0 = vmor %vm3497_vm2, %vm3498_vm1  ;;  %v3488_v56 = vand.u32 2147483648, %v3455_v4  ;;  %v3486_v2 = vand.u32 2147483647, %v3455_v4  ;;  %vm3482_vm5 = vweird.f32 %v3455_v4 }
 0xadd   : > { %v3494_v28 = vsub.f32 1.0, %v3493_v11 }
 0xade   : > { %v3489_v62 = vor.u32 1.1754944e-38, %v3488_v56  ;;  %vm3487_vm7 = vcmp.eq.f32.partialorder %v3486_v2, 8.507059e+37 }
 0xadf   : > { %v3495_v12 = vmul.f32 %v4639_v37, %v3494_v28 }
 0xae1   : > { %v3496_v39 = vadd.f32 %v4639_v37, %v3495_v12 }
 0xae2   : > { %v4641_v42 = vpop.eup %4640 }
 0xae3   : > { %v3500_v44 = vsel %vm3499_vm0, %v4639_v37, %v3496_v39  ;;  %v3478_v33 = vmul.f32 %v4641_v42, %v3455_v4  ;;  %v3464_v27 = vpop.xlane.xlu2 %3463  ;;  %vm3483_vm3 = vweird.f32 %v4641_v42  ;;  %v3212_v4 = vadd.f32 %v5679_v41, %v3211_v6  ;;  %v3800_v6 = vld [vmem:[#allocation11 + $0x9e8] sm:$0xff] }
 0xae4   : > { %v3505_v50 = vsel %vm3502_vm15, %v3504_v48, %v3500_v44  ;;  %4642 = vrcp.f32 %v3464_v27  ;;  %v3461_v43 = vpop.xlane.xlu1 %3460  ;;  %vm3484_vm4 = vmor %vm3482_vm5, %vm3483_vm3  ;;  %v3533_v7 = vand.u32 2147483648, %v3464_v27  ;;  %v3531_v22 = vand.u32 2147483647, %v3464_v27 }
 0xae5   : > { %v3506_v24 = vmul.f32 %v5713_v54, %v3505_v50  ;;  %v3479_v38 = vsub.f32 1.0, %v3478_v33  ;;  %4644 = vrcp.f32 %v3461_v43  ;;  %v3518_v53 = vand.u32 2147483648, %v3461_v43 }
 0xae6   : > { %v3516_v52 = vand.u32 2147483647, %v3461_v43  ;;  %vm3527_vm2 = vweird.f32 %v3464_v27  ;;  %vm3512_vm15 = vweird.f32 %v3461_v43  ;;  %vm3532_vm3 = vcmp.eq.f32.partialorder %v3531_v22, 8.507059e+37 }
 0xae7   : > { %v3480_v59 = vmul.f32 %v4641_v42, %v3479_v38  ;;  %4402 = vmatmul.msk.f32.vlgmr.msra.gmra.mxu3 %vm1096_vm6, %v3506_v24  ;;  %v3519_v58 = vor.u32 1.1754944e-38, %v3518_v53 }
 0xae8   : > { %3730 = vmatpush.msra.mxu3 %v3206_v30 }
 0xae9   : > { %v3481_v29 = vadd.f32 %v4641_v42, %v3480_v59 }
 0xaea   : > { %v4643_v55 = vpop.eup %4642 }
 0xaeb   : > { %v4645_v8 = vpop.eup %4644  ;;  %v3485_v34 = vsel %vm3484_vm4, %v4641_v42, %v3481_v29  ;;  %v3523_v54 = vmul.f32 %v4643_v55, %v3464_v27  ;;  %v3467_v5 = vpop.xlane.xlu0 %3466  ;;  %vm3528_vm8 = vweird.f32 %v4643_v55  ;;  %vm3517_vm4 = vcmp.eq.f32.partialorder %v3516_v52, 8.507059e+37 }
 0xaec   : > { %v3490_v49 = vsel %vm3487_vm7, %v3489_v62, %v3485_v34  ;;  %v3508_v57 = vmul.f32 %v4645_v8, %v3461_v43  ;;  %4646 = vrcp.f32 %v3467_v5  ;;  %vm3513_vm1 = vweird.f32 %v4645_v8  ;;  %vm3529_vm0 = vmor %vm3527_vm2, %vm3528_vm8 }
 0xaed   : > { %v3491_v51 = vmul.f32 %v5717_v45, %v3490_v49  ;;  %v3524_v46 = vsub.f32 1.0, %v3523_v54  ;;  %v3534_v45 = vor.u32 1.1754944e-38, %v3533_v7  ;;  %vm3514_vm5 = vmor %vm3512_vm15, %vm3513_vm1  ;;  %v3548_v36 = vand.u32 2147483648, %v3467_v5 }
 0xaee   : > { %v3509_v15 = vsub.f32 1.0, %v3508_v57  ;;  %v3546_v25 = vand.u32 2147483647, %v3467_v5  ;;  %vm3542_vm8 = vweird.f32 %v3467_v5 }
 0xaef   : > { %v3525_v19 = vmul.f32 %v4643_v55, %v3524_v46  ;;  %4401 = vmatmul.msk.f32.vlgmr.msrb.gmra.mxu2 %vm1096_vm6, %v3491_v51  ;;  %v3549_v42 = vor.u32 1.1754944e-38, %v3548_v36  ;;  %v3867_v36 = vld [vmem:[#allocation11 + $0xc28] sm:$0xff] }
 0xaf0   : > { %v3510_v1 = vmul.f32 %v4645_v8, %v3509_v15  ;;  %3707 = vmatpush.msrb.mxu2 %v3203_v18  ;;  %vm3547_vm2 = vcmp.eq.f32.partialorder %v3546_v25, 8.507059e+37  ;;  %3870 = vmatpush.msrb.mxu1 %v3867_v36  ;;  %v4000_v36 = vld [vmem:[#allocation11 + $0xd20] sm:$0xff] }
 0xaf1   : > { %v3526_v40 = vadd.f32 %v4643_v55, %v3525_v19 }
 0xaf2   : > { %v4647_v35 = vpop.eup %4646  ;;  %v3511_v0 = vadd.f32 %v4645_v8, %v3510_v1 }
 0xaf3   : > { %v3530_v14 = vsel %vm3529_vm0, %v4643_v55, %v3526_v40  ;;  %v3538_v17 = vmul.f32 %v4647_v35, %v3467_v5  ;;  %v3470_v20 = vpop.xlane.xlu1 %3469  ;;  %vm3543_vm7 = vweird.f32 %v4647_v35 }
 0xaf4   : > { %v3535_v21 = vsel %vm3532_vm3, %v3534_v45, %v3530_v14  ;;  %v3515_v47 = vsel %vm3514_vm5, %v4645_v8, %v3511_v0  ;;  %4648 = vrcp.f32 %v3470_v20  ;;  %vm3544_vm1 = vmor %vm3542_vm8, %vm3543_vm7  ;;  %v3563_v50 = vand.u32 2147483648, %v3470_v20  ;;  %v3802_v45 = vld [vmem:[#allocation11 + $0x9f8] sm:$0xff]  ;;  %v3801_v0 = vld [vmem:[#allocation11 + $0x9f0] sm:$0xff] }
 0xaf5   : > { %v3536_v26 = vmul.f32 %v5721_v16, %v3535_v21  ;;  %v3520_v37 = vsel %vm3517_vm4, %v3519_v58, %v3515_v47  ;;  %v3539_v11 = vsub.f32 1.0, %v3538_v17  ;;  %v3561_v24 = vand.u32 2147483647, %v3470_v20  ;;  %v3799_v14 = vld [vmem:[#allocation11 + $0x9e0] sm:$0xff]  ;;  %v3798_v58 = vld [vmem:[#allocation11 + $0x9d8] sm:$0xff]  ;;  %v3797_v17 = vld [vmem:[#allocation11 + $0x9d0] sm:$0xff] }
 0xaf6   : > { %v3521_v28 = vmul.f32 %v5723_v3, %v3520_v37  ;;  %vm3557_vm15 = vweird.f32 %v3470_v20  ;;  %v3564_v56 = vor.u32 1.1754944e-38, %v3563_v50  ;;  %v3794_v47 = vld [vmem:[#allocation11 + $0x9b8] sm:$0xff]  ;;  %v3792_v37 = vld [vmem:[#allocation11 + $0x9a8] sm:$0xff] }
 0xaf7   : > { %v3540_v12 = vmul.f32 %v4647_v35, %v3539_v11  ;;  %4404 = vmatmul.msk.f32.vlgmr.msrb.gmra.mxu3 %vm1096_vm6, %v3536_v26  ;;  %vm3562_vm5 = vcmp.eq.f32.partialorder %v3561_v24, 8.507059e+37  ;;  %v3793_v26 = vld [vmem:[#allocation11 + $0x9b0] sm:$0xff]  ;;  %v3791_v11 = vld [vmem:[#allocation11 + $0x9a0] sm:$0xff] }
 0xaf8   : > { %4403 = vmatmul.msk.f32.vlgmr.msra.gmra.mxu2 %vm1096_vm6, %v3521_v28  ;;  %3776 = vmatpush.msrb.mxu3 %v3212_v4  ;;  %v3790_v4 = vld [vmem:[#allocation11 + $0x998] sm:$0xff]  ;;  %v3789_v28 = vld [vmem:[#allocation11 + $0x990] sm:$0xff] }
 0xaf9   : > { %v3541_v39 = vadd.f32 %v4647_v35, %v3540_v12  ;;  %3753 = vmatpush.msra.mxu2 %v3209_v13  ;;  %v3866_v13 = vld [vmem:[#allocation11 + $0xc20] sm:$0xff] }
 0xafa   : > { %v4649_v16 = vpop.eup %4648  ;;  %3871 = vmatpush.msrb.mxu1 %v3866_v13  ;;  %v4038_v13 = vld [vmem:[#allocation11 + $0xeb8] sm:$0xff] }
 0xafb   : > { %v3545_v48 = vsel %vm3544_vm1, %v4647_v35, %v3541_v39  ;;  %v3553_v3 = vmul.f32 %v4649_v16, %v3470_v20  ;;  %v3473_v44 = vpop.xlane.xlu2 %3472  ;;  %vm3558_vm0 = vweird.f32 %v4649_v16  ;;  %v3804_v35 = vld [vmem:[#allocation11 + $0xa08] sm:$0xff]  ;;  %v3865_v39 = vld [vmem:[#allocation11 + $0xc18] sm:$0xff] }
 0xafc   : > { %v3550_v33 = vsel %vm3547_vm2, %v3549_v42, %v3545_v48  ;;  %4650 = vrcp.f32 %v3473_v44  ;;  %vm3559_vm3 = vmor %vm3557_vm15, %vm3558_vm0  ;;  %v3578_v62 = vand.u32 2147483648, %v3473_v44  ;;  %v3576_v34 = vand.u32 2147483647, %v3473_v44  ;;  %3830 = vmatpush.msrb.mxu0 %v3804_v35  ;;  %v3796_v20 = vld [vmem:[#allocation11 + $0x9c8] sm:$0xff]  ;;  %3872 = vmatpush.msrb.mxu1 %v3865_v39  ;;  %v3862_v48 = vld [vmem:[#allocation11 + $0xc00] sm:$0xff] }
 0xafd   : > { %v3551_v41 = vmul.f32 %v5729_v60, %v3550_v33  ;;  %v3554_v27 = vsub.f32 1.0, %v3553_v3  ;;  %vm3572_vm7 = vweird.f32 %v3473_v44  ;;  %v3863_v42 = vld [vmem:[#allocation11 + $0xc08] sm:$0xff]  ;;  %v3852_v35 = vld [vmem:[#allocation11 + $0xbb0] sm:$0xff]  ;;  %v3999_v39 = vld [vmem:[#allocation11 + $0xd18] sm:$0xff] }
 0xafe   : > { %v3579_v49 = vor.u32 1.1754944e-38, %v3578_v62  ;;  %vm3577_vm1 = vcmp.eq.f32.partialorder %v3576_v34, 8.507059e+37 }
 0xaff   : > { %v3555_v43 = vmul.f32 %v4649_v16, %v3554_v27  ;;  %v3859_v27 = vld [vmem:[#allocation11 + $0xbe8] sm:$0xff] }
 0xb00   : > { %4405 = vmatmul.msk.f32.vlgmr.msrb.gmra.mxu2 %vm1096_vm6, %v3551_v41  ;;  %v3860_v41 = vld [vmem:[#allocation11 + $0xbf0] sm:$0xff] }
 0xb01   : > { %v3556_v38 = vadd.f32 %v4649_v16, %v3555_v43  ;;  %v3858_v43 = vld [vmem:[#allocation11 + $0xbe0] sm:$0xff] }
 0xb02   : > { %v4651_v30 = vpop.eup %4650 }
 0xb03   : > { %v3560_v59 = vsel %vm3559_vm3, %v4649_v16, %v3556_v38  ;;  %v3568_v2 = vmul.f32 %v4651_v30, %v3473_v44  ;;  %v3476_v32 = vpop.xlane.xlu0 %3475  ;;  %vm3573_vm4 = vweird.f32 %v4651_v30  ;;  %v3864_v16 = vld [vmem:[#allocation11 + $0xc10] sm:$0xff]  ;;  %v3861_v44 = vld [vmem:[#allocation11 + $0xbf8] sm:$0xff] }
 0xb04   : > { %v3565_v29 = vsel %vm3562_vm5, %v3564_v56, %v3560_v59  ;;  %4652 = vrcp.f32 %v3476_v32  ;;  %vm3574_vm8 = vmor %vm3572_vm7, %vm3573_vm4  ;;  %v3591_v19 = vand.u32 2147483647, %v3476_v32  ;;  %vm3587_vm0 = vweird.f32 %v3476_v32  ;;  %3873 = vmatpush.msrb.mxu1 %v3864_v16  ;;  %v4037_v16 = vld [vmem:[#allocation11 + $0xeb0] sm:$0xff] }
 0xb05   : > { %v3566_v60 = vmul.f32 %v5733_v10, %v3565_v29  ;;  %v3569_v55 = vsub.f32 1.0, %v3568_v2  ;;  %v3593_v10 = vand.u32 2147483648, %v3476_v32 }
 0xb06   : > { %vm3592_vm3 = vcmp.eq.f32.partialorder %v3591_v19, 8.507059e+37  ;;  %3874 = vmatpush.msrb.mxu1 %v3863_v42  ;;  %v3900_v42 = vld [vmem:[#allocation11 + $0xc78] sm:$0xff] }
 0xb07   : > { %v3570_v8 = vmul.f32 %v4651_v30, %v3569_v55  ;;  %4406 = vmatmul.msk.f32.vlgmr.msra.gmra.mxu3 %vm1096_vm6, %v3566_v60  ;;  %v3594_v53 = vor.u32 1.1754944e-38, %v3593_v10  ;;  %v3856_v60 = vld [vmem:[#allocation11 + $0xbd0] sm:$0xff] }
 0xb08   : > { %3875 = vmatpush.msrb.mxu1 %v3862_v48  ;;  %v3940_v48 = vld [vmem:[#allocation11 + $0xe20] sm:$0xff] }
 0xb09   : > { %v3571_v54 = vadd.f32 %v4651_v30, %v3570_v8 }
 0xb0a   : > { %v4653_v5 = vpop.eup %4652  ;;  %3876 = vmatpush.msrb.mxu1 %v3861_v44  ;;  %v4036_v44 = vld [vmem:[#allocation11 + $0xea8] sm:$0xff] }
 0xb0b   : > { %v3575_v57 = vsel %vm3574_vm8, %v4651_v30, %v3571_v54  ;;  %v3583_v51 = vmul.f32 %v4653_v5, %v3476_v32  ;;  %vm3588_vm2 = vweird.f32 %v4653_v5  ;;  %v3857_v30 = vld [vmem:[#allocation11 + $0xbd8] sm:$0xff] }
 0xb0c   : > { %v3580_v46 = vsel %vm3577_vm1, %v3579_v49, %v3575_v57  ;;  %vm3589_vm15 = vmor %vm3587_vm0, %vm3588_vm2  ;;  %3877 = vmatpush.msrb.mxu1 %v3860_v41  ;;  %v3939_v41 = vld [vmem:[#allocation11 + $0xe18] sm:$0xff] }
 0xb0d   : > { %v3581_v18 = vmul.f32 %v5737_v31, %v3580_v46  ;;  %v3584_v7 = vsub.f32 1.0, %v3583_v51  ;;  %v3803_v31 = vld [vmem:[#allocation11 + $0xa00] sm:$0xff] }
 0xb0e   : > { %3831 = vmatpush.msrb.mxu0 %v3803_v31  ;;  %3878 = vmatpush.msrb.mxu1 %v3859_v27  ;;  %v3907_v31 = vld [vmem:[#allocation11 + $0xcb0] sm:$0xff]  ;;  %v3997_v27 = vld [vmem:[#allocation11 + $0xd08] sm:$0xff] }
 0xb0f   : > { %v3585_v15 = vmul.f32 %v4653_v5, %v3584_v7  ;;  %4407 = vmatmul.msk.f32.vlgmr.msra.gmra.mxu2 %vm1096_vm6, %v3581_v18 }
 0xb10   : > { %3832 = vmatpush.msrb.mxu0 %v3802_v45  ;;  %3879 = vmatpush.msrb.mxu1 %v3858_v43  ;;  %v3906_v45 = vld [vmem:[#allocation11 + $0xca8] sm:$0xff] }
 0xb11   : > { %v3586_v22 = vadd.f32 %v4653_v5, %v3585_v15  ;;  %3910 = vmatpush.msrb.mxu2 %v3907_v31  ;;  %v3898_v43 = vld [vmem:[#allocation11 + $0xc68] sm:$0xff]  ;;  %v4098_v31 = vld [vmem:[#allocation11 + $0xdb8] sm:$0xff] }
 0xb12   : > { %3833 = vmatpush.msrb.mxu0 %v3801_v0  ;;  %3880 = vmatpush.msrb.mxu1 %v3857_v30  ;;  %v3905_v0 = vld [vmem:[#allocation11 + $0xca0] sm:$0xff]  ;;  %v4034_v30 = vld [vmem:[#allocation11 + $0xe98] sm:$0xff] }
 0xb13   : > { %v3590_v1 = vsel %vm3589_vm15, %v4653_v5, %v3586_v22  ;;  %3911 = vmatpush.msrb.mxu2 %v3906_v45  ;;  %v4096_v45 = vld [vmem:[#allocation11 + $0xda8] sm:$0xff] }
 0xb14   : > { %v3595_v52 = vsel %vm3592_vm3, %v3594_v53, %v3590_v1  ;;  %3834 = vmatpush.msrb.mxu0 %v3800_v6  ;;  %3881 = vmatpush.msrb.mxu1 %v3856_v60  ;;  %v3855_v1 = vld [vmem:[#allocation11 + $0xbc8] sm:$0xff]  ;;  %v3904_v6 = vld [vmem:[#allocation11 + $0xc98] sm:$0xff]  ;;  %v3936_v60 = vld [vmem:[#allocation11 + $0xe00] sm:$0xff] }
 0xb15   : > { %v3596_v40 = vmul.f32 %v5741_v63, %v3595_v52  ;;  %v3795_v63 = vld [vmem:[#allocation11 + $0x9c0] sm:$0xff]  ;;  %3912 = vmatpush.msrb.mxu2 %v3905_v0 }
 0xb16   : > { %3835 = vmatpush.msrb.mxu0 %v3799_v14  ;;  %3882 = vmatpush.msrb.mxu1 %v3855_v1  ;;  %v3854_v52 = vld [vmem:[#allocation11 + $0xbc0] sm:$0xff]  ;;  %v3945_v14 = vld [vmem:[#allocation11 + $0xe48] sm:$0xff] }
 0xb17   : > { %4408 = vmatmul.msk.f32.vlgmr.msrb.gmra.mxu3 %vm1096_vm6, %v3596_v40  ;;  %vm5887_vm6 = vcmask 1047559   ;;  %v3853_v40 = vld [vmem:[#allocation11 + $0xbb8] sm:$0xff]  ;;  %3913 = vmatpush.msrb.mxu2 %v3904_v6  ;;  %v4095_v0 = vld [vmem:[#allocation11 + $0xda0] sm:$0xff] }
 0xb18   : > { %3836 = vmatpush.msrb.mxu0 %v3798_v58  ;;  %3883 = vmatpush.msrb.mxu1 %v3854_v52  ;;  %v4003_v58 = vld [vmem:[#allocation11 + $0xd38] sm:$0xff] }
 0xb19   : > { %3948 = vmatpush.msra.mxu3 %v3945_v14  ;;  %v3892_v52 = vld [vmem:[#allocation11 + $0xc38] sm:$0xff]  ;;  %v4093_v14 = vld [vmem:[#allocation11 + $0xd90] sm:$0xff] }
 0xb1a   : > { %3837 = vmatpush.msrb.mxu0 %v3797_v17  ;;  %3884 = vmatpush.msrb.mxu1 %v3853_v40  ;;  %v4041_v17 = vld [vmem:[#allocation11 + $0xed0] sm:$0xff]  ;;  %v4099_v40 = vld [vmem:[#allocation11 + $0xdc0] sm:$0xff]  ;;  %v4094_v6 = vld [vmem:[#allocation11 + $0xd98] sm:$0xff] }
 0xb1c   : > { %3838 = vmatpush.msrb.mxu0 %v3796_v20  ;;  %3885 = vmatpush.msrb.mxu1 %v3852_v35  ;;  %v3944_v20 = vld [vmem:[#allocation11 + $0xe40] sm:$0xff] }
 0xb1d   : > { %3949 = vmatpush.msra.mxu3 %v3944_v20  ;;  %v4029_v20 = vld [vmem:[#allocation11 + $0xe70] sm:$0xff] }
 0xb1e   : > { %3839 = vmatpush.msrb.mxu0 %v3795_v63  ;;  %v4002_v63 = vld [vmem:[#allocation11 + $0xd30] sm:$0xff]  ;;  %4044 = vmatpush.msra.mxu1 %v4041_v17  ;;  %v3991_v17 = vld [vmem:[#allocation11 + $0xcd8] sm:$0xff] }
 0xb20   : > { %3840 = vmatpush.msrb.mxu0 %v3794_v47  ;;  %v4040_v47 = vld [vmem:[#allocation11 + $0xec8] sm:$0xff] }
 0xb21   : > { %4045 = vmatpush.msra.mxu1 %v4040_v47  ;;  %v3990_v47 = vld [vmem:[#allocation11 + $0xcd0] sm:$0xff] }
 0xb22   : > { %3841 = vmatpush.msrb.mxu0 %v3793_v26  ;;  %v3943_v26 = vld [vmem:[#allocation11 + $0xe38] sm:$0xff] }
 0xb23   : > { %3950 = vmatpush.msra.mxu3 %v3943_v26  ;;  %v4028_v26 = vld [vmem:[#allocation11 + $0xe68] sm:$0xff] }
 0xb24   : > { %3842 = vmatpush.msrb.mxu0 %v3792_v37  ;;  %v4001_v37 = vld [vmem:[#allocation11 + $0xd28] sm:$0xff] }
 0xb26   : > { %3843 = vmatpush.msrb.mxu0 %v3791_v11  ;;  %v4039_v11 = vld [vmem:[#allocation11 + $0xec0] sm:$0xff] }
 0xb27   : > { %4046 = vmatpush.msra.mxu1 %v4039_v11  ;;  %v3931_v11 = vld [vmem:[#allocation11 + $0xdd8] sm:$0xff] }
 0xb28   : > { %3844 = vmatpush.msrb.mxu0 %v3790_v4  ;;  %v3902_v4 = vld [vmem:[#allocation11 + $0xc88] sm:$0xff] }
 0xb29   : > { %4047 = vmatpush.msra.mxu1 %v4038_v13  ;;  %v3930_v13 = vld [vmem:[#allocation11 + $0xdd0] sm:$0xff] }
 0xb2a   : > { %3845 = vmatpush.msrb.mxu0 %v3789_v28  ;;  %v3942_v28 = vld [vmem:[#allocation11 + $0xe30] sm:$0xff] }
 0xb2b   : > { %3951 = vmatpush.msra.mxu3 %v3942_v28  ;;  %4048 = vmatpush.msra.mxu1 %v4037_v16  ;;  %v4027_v28 = vld [vmem:[#allocation11 + $0xe60] sm:$0xff]  ;;  %v4137_v16 = vld [vmem:[#allocation11 + $0xf58] sm:$0xff] }
 0xb2c   : > { %4006 = vmatpush.msra.mxu0 %v4003_v58  ;;  %v4092_v58 = vld [vmem:[#allocation11 + $0xd88] sm:$0xff] }
 0xb2d   : > { %4049 = vmatpush.msra.mxu1 %v4036_v44  ;;  %v4086_v44 = vld [vmem:[#allocation11 + $0xd58] sm:$0xff] }
 0xb2e   : > { %4007 = vmatpush.msra.mxu0 %v4002_v63  ;;  %v4091_v63 = vld [vmem:[#allocation11 + $0xd80] sm:$0xff] }
 0xb30   : > { %4008 = vmatpush.msra.mxu0 %v4001_v37  ;;  %v4090_v37 = vld [vmem:[#allocation11 + $0xd78] sm:$0xff] }
 0xb32   : > { %4009 = vmatpush.msra.mxu0 %v4000_v36  ;;  %v4089_v36 = vld [vmem:[#allocation11 + $0xd70] sm:$0xff] }
 0xb34   : > { %4010 = vmatpush.msra.mxu0 %v3999_v39  ;;  %v4088_v39 = vld [vmem:[#allocation11 + $0xd68] sm:$0xff] }
 0xb6a   : > { %v3640_v25 = vpop.f32.mrf.mxu3 }
 0xb6b   : > { %v3782_v24 = vmax.f32 %v3640_v25, 0.0  ;;  %v3941_v25 = vld [vmem:[#allocation11 + $0xe28] sm:$0xff] }
 0xb6c   : > { %3952 = vmatpush.msra.mxu3 %v3941_v25  ;;  %v4026_v25 = vld [vmem:[#allocation11 + $0xe58] sm:$0xff] }
 0xb6d   : > { %v3815_v55 = vrot.slane %v3782_v24, 7  ;;  %v3938_v24 = vld [vmem:[#allocation11 + $0xe10] sm:$0xff] }
 0xb6e   : > { %3953 = vmatpush.msra.mxu3 %v3940_v48  ;;  %v4087_v48 = vld [vmem:[#allocation11 + $0xd60] sm:$0xff] }
 0xb70   : > { %3954 = vmatpush.msra.mxu3 %v3939_v41  ;;  %v4085_v41 = vld [vmem:[#allocation11 + $0xd50] sm:$0xff] }
 0xb72   : > { %v3617_v21 = vpop.f32.mrf.mxu2  ;;  %3955 = vmatpush.msra.mxu3 %v3938_v24  ;;  %v4132_v24 = vld [vmem:[#allocation11 + $0xf30] sm:$0xff] }
 0xb73   : > { %v3781_v56 = vmax.f32 %v3617_v21, 0.0  ;;  %v3903_v21 = vld [vmem:[#allocation11 + $0xc90] sm:$0xff] }
 0xb74   : > { %3914 = vmatpush.msrb.mxu2 %v3903_v21  ;;  %v3932_v21 = vld [vmem:[#allocation11 + $0xde0] sm:$0xff] }
 0xb75   : > { %v3816_v34 = vsel %vm1316_vm9, %v3815_v55, %v3781_v56  ;;  %v3897_v56 = vld [vmem:[#allocation11 + $0xc60] sm:$0xff]  ;;  %v4516_v55 = vld [vmem:[#allocation11 + $0x988] ss:$0 sm:$0xff] }
 0xb76   : > { %3915 = vmatpush.msrb.mxu2 %v3902_v4  ;;  %v3989_v4 = vld [vmem:[#allocation11 + $0xcc8] sm:$0xff] }
 0xb7a   : > { %v3686_v3 = vpop.f32.mrf.mxu3 }
 0xb7b   : > { %v3663_v12 = vpop.f32.mrf.mxu2  ;;  %v3784_v59 = vmax.f32 %v3686_v3, 0.0  ;;  %v3998_v3 = vld [vmem:[#allocation11 + $0xd10] sm:$0xff] }
 0xb7c   : > { %v3783_v50 = vmax.f32 %v3663_v12, 0.0  ;;  %v3901_v12 = vld [vmem:[#allocation11 + $0xc80] sm:$0xff]  ;;  %4011 = vmatpush.msra.mxu0 %v3998_v3  ;;  %v4136_v3 = vld [vmem:[#allocation11 + $0xf50] sm:$0xff] }
 0xb7d   : > { %v3819_v54 = vrot.slane %v3784_v59, 5  ;;  %3916 = vmatpush.msrb.mxu2 %v3901_v12  ;;  %v3937_v59 = vld [vmem:[#allocation11 + $0xe08] sm:$0xff]  ;;  %v3988_v12 = vld [vmem:[#allocation11 + $0xcc0] sm:$0xff] }
 0xb7e   : > { %v3817_v32 = vrot.slane %v3783_v50, 6  ;;  %v4035_v50 = vld [vmem:[#allocation11 + $0xea0] sm:$0xff]  ;;  %4012 = vmatpush.msra.mxu0 %v3997_v27  ;;  %3956 = vmatpush.msra.mxu3 %v3937_v59  ;;  %v4511_v59 = vld [vmem:[#allocation11 + $0xba8] ss:$0 sm:$0xff] }
 0xb7f   : > { %3917 = vmatpush.msrb.mxu2 %v3900_v42  ;;  %4050 = vmatpush.msra.mxu1 %v4035_v50  ;;  %v5773_v42 = vld [vmem:[#allocation2] sm:$0xff]  ;;  %v4084_v50 = vld [vmem:[#allocation11 + $0xd48] sm:$0xff] }
 0xb80   : > { %v3818_v5 = vsel %vm1319_vm10, %v3817_v32, %v3816_v34  ;;  %v4033_v32 = vld [vmem:[#allocation11 + $0xe90] sm:$0xff]  ;;  %3957 = vmatpush.msra.mxu3 %v3936_v60  ;;  %v4134_v27 = vld [vmem:[#allocation11 + $0xf40] sm:$0xff]  ;;  %v2187_v60 = vadd.f32 %v4511_v59, %v5535_v23  ;;  %v4520_v23 = vld [vmem:[#allocation11 + $0xed8] ss:$0 sm:$0xff] }
 0xb81   : > { %v3820_v18 = vsel %vm1322_vm11, %v3819_v54, %v3818_v5  ;;  %4051 = vmatpush.msra.mxu1 %v4034_v30  ;;  %v4517_v34 = vld [vmem:[#allocation11 + $0xa10] ss:$0 sm:$0xff]  ;;  %v3935_v5 = vld [vmem:[#allocation11 + $0xdf8] sm:$0xff]  ;;  %v4130_v30 = vld [vmem:[#allocation11 + $0xf20] sm:$0xff] }
 0xb82   : > { %v3895_v54 = vld [vmem:[#allocation11 + $0xc50] sm:$0xff]  ;;  %3958 = vmatpush.msra.mxu3 %v3935_v5 }
 0xb83   : > { %v3709_v33 = vpop.f32.mrf.mxu2  ;;  %4052 = vmatpush.msra.mxu1 %v4033_v32  ;;  %v4501_v32 = vld [vmem:[#allocation11 + $0xb20] ss:$0 sm:$0xff] }
 0xb84   : > { %v3785_v29 = vmax.f32 %v3709_v33, 0.0  ;;  %v3899_v33 = vld [vmem:[#allocation11 + $0xc70] sm:$0xff] }
 0xb85   : > { %3918 = vmatpush.msrb.mxu2 %v3899_v33  ;;  %v4135_v33 = vld [vmem:[#allocation11 + $0xf48] sm:$0xff] }
 0xb86   : > { %v3821_v49 = vrot.slane %v3785_v29, 4  ;;  %v3896_v29 = vld [vmem:[#allocation11 + $0xc58] sm:$0xff] }
 0xb87   : > { %3919 = vmatpush.msrb.mxu2 %v3898_v43  ;;  %v4133_v43 = vld [vmem:[#allocation11 + $0xf38] sm:$0xff] }
 0xb88   : > { %v3822_v10 = vsel %vm1325_vm12, %v3821_v49, %v3820_v18  ;;  %v3993_v49 = vld [vmem:[#allocation11 + $0xce8] sm:$0xff] }
 0xb89   : > { %3920 = vmatpush.msrb.mxu2 %v3897_v56  ;;  %v4129_v56 = vld [vmem:[#allocation11 + $0xf18] sm:$0xff] }
 0xb8a   : > { %v3732_v38 = vpop.f32.mrf.mxu3 }
 0xb8b   : > { %v3786_v62 = vmax.f32 %v3732_v38, 0.0  ;;  %v3996_v38 = vld [vmem:[#allocation11 + $0xd00] sm:$0xff]  ;;  %3921 = vmatpush.msrb.mxu2 %v3896_v29  ;;  %v4127_v29 = vld [vmem:[#allocation11 + $0xf08] sm:$0xff] }
 0xb8c   : > { %4013 = vmatpush.msra.mxu0 %v3996_v38  ;;  %v4131_v38 = vld [vmem:[#allocation11 + $0xf28] sm:$0xff] }
 0xb8d   : > { %v3823_v57 = vrot.slane %v3786_v62, 3  ;;  %v3994_v62 = vld [vmem:[#allocation11 + $0xcf0] sm:$0xff]  ;;  %3922 = vmatpush.msrb.mxu2 %v3895_v54 }
 0xb8f   : > { %v3824_v15 = vsel %vm1328_vm13, %v3823_v57, %v3822_v10  ;;  %v4031_v57 = vld [vmem:[#allocation11 + $0xe80] sm:$0xff]  ;;  %v4030_v10 = vld [vmem:[#allocation11 + $0xe78] sm:$0xff] }
 0xb92   : > { %v3755_v2 = vpop.f32.mrf.mxu2 }
 0xb93   : > { %v3787_v8 = vmax.f32 %v3755_v2, 0.0  ;;  %v3995_v2 = vld [vmem:[#allocation11 + $0xcf8] sm:$0xff] }
 0xb94   : > { %4014 = vmatpush.msra.mxu0 %v3995_v2  ;;  %v4128_v2 = vld [vmem:[#allocation11 + $0xf10] sm:$0xff] }
 0xb95   : > { %v3825_v51 = vrot.slane %v3787_v8, 2  ;;  %v4032_v8 = vld [vmem:[#allocation11 + $0xe88] sm:$0xff] }
 0xb96   : > { %4015 = vmatpush.msra.mxu0 %v3994_v62  ;;  %4053 = vmatpush.msra.mxu1 %v4032_v8  ;;  %v4126_v62 = vld [vmem:[#allocation11 + $0xf00] sm:$0xff]  ;;  %v476_v8 = vadd.f32 %v4501_v32, %v5185_v9  ;;  %v4523_v32 = vld [vmem:[#allocation11 + $0xdc8] ss:$0 sm:$0xff] }
 0xb97   : > { %v3826_v22 = vsel %vm1331_vm14, %v3825_v51, %v3824_v15  ;;  %v3894_v51 = vld [vmem:[#allocation11 + $0xc48] sm:$0xff]  ;;  %v3056_v15 = vadd.f32 %v4516_v55, %v5687_v61  ;;  %v4097_v61 = vld [vmem:[#allocation11 + $0xdb0] sm:$0xff]  ;;  %v4182_v9 = vld [vmem:[#allocation11 + $0xfe0] sm:$0xff] }
 0xb98   : > { %4016 = vmatpush.msra.mxu0 %v3993_v49  ;;  %4054 = vmatpush.msra.mxu1 %v4031_v57  ;;  %v4518_v55 = vld [vmem:[#allocation11 + $0xc30] ss:$0 sm:$0xff]  ;;  %v2189_v5 = vadd.f32 %v2187_v60, %v476_v8 }
 0xb99   : > { %3923 = vmatpush.msrb.mxu2 %v3894_v51  ;;  %v4124_v57 = vld [vmem:[#allocation11 + $0xef0] sm:$0xff] }
 0xb9a   : > { %v3778_v46 = vpop.f32.mrf.mxu3  ;;  %4055 = vmatpush.msra.mxu1 %v4030_v10  ;;  %v4181_v10 = vld [vmem:[#allocation11 + $0xfd8] sm:$0xff] }
 0xb9b   : > { %v3788_v7 = vmax.f32 %v3778_v46, 0.0  ;;  %v3934_v46 = vld [vmem:[#allocation11 + $0xdf0] sm:$0xff] }
 0xb9c   : > { %3959 = vmatpush.msra.mxu3 %v3934_v46  ;;  %4056 = vmatpush.msra.mxu1 %v4029_v20  ;;  %v4123_v46 = vld [vmem:[#allocation11 + $0xee8] sm:$0xff] }
 0xb9d   : > { %v3827_v19 = vrot.slane %v3788_v7, 1  ;;  %v3992_v7 = vld [vmem:[#allocation11 + $0xce0] sm:$0xff] }
 0xb9e   : > { %4017 = vmatpush.msra.mxu0 %v3992_v7  ;;  %4057 = vmatpush.msra.mxu1 %v4028_v26  ;;  %v4122_v7 = vld [vmem:[#allocation11 + $0xee0] sm:$0xff] }
 0xb9f   : > { %v3828_v53 = vsel %vm5887_vm6, %v3827_v19, %v3826_v22  ;;  %v3893_v22 = vld [vmem:[#allocation11 + $0xc40] sm:$0xff] }
 0xba0   : > { %3846 = vmatmul.f32.vlgmr.msrb.gmra.mxu0 %v3828_v53  ;;  %v3933_v53 = vld [vmem:[#allocation11 + $0xde8] sm:$0xff]  ;;  %3924 = vmatpush.msrb.mxu2 %v3893_v22  ;;  %v4519_v22 = vld [vmem:[#allocation11 + $0xd40] ss:$0 sm:$0xff] }
 0xba1   : > { %3960 = vmatpush.msra.mxu3 %v3933_v53  ;;  %4018 = vmatpush.msra.mxu0 %v3991_v17  ;;  %v4179_v53 = vld [vmem:[#allocation11 + $0xfc8] sm:$0xff]  ;;  %v4174_v26 = vld [vmem:[#allocation11 + $0xfa0] sm:$0xff] }
 0xba2   : > { %3925 = vmatpush.msrb.mxu2 %v3892_v52  ;;  %4058 = vmatpush.msra.mxu1 %v4027_v28  ;;  %v4178_v52 = vld [vmem:[#allocation11 + $0xfc0] sm:$0xff]  ;;  %v4172_v28 = vld [vmem:[#allocation11 + $0xf90] sm:$0xff] }
 0xba3   : > { %3961 = vmatpush.msra.mxu3 %v3932_v21  ;;  %4019 = vmatpush.msra.mxu0 %v3990_v47  ;;  %v4175_v21 = vld [vmem:[#allocation11 + $0xfa8] sm:$0xff] }
 0xba4   : > { %4102 = vmatpush.msra.mxu2 %v4099_v40  ;;  %4059 = vmatpush.msra.mxu1 %v4026_v25  ;;  %v4169_v25 = vld [vmem:[#allocation11 + $0xf78] sm:$0xff] }
 0xba5   : > { %3962 = vmatpush.msra.mxu3 %v3931_v11  ;;  %4020 = vmatpush.msra.mxu0 %v3989_v4  ;;  %v4173_v11 = vld [vmem:[#allocation11 + $0xf98] sm:$0xff] }
 0xba6   : > { %4103 = vmatpush.msra.mxu2 %v4098_v31  ;;  %v4522_v31 = vld [vmem:[#allocation11 + $0xe50] ss:$0 sm:$0xff] }
 0xba7   : > { %3963 = vmatpush.msra.mxu3 %v3930_v13  ;;  %4021 = vmatpush.msra.mxu0 %v3988_v12  ;;  %v4171_v13 = vld [vmem:[#allocation11 + $0xf88] sm:$0xff]  ;;  %v4170_v12 = vld [vmem:[#allocation11 + $0xf80] sm:$0xff] }
 0xba8   : > { %4104 = vmatpush.msra.mxu2 %v4097_v61  ;;  %3964 = vmatmul.f32.vlgmr.msra.gmra.mxu3 %v5773_v42  ;;  %v4177_v61 = vld [vmem:[#allocation11 + $0xfb8] sm:$0xff] }
 0xba9   : > { %4140 = vmatpush.msrb.mxu3 %v4137_v16  ;;  %4185 = vmatpush.msrb.mxu0 %v4182_v9  ;;  %v4168_v16 = vld [vmem:[#allocation11 + $0xf70] sm:$0xff] }
 0xbaa   : > { %4105 = vmatpush.msra.mxu2 %v4096_v45 }
 0xbab   : > { %4141 = vmatpush.msrb.mxu3 %v4136_v3  ;;  %4186 = vmatpush.msrb.mxu0 %v4181_v10  ;;  %v4167_v3 = vld [vmem:[#allocation11 + $0xf68] sm:$0xff] }
 0xbac   : > { %4106 = vmatpush.msra.mxu2 %v4095_v0 }
 0xbad   : > { %4142 = vmatpush.msrb.mxu3 %v4135_v33 }
 0xbae   : > { %4107 = vmatpush.msra.mxu2 %v4094_v6  ;;  %v4521_v6 = vld [vmem:[#allocation11 + $0xcb8] ss:$0 sm:$0xff] }
 0xbaf   : > { %4143 = vmatpush.msrb.mxu3 %v4134_v27 }
 0xbb0   : > { %4108 = vmatpush.msra.mxu2 %v4093_v14  ;;  %v4176_v14 = vld [vmem:[#allocation11 + $0xfb0] sm:$0xff] }
 0xbb1   : > { %4144 = vmatpush.msrb.mxu3 %v4133_v43 }
 0xbb2   : > { %4109 = vmatpush.msra.mxu2 %v4092_v58 }
 0xbb3   : > { %4145 = vmatpush.msrb.mxu3 %v4132_v24  ;;  %v4524_v24 = vld [vmem:[#allocation11 + $0xf60] ss:$0 sm:$0xff] }
 0xbb4   : > { %4110 = vmatpush.msra.mxu2 %v4091_v63 }
 0xbb5   : > { %4146 = vmatpush.msrb.mxu3 %v4131_v38 }
 0xbb6   : > { %4111 = vmatpush.msra.mxu2 %v4090_v37 }
 0xbb7   : > { %4147 = vmatpush.msrb.mxu3 %v4130_v30 }
 0xbb8   : > { %4112 = vmatpush.msra.mxu2 %v4089_v36 }
 0xbb9   : > { %4148 = vmatpush.msrb.mxu3 %v4129_v56 }
 0xbba   : > { %4113 = vmatpush.msra.mxu2 %v4088_v39 }
 0xbbb   : > { %4149 = vmatpush.msrb.mxu3 %v4128_v2 }
 0xbbc   : > { %4114 = vmatpush.msra.mxu2 %v4087_v48 }
 0xbbd   : > { %4150 = vmatpush.msrb.mxu3 %v4127_v29 }
 0xbbe   : > { %4115 = vmatpush.msra.mxu2 %v4086_v44 }
 0xbbf   : > { %4151 = vmatpush.msrb.mxu3 %v4126_v62 }
 0xbc0   : > { %4116 = vmatpush.msra.mxu2 %v4085_v41 }
 0xbc2   : > { %4117 = vmatpush.msra.mxu2 %v4084_v50 }
 0xc1d   : > { %v3847_v18 = vpop.f32.mrf.mxu0 }
 0xc1e   : > { %v3848_v19 = vadd.f32 %v4517_v34, %v3847_v18  ;;  %v4125_v34 = vld [vmem:[#allocation11 + $0xef8] sm:$0xff] }
 0xc1f   : > { %4152 = vmatpush.msrb.mxu3 %v4125_v34 }
 0xc20   : > { %v3850_v1 = vadd.f32 %v3848_v19, %v3056_v15  ;;  %v4180_v15 = vld [vmem:[#allocation11 + $0xfd0] sm:$0xff] }
 0xc21   : > { %4153 = vmatpush.msrb.mxu3 %v4124_v57  ;;  %4187 = vmatpush.msrb.mxu0 %v4180_v15 }
 0xc22   : > { %v3851_v35 = vmax.f32 %v3850_v1, 0.0 }
 0xc23   : > { %4154 = vmatpush.msrb.mxu3 %v4123_v46  ;;  %4188 = vmatpush.msrb.mxu0 %v4179_v53  ;;  %v4525_v53 = vld [vmem:[#allocation11 + $0xfe8] ss:$0 sm:$0xff] }
 0xc24   : > { %3886 = vmatmul.f32.vlgmr.msrb.gmra.mxu1 %v3851_v35 }
 0xc25   : > { %4155 = vmatpush.msrb.mxu3 %v4122_v7  ;;  %4189 = vmatpush.msrb.mxu0 %v4178_v52 }
 0xc26   : > { %4156 = vmatmul.f32.vlgmr.msrb.gmra.mxu3 %v5773_v42 }
 0xc27   : > { %4190 = vmatpush.msrb.mxu0 %v4177_v61 }
 0xc29   : > { %4191 = vmatpush.msrb.mxu0 %v4176_v14 }
 0xc2b   : > { %v3965_v45 = vpop.f32.mrf.mxu3  ;;  %4192 = vmatpush.msrb.mxu0 %v4175_v21 }
 0xc2c   : > { %4060 = vmatmul.f32.vlgmr.msra.gmra.mxu1 %v5773_v42  ;;  %v3966_v17 = vadd.f32 %v4522_v31, %v3965_v45 }
 0xc2d   : > { %4193 = vmatpush.msrb.mxu0 %v4174_v26 }
 0xc2f   : > { %4194 = vmatpush.msrb.mxu0 %v4173_v11 }
 0xc31   : > { %4195 = vmatpush.msrb.mxu0 %v4172_v28 }
 0xc33   : > { %4196 = vmatpush.msrb.mxu0 %v4171_v13 }
 0xc35   : > { %4197 = vmatpush.msrb.mxu0 %v4170_v12 }
 0xc37   : > { %4198 = vmatpush.msrb.mxu0 %v4169_v25 }
 0xc39   : > { %4199 = vmatpush.msrb.mxu0 %v4168_v16 }
 0xc3b   : > { %4200 = vmatpush.msrb.mxu0 %v4167_v3 }
 0xca1   : > { %v3887_v54 = vpop.f32.mrf.mxu1 }
 0xca2   : > { %v3888_v49 = vadd.f32 %v4518_v55, %v3887_v54 }
 0xca4   : > { %v3890_v51 = vadd.f32 %v3888_v49, %v2189_v5 }
 0xca6   : > { %v3891_v18 = vmax.f32 %v3890_v51, 0.0 }
 0xca8   : > { %3926 = vmatmul.f32.vlgmr.msrb.gmra.mxu2 %v3891_v18  ;;  %4022 = vmatmul.f32.vlgmr.msra.gmra.mxu0 %v3891_v18 }
 0xca9   : > { %v4061_v19 = vpop.f32.mrf.mxu1  ;;  %v4157_v30 = vpop.f32.mrf.mxu3 }
 0xcaa   : > { %v4062_v1 = vadd.f32 %v4520_v23, %v4061_v19  ;;  %v4158_v60 = vadd.f32 %v4524_v24, %v4157_v30 }
 0xcb0   : > { %4118 = vmatmul.f32.vlgmr.msra.gmra.mxu2 %v3891_v18 }
 0xd25   : > { %v4023_v40 = vpop.f32.mrf.mxu0 }
 0xd26   : > { %v4024_v35 = vadd.f32 %v4519_v22, %v4023_v40 }
 0xd28   : > { %v4064_v0 = vadd.f32 %v4062_v1, %v4024_v35 }
 0xd2a   : > { %v4410_v58 = vmul.f32 -1.442695, %v4064_v0 }
 0xd2b   : > { %v3927_v20 = vpop.f32.mrf.mxu2 }
 0xd2c   : > { %4654 = vpow2.f32 %v4410_v58  ;;  %v3928_v63 = vadd.f32 %v4521_v6, %v3927_v20 }
 0xd2e   : > { %v3968_v47 = vadd.f32 %v3966_v17, %v3928_v63 }
 0xd30   : > { %v4409_v37 = vmul.f32 -1.442695, %v3968_v47 }
 0xd32   : > { %v4655_v4 = vpop.eup %4654  ;;  %4656 = vpow2.f32 %v4409_v37 }
 0xd33   : > { %v4068_v36 = vadd.f32 1.0, %v4655_v4  ;;  %v4119_v55 = vpop.f32.mrf.mxu2 }
 0xd34   : > { %v4120_v49 = vadd.f32 %v4523_v32, %v4119_v55 }
 0xd35   : > { %4658 = vrcp.f32 %v4068_v36  ;;  %v4080_v5 = vand.u32 2147483648, %v4068_v36  ;;  %vm4074_vm14 = vweird.f32 %v4068_v36  ;;  %v4078_v51 = vand.u32 2147483647, %v4068_v36 }
 0xd37   : > { %v4081_v7 = vor.u32 1.1754944e-38, %v4080_v5  ;;  %vm4079_vm4 = vcmp.eq.f32.partialorder %v4078_v51, 8.507059e+37 }
 0xd38   : > { %v4657_v39 = vpop.eup %4656 }
 0xd39   : > { %v3972_v48 = vadd.f32 1.0, %v4657_v39 }
 0xd3b   : > { %4660 = vrcp.f32 %v3972_v48  ;;  %v4659_v44 = vpop.eup %4658  ;;  %v3984_v38 = vand.u32 2147483648, %v3972_v48  ;;  %v3982_v59 = vand.u32 2147483647, %v3972_v48  ;;  %vm3978_vm10 = vweird.f32 %v3972_v48 }
 0xd3c   : > { %v4070_v33 = vmul.f32 %v4659_v44, %v4068_v36  ;;  %vm4075_vm13 = vweird.f32 %v4659_v44 }
 0xd3d   : > { %v3985_v62 = vor.u32 1.1754944e-38, %v3984_v38  ;;  %vm3983_vm12 = vcmp.eq.f32.partialorder %v3982_v59, 8.507059e+37  ;;  %vm4076_vm5 = vmor %vm4074_vm14, %vm4075_vm13 }
 0xd3e   : > { %v4071_v50 = vsub.f32 1.0, %v4070_v33 }
 0xd40   : > { %v4072_v2 = vmul.f32 %v4659_v44, %v4071_v50 }
 0xd41   : > { %v4661_v41 = vpop.eup %4660 }
 0xd42   : > { %v3974_v27 = vmul.f32 %v4661_v41, %v3972_v48  ;;  %vm3979_vm9 = vweird.f32 %v4661_v41  ;;  %v4073_v54 = vadd.f32 %v4659_v44, %v4072_v2 }
 0xd43   : > { %vm3980_vm11 = vmor %vm3978_vm10, %vm3979_vm9 }
 0xd44   : > { %v3975_v43 = vsub.f32 1.0, %v3974_v27  ;;  %v4077_v18 = vsel %vm4076_vm5, %v4659_v44, %v4073_v54 }
 0xd45   : > { %v4082_v9 = vsel %vm4079_vm4, %v4081_v7, %v4077_v18 }
 0xd46   : > { %v3976_v56 = vmul.f32 %v4661_v41, %v3975_v43  ;;  %v4163_v23 = vsub.f32 1.0, %v4082_v9  ;;  %v4165_v19 = vmul.f32 %v4082_v9, %v5773_v42 }
 0xd48   : > { %v3977_v29 = vadd.f32 %v4661_v41, %v3976_v56 }
 0xd4a   : > { %v3981_v8 = vsel %vm3980_vm11, %v4661_v41, %v3977_v29 }
 0xd4b   : > { %v3986_v34 = vsel %vm3983_vm12, %v3985_v62, %v3981_v8 }
 0xd4c   : > { %v4160_v57 = vmul.f32 %v4158_v60, %v3986_v34 }
 0xd4e   : > { %v4161_v46 = vadd.f32 %v4160_v57, %v4120_v49 }
 0xd50   : > { %4662 = vtanh.f32 %v4161_v46 }
 0xd56   : > { %v4663_v10 = vpop.eup %4662 }
 0xd57   : > { %v4164_v15 = vmul.f32 %v4663_v10, %v4163_v23 }
 0xd59   : > { %v4166_v22 = vadd.f32 %v4165_v19, %v4164_v15 }
 0xd5b   : > { %4201 = vmatmul.f32.vlgmr.msrb.gmra.mxu0 %v4166_v22  ;;  %4205 = vst [vmem:[#allocation2] sm:$0xff] %v4166_v22 }
 0xdd8   : > { %v4202_v1 = vpop.f32.mrf.mxu0 }
 0xdd9   : > { %v4203_v52 = vadd.f32 %v4525_v53, %v4202_v1 }
 0xddb   : > { %v4206_v40 = vadd.f32 %v4203_v52, %v4166_v22 }
 0xddd   : > { %4207 = vst [vmem:[%s5118_s9] sm:$0xff] %v4206_v40 }
 0xdde   : > { %4841 = shalt.err (!%p4838_p2)
}
 0xddf   : > { %4431 = dma.vmem_to_hbm [thread:$0]  (%p4976_p11), %s4222_s25, 128, %s4224_s23, %s4209_s15  }
 0xde0 PF: > { %p4459_p9 = scmp.ge.s32.totalorder %s4888_s21, 2  ;;  %s4235_s1 = sand.u32 1, %s4876_s18  }
 0xde1   : > { %s4236_s20 = scalar_lea.sflag [#allocation5], %s4235_s1 }
 0xde2   : > { %p4451_p10 = pnand %p4459_p9, %p4980_p12 }
 0xde4   : > { %p4452_p13 = pneg %p4451_p10 }
 0xde6   : > { %4871 = dma.done.wait (%p4452_p13), %s4236_s20, 128  }
 0xde7   : > { %4873 = vsyncadd (%p4452_p13), %s4236_s20, 4294967168  ;;  %s5889_s21 = sld [smem:[#allocation18_spill]]  ;;  %s5892_s18 = smov %s4880_s19 }
 0xde8   : > { %s5890_s24 = sld [smem:[#allocation17_spill]] }
 0xde9   : > { %s5891_s20 = sld [smem:[#allocation19_spill]] }
 0xded   : > { %p22_p7 = scmp.ge.s32.totalorder %s5889_s21, 10  }
 0xdee   : > { %s5893_s19 = smov %s5890_s24 }
 0xdef   :  { %24 = sbr.rel (!%p22_p7) target bundleno = 12 (0xc), region = 121 }
 0xdf4   :  { %4242 = vsyncpa [#allocation4], 1 }
 0xdf5   :  { %4244 = vsyncpa [#allocation4 + $0x1], 1 }
 0xdf6   :  { %4245 = vsyncpa [#allocation7], 1 }
 0xdf7   :  { %4247 = vsyncpa [#allocation7 + $0x1], 1 }
 0xdf8   :  { %4248 = vsyncpa [#allocation10], 1 }
 0xdf9   :  { %4249 = vsyncpa [#allocation5], 1 }
 0xdfa   :  { %4251 = vsyncpa [#allocation5 + $0x1], 1 }

</bundles_post_ra>
